<compile_context>
chip_gen: v7x
topology: tpu7x:2x2x1
jax: 0.10.0
libtpu: 0.0.40
codegen_flags: <defaults>
</compile_context>

<pallas_src>
import functools

import jax
import jax.numpy as jnp
from jax import lax
from jax.experimental import pallas as pl
from jax.experimental.pallas import tpu as pltpu

NEG_SLOPE = 0.01   # torch.nn.LeakyReLU default negative_slope
BN_EPS = 1e-5      # torch BatchNorm2d default eps

_VMEM = pl.BlockSpec(memory_space=pltpu.MemorySpace.VMEM)


# ------------------------------- small helpers -------------------------------

def _pad_lane(c):
    """Pad a count up to a multiple of 128 (lane width)."""
    return ((c + 127) // 128) * 128


def _row_tile(m, target=1024):
    """Row-tile size: large tiles (amortize per-step overhead), but expose >=2 parallel
    tiles when cheaply possible so both v7x TensorCores get work."""
    if m > target:
        for t in range(target, 15, -16):
            if m % t == 0:
                return t
        return m
    if m >= 64 and m % 32 == 0:
        return m // 2          # 2 parallel M-tiles, still a multiple of 16
    return m                    # small M: full extent (legal even below (16,128) min tile)


def _fold_bn(conv_w, bn):
    gamma, beta, mean, var = bn
    scale = gamma / jnp.sqrt(var + BN_EPS)
    w = conv_w * scale[:, None, None, None]      # [Cout, Cin, kh, kw]
    b = beta - mean * scale                      # [Cout]
    return w, b


# ------------------------------- conv matmul kernel -------------------------------

def _conv_mm_kernel(x_ref, w_ref, b_ref, *rest, act, mode):
    # x_ref: (tm, K_pad) bf16 im2col tile      w_ref: (K_pad, tn) bf16
    # b_ref: (1, tn) f32 folded-BN bias
    # mode=="res" : res_ref (tm, tn) bf16 identity residual
    # mode=="down": xd_ref (tm, Kd_pad) bf16, wd_ref (Kd_pad, tn) bf16, bd_ref (1, tn) f32
    if mode == "res":
        res_ref, o_ref = rest
    elif mode == "down":
        xd_ref, wd_ref, bd_ref, o_ref = rest
    else:
        o_ref, = rest

    out = jnp.dot(x_ref[...], w_ref[...], preferred_element_type=jnp.float32) + b_ref[...]
    if mode == "res":
        out = out + res_ref[...].astype(jnp.float32)               # fused identity residual
    elif mode == "down":
        out = out + (jnp.dot(xd_ref[...], wd_ref[...],             # fused 1x1 downsample branch
                             preferred_element_type=jnp.float32) + bd_ref[...])
    if act == "relu":
        out = jnp.maximum(out, 0.0)
    o_ref[...] = out.astype(o_ref.dtype)


def conv_matmul(patches, wm, bias, *, act, residual=None, down=None):
    # patches: [M, K_pad] bf16   wm: [K_pad, Cout_pad] bf16   bias: [1, Cout_pad] f32
    m, k_pad = patches.shape
    cout_p = wm.shape[-1]
    tm = _row_tile(m)
    tn = 128 if cout_p % 128 == 0 else cout_p
    grid = (m // tm, cout_p // tn)

    in_specs = [
        pl.BlockSpec((tm, k_pad), lambda i, j: (i, 0)),
        pl.BlockSpec((k_pad, tn), lambda i, j: (0, j)),
        pl.BlockSpec((1, tn), lambda i, j: (0, j)),
    ]
    inputs = [patches, wm, bias]
    flops = 2 * m * k_pad * cout_p
    bytes_accessed = patches.size * 2 + wm.size * 2 + bias.size * 4 + m * cout_p * 2

    mode = "plain"
    if residual is not None:
        mode = "res"
        in_specs.append(pl.BlockSpec((tm, tn), lambda i, j: (i, j)))
        inputs.append(residual)
        bytes_accessed += residual.size * 2
    elif down is not None:
        mode = "down"
        xd, wd, bd = down
        kd_pad = xd.shape[-1]
        in_specs += [
            pl.BlockSpec((tm, kd_pad), lambda i, j: (i, 0)),
            pl.BlockSpec((kd_pad, tn), lambda i, j: (0, j)),
            pl.BlockSpec((1, tn), lambda i, j: (0, j)),
        ]
        inputs += [xd, wd, bd]
        flops += 2 * m * kd_pad * cout_p
        bytes_accessed += xd.size * 2 + wd.size * 2 + bd.size * 4

    return pl.pallas_call(
        functools.partial(_conv_mm_kernel, act=act, mode=mode),
        out_shape=jax.ShapeDtypeStruct((m, cout_p), jnp.bfloat16),
        grid_spec=pltpu.PrefetchScalarGridSpec(
            num_scalar_prefetch=0,
            grid=grid,
            in_specs=in_specs,
            out_specs=pl.BlockSpec((tm, tn), lambda i, j: (i, j)),
        ),
        compiler_params=pltpu.CompilerParams(
            dimension_semantics=("parallel", "parallel"),
            vmem_limit_bytes=32 * 1024 * 1024,      # conservative: fits v7x scoped default
        ),
        cost_estimate=pl.CostEstimate(flops=flops, transcendentals=0,
                                      bytes_accessed=bytes_accessed),
    )(*inputs)


# ------------------------------- im2col + weight prep (wrapper side) -------------------------------

def _im2col(x, cin, kh, kw, stride, pad):
    """NHWC x (real channels in the first cin lanes) -> [N*Ho*Wo, K_pad] bf16 patches,
    with K = kh*kw*cin (REAL cin, taps folded into the contraction dim) zero-padded to 128k."""
    n, h, w_in, _ = x.shape
    ho = (h + 2 * pad - kh) // stride + 1
    wo = (w_in + 2 * pad - kw) // stride + 1
    xr = x[..., :cin]
    xp = jnp.pad(xr, ((0, 0), (pad, pad), (pad, pad), (0, 0))) if pad else xr
    cols = []
    for i in range(kh):
        for j in range(kw):
            cols.append(lax.slice(
                xp, (0, i, j, 0),
                (n, i + stride * (ho - 1) + 1, j + stride * (wo - 1) + 1, cin),
                (1, stride, stride, 1)))
    patches = cols[0] if len(cols) == 1 else jnp.concatenate(cols, axis=-1)
    k = kh * kw * cin
    k_pad = _pad_lane(k)
    if k_pad != k:
        patches = jnp.pad(patches, ((0, 0), (0, 0), (0, 0), (0, k_pad - k)))
    return patches.reshape(n * ho * wo, k_pad).astype(jnp.bfloat16), ho, wo


def _prep_conv_weights(conv_w, bn):
    """Fold eval-mode BN; return ([K_pad, Cout_pad] bf16 weight matrix, [1, Cout_pad] f32 bias).
    Row order (i, j, cin) matches the _im2col channel concatenation order."""
    cout, cin, kh, kw = conv_w.shape
    cout_pad = _pad_lane(cout)
    k = kh * kw * cin
    k_pad = _pad_lane(k)
    wf, bias = _fold_bn(conv_w, bn)
    wm = wf.transpose(2, 3, 1, 0).reshape(k, cout)                       # [(i,j,ci), cout]
    wm = jnp.pad(wm, ((0, k_pad - k), (0, cout_pad - cout))).astype(jnp.bfloat16)
    bias = jnp.pad(bias, (0, cout_pad - cout)).reshape(1, cout_pad)
    return wm, bias


def conv_bn_act(x, conv_w, bn, *, stride, pad, act, residual=None, down=None):
    """Conv (bias-free) + folded eval-mode BN + activation, with either a fused identity
    residual add or a fused 1x1 downsample branch (down=(x_in, down_w, bn_d, stride_d))."""
    n = x.shape[0]
    cout, cin, kh, kw = conv_w.shape
    cout_pad = _pad_lane(cout)

    patches, ho, wo = _im2col(x, cin, kh, kw, stride, pad)
    wm, bias = _prep_conv_weights(conv_w, bn)
    m = n * ho * wo

    res = None if residual is None else residual.reshape(m, residual.shape[-1])
    dn = None
    if down is not None:
        x_in, down_w, bn_d, stride_d = down
        xd, _, _ = _im2col(x_in, down_w.shape[1], 1, 1, stride_d, 0)     # same (Ho, Wo) grid
        wd, bd = _prep_conv_weights(down_w, bn_d)
        dn = (xd, wd, bd)

    out = conv_matmul(patches, wm, bias, act=act, residual=res, down=dn)  # [M, Cout_pad]
    return out.reshape(n, ho, wo, cout_pad)                               # NHWC, no transpose


# ------------------------------- maxpool kernel -------------------------------

def _maxpool_kernel(x_ref, o_ref):
    # x_ref: (9, tm, C_pad) -> running max over the 9 taps, lane-dense output (tm, C_pad)
    o_ref[...] = jnp.max(x_ref[...], axis=0)


def maxpool_3x3_s2_p1(x):
    n, h, w, c = x.shape
    ho = (h + 2 - 3) // 2 + 1
    wo = (w + 2 - 3) // 2 + 1
    xp = jnp.pad(x, ((0, 0), (1, 1), (1, 1), (0, 0)), constant_values=-jnp.inf)
    views = []
    for i in range(3):
        for j in range(3):
            views.append(lax.slice(
                xp, (0, i, j, 0),
                (n, i + 2 * (ho - 1) + 1, j + 2 * (wo - 1) + 1, c),
                (1, 2, 2, 1)))
    stacked = jnp.stack(views, axis=0).reshape(9, n * ho * wo, c)

    m = n * ho * wo
    tm = _row_tile(m)
    out = pl.pallas_call(
        _maxpool_kernel,
        out_shape=jax.ShapeDtypeStruct((m, c), x.dtype),
        grid_spec=pltpu.PrefetchScalarGridSpec(
            num_scalar_prefetch=0,
            grid=(m // tm,),
            in_specs=[pl.BlockSpec((9, tm, c), lambda i: (0, i, 0))],
            out_specs=pl.BlockSpec((tm, c), lambda i: (i, 0)),
        ),
        compiler_params=pltpu.CompilerParams(dimension_semantics=("parallel",)),
    )(stacked)
    return out.reshape(n, ho, wo, c)


# ------------------------------- head kernel -------------------------------

def _head_kernel(x_ref, w1_ref, w2_ref, o_ref):
    # Global average pool + Linear(no bias) -> LeakyReLU -> Linear(no bias), f32 math.
    # fc1 output is padded to 128 lanes (lane-dense MXU dot); the final 1-wide projection is a
    # VPU multiply + lane reduction instead of a lane-degenerate MXU dot.
    feat = jnp.mean(x_ref[...].astype(jnp.float32), axis=1)                   # [N, C_pad]
    hdn = jnp.dot(feat, w1_ref[...], preferred_element_type=jnp.float32)      # [N, 128]
    hdn = jnp.where(hdn > 0, hdn, NEG_SLOPE * hdn)                            # LeakyReLU
    o_ref[...] = jnp.sum(hdn * w2_ref[...], axis=-1, keepdims=True)           # [N, 1]


def head(x, w1, w2):
    # x: [N, H, W, C_pad] NHWC -> [N, H*W, C_pad] is a pure reshape (no transpose).
    n, h, w, c_pad = x.shape
    c, hid = w1.shape
    hid_pad = _pad_lane(hid)
    w1p = jnp.pad(w1, ((0, c_pad - c), (0, hid_pad - hid)))   # zero rows/cols for padding
    w2p = jnp.pad(w2[:, 0], (0, hid_pad - hid)).reshape(1, hid_pad)
    out = pl.pallas_call(
        _head_kernel,
        out_shape=jax.ShapeDtypeStruct((n, 1), jnp.float32),
        in_specs=[_VMEM, _VMEM, _VMEM],
        out_specs=_VMEM,
    )(x.reshape(n, h * w, c_pad), w1p, w2p)
    return out.reshape(-1)   # matches .view(-1) in PlateClassification.forward


# ------------------------------- model forward -------------------------------

def basic_block(x, p, stride):
    out1 = conv_bn_act(x, p["conv1_w"], p["bn1"], stride=stride, pad=1, act="relu")
    if "down_w" in p:
        # second conv with fused BN + fused 1x1-downsample residual branch + ReLU
        return conv_bn_act(out1, p["conv2_w"], p["bn2"], stride=1, pad=1, act="relu",
                           down=(x, p["down_w"], p["bn_d"], stride))
    # second conv with fused BN + identity residual add + ReLU
    return conv_bn_act(out1, p["conv2_w"], p["bn2"], stride=1, pad=1, act="relu",
                       residual=x)


def plate_classification_forward(params, image_batch_nchw):
    x = image_batch_nchw.transpose(0, 2, 3, 1).astype(jnp.bfloat16)   # NCHW -> NHWC (once)
    x = conv_bn_act(x, params["conv1_w"], params["bn1"], stride=2, pad=3, act="relu")
    x = maxpool_3x3_s2_p1(x)
    for li, blocks in enumerate(params["layers"]):
        for bi, p in enumerate(blocks):
            stride = 2 if (li > 0 and bi == 0) else 1
            x = basic_block(x, p, stride)
    # adaptive avg pool (1,1) + fc head fused in one Pallas kernel; .view(-1) inside head()
    return head(x, params["fc1_w"], params["fc2_w"])


# ------------------------------- deterministic parameter init -------------------------------

def _init_bn(key, c):
    k1, k2, k3, k4 = jax.random.split(key, 4)
    gamma = 1.0 + 0.1 * jax.random.normal(k1, (c,), jnp.float32)
    beta = 0.1 * jax.random.normal(k2, (c,), jnp.float32)
    mean = 0.1 * jax.random.normal(k3, (c,), jnp.float32)
    var = 1.0 + 0.1 * jnp.abs(jax.random.normal(k4, (c,), jnp.float32))
    return (gamma, beta, mean, var)


def _init_conv(key, cout, cin, k):
    fan_in = cin * k * k
    return jax.random.normal(key, (cout, cin, k, k), jnp.float32) * (2.0 / fan_in) ** 0.5


def init_params(key, base=8):
    keys = iter(jax.random.split(key, 80))
    params = {
        "conv1_w": _init_conv(next(keys), base, 3, 7),
        "bn1": _init_bn(next(keys), base),
    }
    widths = [base, base * 2, base * 4, base * 8]
    strides = [1, 2, 2, 2]
    in_c = base
    layers = []
    for w_out, s in zip(widths, strides):
        blocks = []
        for b in range(2):   # resnet18: two BasicBlocks per layer
            stride = s if b == 0 else 1
            p = {
                "conv1_w": _init_conv(next(keys), w_out, in_c, 3),
                "bn1": _init_bn(next(keys), w_out),
                "conv2_w": _init_conv(next(keys), w_out, w_out, 3),
                "bn2": _init_bn(next(keys), w_out),
            }
            if stride != 1 or in_c != w_out:
                p["down_w"] = _init_conv(next(keys), w_out, in_c, 1)
                p["bn_d"] = _init_bn(next(keys), w_out)
            blocks.append(p)
            in_c = w_out
        layers.append(blocks)
    params["layers"] = layers
    feat = widths[-1]
    # ResNetAdapter head: Linear(feat, feat//2, bias=False) -> LeakyReLU -> Linear(feat//2, 1, bias=False)
    # stored as [in, out] (already transposed vs. PyTorch's [out, in]).
    params["fc1_w"] = jax.random.normal(next(keys), (feat, feat // 2), jnp.float32) * (1.0 / feat) ** 0.5
    params["fc2_w"] = jax.random.normal(next(keys), (feat // 2, 1), jnp.float32) * (1.0 / (feat // 2)) ** 0.5
    return params


# ------------------------------- driver -------------------------------

if __name__ == "__main__":
    key = jax.random.PRNGKey(0)
    pkey, xkey = jax.random.split(key)
    params = init_params(pkey, base=8)
    image_batch = jax.random.normal(xkey, (2, 3, 32, 32), dtype=jnp.float32)   # NCHW

    fwd = jax.jit(plate_classification_forward)
    logits = jax.block_until_ready(fwd(params, image_batch))
    assert logits.shape == (2,) and logits.dtype == jnp.float32

    # pos_prob / predict_class equivalents (plain-JAX glue, not part of forward()):
    probs = jax.nn.sigmoid(logits)
    preds = (probs > 0.5).astype(jnp.int32)
    jax.block_until_ready((probs, preds))

    print("KERNEL_OK")
</pallas_src>

<mosaic_0001>
module attributes {stable_mosaic.version = 11 : i64} {
  func.func @_conv_mm_kernel(%arg0: i32, %arg1: i32, %arg2: memref<256x256xbf16, #tpu.memory_space<vmem>>, %arg3: memref<256x128xbf16, #tpu.memory_space<vmem>>, %arg4: memref<1x128xf32, #tpu.memory_space<vmem>>, %arg5: memref<256x128xbf16, #tpu.memory_space<vmem>>) attributes {dimension_semantics = [#tpu.dimension_semantics<parallel>, #tpu.dimension_semantics<parallel>], iteration_bounds = array<i64: 2, 1>, scalar_prefetch = 0 : i64, scratch_operands = 0 : i64, tpu.core_type = #tpu.core_type<tc>, window_params = [{transform_indices = @transform_0, window_bounds = array<i64: 256, 256>}, {transform_indices = @transform_1, window_bounds = array<i64: 256, 128>}, {transform_indices = @transform_2, window_bounds = array<i64: 1, 128>}, {transform_indices = @transform_3, window_bounds = array<i64: 256, 128>}]} {
    %c0 = arith.constant 0 : index
    %c0_0 = arith.constant 0 : index
    %0 = vector.load %arg2[%c0, %c0_0] : memref<256x256xbf16, #tpu.memory_space<vmem>>, vector<256x256xbf16>
    %c0_1 = arith.constant 0 : index
    %c0_2 = arith.constant 0 : index
    %1 = vector.load %arg3[%c0_1, %c0_2] : memref<256x128xbf16, #tpu.memory_space<vmem>>, vector<256x128xbf16>
    %cst = arith.constant dense<0.000000e+00> : vector<256x128xf32>
    %2 = tpu.matmul %0, %1, %cst {dimension_numbers = #tpu.dot_dimension_numbers<[1], [0], [0], [1], [0, 0, 1, 1], [], []>} : vector<256x256xbf16>, vector<256x128xbf16>, vector<256x128xf32> -> vector<256x128xf32>
    %c0_3 = arith.constant 0 : index
    %c0_4 = arith.constant 0 : index
    %3 = vector.load %arg4[%c0_3, %c0_4] : memref<1x128xf32, #tpu.memory_space<vmem>>, vector<1x128xf32>
    %4 = vector.broadcast %3 : vector<1x128xf32> to vector<256x128xf32>
    %5 = arith.addf %2, %4 : vector<256x128xf32>
    %cst_5 = arith.constant 0.000000e+00 : f32
    %6 = vector.broadcast %cst_5 : f32 to vector<256x128xf32>
    %7 = arith.maximumf %5, %6 : vector<256x128xf32>
    %8 = arith.truncf %7 : vector<256x128xf32> to vector<256x128xbf16>
    %c0_6 = arith.constant 0 : index
    %c0_7 = arith.constant 0 : index
    %9 = vector.load %arg5[%c0_6, %c0_7] : memref<256x128xbf16, #tpu.memory_space<vmem>>, vector<256x128xbf16>
    tpu.vector_store %arg5[%c0_6, %c0_7], %8 {strides = array<i32>} : memref<256x128xbf16, #tpu.memory_space<vmem>>, vector<256x128xbf16>,
    return
  }
  func.func @transform_0(%arg0: i32, %arg1: i32) -> (i32, i32) {
    %c0_i32 = arith.constant 0 : i32
    %c0_i32_0 = arith.constant 0 : i32
    return %arg0, %c0_i32 : i32, i32
  }
  func.func @transform_1(%arg0: i32, %arg1: i32) -> (i32, i32) {
    %c0_i32 = arith.constant 0 : i32
    %c0_i32_0 = arith.constant 0 : i32
    return %c0_i32, %arg1 : i32, i32
  }
  func.func @transform_2(%arg0: i32, %arg1: i32) -> (i32, i32) {
    %c0_i32 = arith.constant 0 : i32
    %c0_i32_0 = arith.constant 0 : i32
    return %c0_i32, %arg1 : i32, i32
  }
  func.func @transform_3(%arg0: i32, %arg1: i32) -> (i32, i32) {
    %c0_i32 = arith.constant 0 : i32
    return %arg0, %arg1 : i32, i32
  }
}

module attributes {stable_mosaic.version = 11 : i64} {
  func.func @_maxpool_kernel(%arg0: i32, %arg1: memref<9x64x128xbf16, #tpu.memory_space<vmem>>, %arg2: memref<64x128xbf16, #tpu.memory_space<vmem>>) attributes {dimension_semantics = [#tpu.dimension_semantics<parallel>], iteration_bounds = array<i64: 2>, scalar_prefetch = 0 : i64, scratch_operands = 0 : i64, tpu.core_type = #tpu.core_type<tc>, window_params = [{transform_indices = @transform_0, window_bounds = array<i64: 9, 64, 128>}, {transform_indices = @transform_1, window_bounds = array<i64: 64, 128>}]} {
    %c0 = arith.constant 0 : index
    %c0_0 = arith.constant 0 : index
    %c0_1 = arith.constant 0 : index
    %0 = vector.load %arg1[%c0, %c0_0, %c0_1] : memref<9x64x128xbf16, #tpu.memory_space<vmem>>, vector<9x64x128xbf16>
    %cst = arith.constant dense<0xFF80> : vector<64x128xbf16>
    %1 = vector.multi_reduction <maximumf>, %0, %cst [0] : vector<9x64x128xbf16> to vector<64x128xbf16>
    %c0_2 = arith.constant 0 : index
    %c0_3 = arith.constant 0 : index
    %2 = vector.load %arg2[%c0_2, %c0_3] : memref<64x128xbf16, #tpu.memory_space<vmem>>, vector<64x128xbf16>
    tpu.vector_store %arg2[%c0_2, %c0_3], %1 {strides = array<i32>} : memref<64x128xbf16, #tpu.memory_space<vmem>>, vector<64x128xbf16>,
    return
  }
  func.func @transform_0(%arg0: i32) -> (i32, i32, i32) {
    %c0_i32 = arith.constant 0 : i32
    %c0_i32_0 = arith.constant 0 : i32
    %c0_i32_1 = arith.constant 0 : i32
    return %c0_i32, %arg0, %c0_i32_0 : i32, i32, i32
  }
  func.func @transform_1(%arg0: i32) -> (i32, i32) {
    %c0_i32 = arith.constant 0 : i32
    %c0_i32_0 = arith.constant 0 : i32
    return %arg0, %c0_i32 : i32, i32
  }
}

module attributes {stable_mosaic.version = 11 : i64} {
  func.func @_conv_mm_kernel(%arg0: i32, %arg1: i32, %arg2: memref<64x128xbf16, #tpu.memory_space<vmem>>, %arg3: memref<128x128xbf16, #tpu.memory_space<vmem>>, %arg4: memref<1x128xf32, #tpu.memory_space<vmem>>, %arg5: memref<64x128xbf16, #tpu.memory_space<vmem>>) attributes {dimension_semantics = [#tpu.dimension_semantics<parallel>, #tpu.dimension_semantics<parallel>], iteration_bounds = array<i64: 2, 1>, scalar_prefetch = 0 : i64, scratch_operands = 0 : i64, tpu.core_type = #tpu.core_type<tc>, window_params = [{transform_indices = @transform_0, window_bounds = array<i64: 64, 128>}, {transform_indices = @transform_1, window_bounds = array<i64: 128, 128>}, {transform_indices = @transform_2, window_bounds = array<i64: 1, 128>}, {transform_indices = @transform_3, window_bounds = array<i64: 64, 128>}]} {
    %c0 = arith.constant 0 : index
    %c0_0 = arith.constant 0 : index
    %0 = vector.load %arg2[%c0, %c0_0] : memref<64x128xbf16, #tpu.memory_space<vmem>>, vector<64x128xbf16>
    %c0_1 = arith.constant 0 : index
    %c0_2 = arith.constant 0 : index
    %1 = vector.load %arg3[%c0_1, %c0_2] : memref<128x128xbf16, #tpu.memory_space<vmem>>, vector<128x128xbf16>
    %cst = arith.constant dense<0.000000e+00> : vector<64x128xf32>
    %2 = tpu.matmul %0, %1, %cst {dimension_numbers = #tpu.dot_dimension_numbers<[1], [0], [0], [1], [0, 0, 1, 1], [], []>} : vector<64x128xbf16>, vector<128x128xbf16>, vector<64x128xf32> -> vector<64x128xf32>
    %c0_3 = arith.constant 0 : index
    %c0_4 = arith.constant 0 : index
    %3 = vector.load %arg4[%c0_3, %c0_4] : memref<1x128xf32, #tpu.memory_space<vmem>>, vector<1x128xf32>
    %4 = vector.broadcast %3 : vector<1x128xf32> to vector<64x128xf32>
    %5 = arith.addf %2, %4 : vector<64x128xf32>
    %cst_5 = arith.constant 0.000000e+00 : f32
    %6 = vector.broadcast %cst_5 : f32 to vector<64x128xf32>
    %7 = arith.maximumf %5, %6 : vector<64x128xf32>
    %8 = arith.truncf %7 : vector<64x128xf32> to vector<64x128xbf16>
    %c0_6 = arith.constant 0 : index
    %c0_7 = arith.constant 0 : index
    %9 = vector.load %arg5[%c0_6, %c0_7] : memref<64x128xbf16, #tpu.memory_space<vmem>>, vector<64x128xbf16>
    tpu.vector_store %arg5[%c0_6, %c0_7], %8 {strides = array<i32>} : memref<64x128xbf16, #tpu.memory_space<vmem>>, vector<64x128xbf16>,
    return
  }
  func.func @transform_0(%arg0: i32, %arg1: i32) -> (i32, i32) {
    %c0_i32 = arith.constant 0 : i32
    %c0_i32_0 = arith.constant 0 : i32
    return %arg0, %c0_i32 : i32, i32
  }
  func.func @transform_1(%arg0: i32, %arg1: i32) -> (i32, i32) {
    %c0_i32 = arith.constant 0 : i32
    %c0_i32_0 = arith.constant 0 : i32
    return %c0_i32, %arg1 : i32, i32
  }
  func.func @transform_2(%arg0: i32, %arg1: i32) -> (i32, i32) {
    %c0_i32 = arith.constant 0 : i32
    %c0_i32_0 = arith.constant 0 : i32
    return %c0_i32, %arg1 : i32, i32
  }
  func.func @transform_3(%arg0: i32, %arg1: i32) -> (i32, i32) {
    %c0_i32 = arith.constant 0 : i32
    return %arg0, %arg1 : i32, i32
  }
}

module attributes {stable_mosaic.version = 11 : i64} {
  func.func @_conv_mm_kernel(%arg0: i32, %arg1: i32, %arg2: memref<64x128xbf16, #tpu.memory_space<vmem>>, %arg3: memref<128x128xbf16, #tpu.memory_space<vmem>>, %arg4: memref<1x128xf32, #tpu.memory_space<vmem>>, %arg5: memref<64x128xbf16, #tpu.memory_space<vmem>>, %arg6: memref<64x128xbf16, #tpu.memory_space<vmem>>) attributes {dimension_semantics = [#tpu.dimension_semantics<parallel>, #tpu.dimension_semantics<parallel>], iteration_bounds = array<i64: 2, 1>, scalar_prefetch = 0 : i64, scratch_operands = 0 : i64, tpu.core_type = #tpu.core_type<tc>, window_params = [{transform_indices = @transform_0, window_bounds = array<i64: 64, 128>}, {transform_indices = @transform_1, window_bounds = array<i64: 128, 128>}, {transform_indices = @transform_2, window_bounds = array<i64: 1, 128>}, {transform_indices = @transform_3, window_bounds = array<i64: 64, 128>}, {transform_indices = @transform_4, window_bounds = array<i64: 64, 128>}]} {
    %c0 = arith.constant 0 : index
    %c0_0 = arith.constant 0 : index
    %0 = vector.load %arg2[%c0, %c0_0] : memref<64x128xbf16, #tpu.memory_space<vmem>>, vector<64x128xbf16>
    %c0_1 = arith.constant 0 : index
    %c0_2 = arith.constant 0 : index
    %1 = vector.load %arg3[%c0_1, %c0_2] : memref<128x128xbf16, #tpu.memory_space<vmem>>, vector<128x128xbf16>
    %cst = arith.constant dense<0.000000e+00> : vector<64x128xf32>
    %2 = tpu.matmul %0, %1, %cst {dimension_numbers = #tpu.dot_dimension_numbers<[1], [0], [0], [1], [0, 0, 1, 1], [], []>} : vector<64x128xbf16>, vector<128x128xbf16>, vector<64x128xf32> -> vector<64x128xf32>
    %c0_3 = arith.constant 0 : index
    %c0_4 = arith.constant 0 : index
    %3 = vector.load %arg4[%c0_3, %c0_4] : memref<1x128xf32, #tpu.memory_space<vmem>>, vector<1x128xf32>
    %4 = vector.broadcast %3 : vector<1x128xf32> to vector<64x128xf32>
    %5 = arith.addf %2, %4 : vector<64x128xf32>
    %c0_5 = arith.constant 0 : index
    %c0_6 = arith.constant 0 : index
    %6 = vector.load %arg5[%c0_5, %c0_6] : memref<64x128xbf16, #tpu.memory_space<vmem>>, vector<64x128xbf16>
    %7 = arith.extf %6 : vector<64x128xbf16> to vector<64x128xf32>
    %8 = arith.addf %5, %7 : vector<64x128xf32>
    %cst_7 = arith.constant 0.000000e+00 : f32
    %9 = vector.broadcast %cst_7 : f32 to vector<64x128xf32>
    %10 = arith.maximumf %8, %9 : vector<64x128xf32>
    %11 = arith.truncf %10 : vector<64x128xf32> to vector<64x128xbf16>
    %c0_8 = arith.constant 0 : index
    %c0_9 = arith.constant 0 : index
    %12 = vector.load %arg6[%c0_8, %c0_9] : memref<64x128xbf16, #tpu.memory_space<vmem>>, vector<64x128xbf16>
    tpu.vector_store %arg6[%c0_8, %c0_9], %11 {strides = array<i32>} : memref<64x128xbf16, #tpu.memory_space<vmem>>, vector<64x128xbf16>,
    return
  }
  func.func @transform_0(%arg0: i32, %arg1: i32) -> (i32, i32) {
    %c0_i32 = arith.constant 0 : i32
    %c0_i32_0 = arith.constant 0 : i32
    return %arg0, %c0_i32 : i32, i32
  }
  func.func @transform_1(%arg0: i32, %arg1: i32) -> (i32, i32) {
    %c0_i32 = arith.constant 0 : i32
    %c0_i32_0 = arith.constant 0 : i32
    return %c0_i32, %arg1 : i32, i32
  }
  func.func @transform_2(%arg0: i32, %arg1: i32) -> (i32, i32) {
    %c0_i32 = arith.constant 0 : i32
    %c0_i32_0 = arith.constant 0 : i32
    return %c0_i32, %arg1 : i32, i32
  }
  func.func @transform_3(%arg0: i32, %arg1: i32) -> (i32, i32) {
    %c0_i32 = arith.constant 0 : i32
    return %arg0, %arg1 : i32, i32
  }
  func.func @transform_4(%arg0: i32, %arg1: i32) -> (i32, i32) {
    %c0_i32 = arith.constant 0 : i32
    return %arg0, %arg1 : i32, i32
  }
}

module attributes {stable_mosaic.version = 11 : i64} {
  func.func @_conv_mm_kernel(%arg0: i32, %arg1: i32, %arg2: memref<32x128xbf16, #tpu.memory_space<vmem>>, %arg3: memref<128x128xbf16, #tpu.memory_space<vmem>>, %arg4: memref<1x128xf32, #tpu.memory_space<vmem>>, %arg5: memref<32x128xbf16, #tpu.memory_space<vmem>>) attributes {dimension_semantics = [#tpu.dimension_semantics<parallel>, #tpu.dimension_semantics<parallel>], iteration_bounds = array<i64: 1, 1>, scalar_prefetch = 0 : i64, scratch_operands = 0 : i64, tpu.core_type = #tpu.core_type<tc>, window_params = [{transform_indices = @transform_0, window_bounds = array<i64: 32, 128>}, {transform_indices = @transform_1, window_bounds = array<i64: 128, 128>}, {transform_indices = @transform_2, window_bounds = array<i64: 1, 128>}, {transform_indices = @transform_3, window_bounds = array<i64: 32, 128>}]} {
    %c0 = arith.constant 0 : index
    %c0_0 = arith.constant 0 : index
    %0 = vector.load %arg2[%c0, %c0_0] : memref<32x128xbf16, #tpu.memory_space<vmem>>, vector<32x128xbf16>
    %c0_1 = arith.constant 0 : index
    %c0_2 = arith.constant 0 : index
    %1 = vector.load %arg3[%c0_1, %c0_2] : memref<128x128xbf16, #tpu.memory_space<vmem>>, vector<128x128xbf16>
    %cst = arith.constant dense<0.000000e+00> : vector<32x128xf32>
    %2 = tpu.matmul %0, %1, %cst {dimension_numbers = #tpu.dot_dimension_numbers<[1], [0], [0], [1], [0, 0, 1, 1], [], []>} : vector<32x128xbf16>, vector<128x128xbf16>, vector<32x128xf32> -> vector<32x128xf32>
    %c0_3 = arith.constant 0 : index
    %c0_4 = arith.constant 0 : index
    %3 = vector.load %arg4[%c0_3, %c0_4] : memref<1x128xf32, #tpu.memory_space<vmem>>, vector<1x128xf32>
    %4 = vector.broadcast %3 : vector<1x128xf32> to vector<32x128xf32>
    %5 = arith.addf %2, %4 : vector<32x128xf32>
    %cst_5 = arith.constant 0.000000e+00 : f32
    %6 = vector.broadcast %cst_5 : f32 to vector<32x128xf32>
    %7 = arith.maximumf %5, %6 : vector<32x128xf32>
    %8 = arith.truncf %7 : vector<32x128xf32> to vector<32x128xbf16>
    %c0_6 = arith.constant 0 : index
    %c0_7 = arith.constant 0 : index
    %9 = vector.load %arg5[%c0_6, %c0_7] : memref<32x128xbf16, #tpu.memory_space<vmem>>, vector<32x128xbf16>
    tpu.vector_store %arg5[%c0_6, %c0_7], %8 {strides = array<i32>} : memref<32x128xbf16, #tpu.memory_space<vmem>>, vector<32x128xbf16>,
    return
  }
  func.func @transform_0(%arg0: i32, %arg1: i32) -> (i32, i32) {
    %c0_i32 = arith.constant 0 : i32
    %c0_i32_0 = arith.constant 0 : i32
    return %arg0, %c0_i32 : i32, i32
  }
  func.func @transform_1(%arg0: i32, %arg1: i32) -> (i32, i32) {
    %c0_i32 = arith.constant 0 : i32
    %c0_i32_0 = arith.constant 0 : i32
    return %c0_i32, %arg1 : i32, i32
  }
  func.func @transform_2(%arg0: i32, %arg1: i32) -> (i32, i32) {
    %c0_i32 = arith.constant 0 : i32
    %c0_i32_0 = arith.constant 0 : i32
    return %c0_i32, %arg1 : i32, i32
  }
  func.func @transform_3(%arg0: i32, %arg1: i32) -> (i32, i32) {
    %c0_i32 = arith.constant 0 : i32
    return %arg0, %arg1 : i32, i32
  }
}

module attributes {stable_mosaic.version = 11 : i64} {
  func.func @_conv_mm_kernel(%arg0: i32, %arg1: i32, %arg2: memref<32x256xbf16, #tpu.memory_space<vmem>>, %arg3: memref<256x128xbf16, #tpu.memory_space<vmem>>, %arg4: memref<1x128xf32, #tpu.memory_space<vmem>>, %arg5: memref<32x128xbf16, #tpu.memory_space<vmem>>, %arg6: memref<128x128xbf16, #tpu.memory_space<vmem>>, %arg7: memref<1x128xf32, #tpu.memory_space<vmem>>, %arg8: memref<32x128xbf16, #tpu.memory_space<vmem>>) attributes {dimension_semantics = [#tpu.dimension_semantics<parallel>, #tpu.dimension_semantics<parallel>], iteration_bounds = array<i64: 1, 1>, scalar_prefetch = 0 : i64, scratch_operands = 0 : i64, tpu.core_type = #tpu.core_type<tc>, window_params = [{transform_indices = @transform_0, window_bounds = array<i64: 32, 256>}, {transform_indices = @transform_1, window_bounds = array<i64: 256, 128>}, {transform_indices = @transform_2, window_bounds = array<i64: 1, 128>}, {transform_indices = @transform_3, window_bounds = array<i64: 32, 128>}, {transform_indices = @transform_4, window_bounds = array<i64: 128, 128>}, {transform_indices = @transform_5, window_bounds = array<i64: 1, 128>}, {transform_indices = @transform_6, window_bounds = array<i64: 32, 128>}]} {
    %c0 = arith.constant 0 : index
    %c0_0 = arith.constant 0 : index
    %0 = vector.load %arg2[%c0, %c0_0] : memref<32x256xbf16, #tpu.memory_space<vmem>>, vector<32x256xbf16>
    %c0_1 = arith.constant 0 : index
    %c0_2 = arith.constant 0 : index
    %1 = vector.load %arg3[%c0_1, %c0_2] : memref<256x128xbf16, #tpu.memory_space<vmem>>, vector<256x128xbf16>
    %cst = arith.constant dense<0.000000e+00> : vector<32x128xf32>
    %2 = tpu.matmul %0, %1, %cst {dimension_numbers = #tpu.dot_dimension_numbers<[1], [0], [0], [1], [0, 0, 1, 1], [], []>} : vector<32x256xbf16>, vector<256x128xbf16>, vector<32x128xf32> -> vector<32x128xf32>
    %c0_3 = arith.constant 0 : index
    %c0_4 = arith.constant 0 : index
    %3 = vector.load %arg4[%c0_3, %c0_4] : memref<1x128xf32, #tpu.memory_space<vmem>>, vector<1x128xf32>
    %4 = vector.broadcast %3 : vector<1x128xf32> to vector<32x128xf32>
    %5 = arith.addf %2, %4 : vector<32x128xf32>
    %c0_5 = arith.constant 0 : index
    %c0_6 = arith.constant 0 : index
    %6 = vector.load %arg5[%c0_5, %c0_6] : memref<32x128xbf16, #tpu.memory_space<vmem>>, vector<32x128xbf16>
    %c0_7 = arith.constant 0 : index
    %c0_8 = arith.constant 0 : index
    %7 = vector.load %arg6[%c0_7, %c0_8] : memref<128x128xbf16, #tpu.memory_space<vmem>>, vector<128x128xbf16>
    %cst_9 = arith.constant dense<0.000000e+00> : vector<32x128xf32>
    %8 = tpu.matmul %6, %7, %cst_9 {dimension_numbers = #tpu.dot_dimension_numbers<[1], [0], [0], [1], [0, 0, 1, 1], [], []>} : vector<32x128xbf16>, vector<128x128xbf16>, vector<32x128xf32> -> vector<32x128xf32>
    %c0_10 = arith.constant 0 : index
    %c0_11 = arith.constant 0 : index
    %9 = vector.load %arg7[%c0_10, %c0_11] : memref<1x128xf32, #tpu.memory_space<vmem>>, vector<1x128xf32>
    %10 = vector.broadcast %9 : vector<1x128xf32> to vector<32x128xf32>
    %11 = arith.addf %8, %10 : vector<32x128xf32>
    %12 = arith.addf %5, %11 : vector<32x128xf32>
    %cst_12 = arith.constant 0.000000e+00 : f32
    %13 = vector.broadcast %cst_12 : f32 to vector<32x128xf32>
    %14 = arith.maximumf %12, %13 : vector<32x128xf32>
    %15 = arith.truncf %14 : vector<32x128xf32> to vector<32x128xbf16>
    %c0_13 = arith.constant 0 : index
    %c0_14 = arith.constant 0 : index
    %16 = vector.load %arg8[%c0_13, %c0_14] : memref<32x128xbf16, #tpu.memory_space<vmem>>, vector<32x128xbf16>
    tpu.vector_store %arg8[%c0_13, %c0_14], %15 {strides = array<i32>} : memref<32x128xbf16, #tpu.memory_space<vmem>>, vector<32x128xbf16>,
    return
  }
  func.func @transform_0(%arg0: i32, %arg1: i32) -> (i32, i32) {
    %c0_i32 = arith.constant 0 : i32
    %c0_i32_0 = arith.constant 0 : i32
    return %arg0, %c0_i32 : i32, i32
  }
  func.func @transform_1(%arg0: i32, %arg1: i32) -> (i32, i32) {
    %c0_i32 = arith.constant 0 : i32
    %c0_i32_0 = arith.constant 0 : i32
    return %c0_i32, %arg1 : i32, i32
  }
  func.func @transform_2(%arg0: i32, %arg1: i32) -> (i32, i32) {
    %c0_i32 = arith.constant 0 : i32
    %c0_i32_0 = arith.constant 0 : i32
    return %c0_i32, %arg1 : i32, i32
  }
  func.func @transform_3(%arg0: i32, %arg1: i32) -> (i32, i32) {
    %c0_i32 = arith.constant 0 : i32
    %c0_i32_0 = arith.constant 0 : i32
    return %arg0, %c0_i32 : i32, i32
  }
  func.func @transform_4(%arg0: i32, %arg1: i32) -> (i32, i32) {
    %c0_i32 = arith.constant 0 : i32
    %c0_i32_0 = arith.constant 0 : i32
    return %c0_i32, %arg1 : i32, i32
  }
  func.func @transform_5(%arg0: i32, %arg1: i32) -> (i32, i32) {
    %c0_i32 = arith.constant 0 : i32
    %c0_i32_0 = arith.constant 0 : i32
    return %c0_i32, %arg1 : i32, i32
  }
  func.func @transform_6(%arg0: i32, %arg1: i32) -> (i32, i32) {
    %c0_i32 = arith.constant 0 : i32
    return %arg0, %arg1 : i32, i32
  }
}

module attributes {stable_mosaic.version = 11 : i64} {
  func.func @_conv_mm_kernel(%arg0: i32, %arg1: i32, %arg2: memref<32x256xbf16, #tpu.memory_space<vmem>>, %arg3: memref<256x128xbf16, #tpu.memory_space<vmem>>, %arg4: memref<1x128xf32, #tpu.memory_space<vmem>>, %arg5: memref<32x128xbf16, #tpu.memory_space<vmem>>) attributes {dimension_semantics = [#tpu.dimension_semantics<parallel>, #tpu.dimension_semantics<parallel>], iteration_bounds = array<i64: 1, 1>, scalar_prefetch = 0 : i64, scratch_operands = 0 : i64, tpu.core_type = #tpu.core_type<tc>, window_params = [{transform_indices = @transform_0, window_bounds = array<i64: 32, 256>}, {transform_indices = @transform_1, window_bounds = array<i64: 256, 128>}, {transform_indices = @transform_2, window_bounds = array<i64: 1, 128>}, {transform_indices = @transform_3, window_bounds = array<i64: 32, 128>}]} {
    %c0 = arith.constant 0 : index
    %c0_0 = arith.constant 0 : index
    %0 = vector.load %arg2[%c0, %c0_0] : memref<32x256xbf16, #tpu.memory_space<vmem>>, vector<32x256xbf16>
    %c0_1 = arith.constant 0 : index
    %c0_2 = arith.constant 0 : index
    %1 = vector.load %arg3[%c0_1, %c0_2] : memref<256x128xbf16, #tpu.memory_space<vmem>>, vector<256x128xbf16>
    %cst = arith.constant dense<0.000000e+00> : vector<32x128xf32>
    %2 = tpu.matmul %0, %1, %cst {dimension_numbers = #tpu.dot_dimension_numbers<[1], [0], [0], [1], [0, 0, 1, 1], [], []>} : vector<32x256xbf16>, vector<256x128xbf16>, vector<32x128xf32> -> vector<32x128xf32>
    %c0_3 = arith.constant 0 : index
    %c0_4 = arith.constant 0 : index
    %3 = vector.load %arg4[%c0_3, %c0_4] : memref<1x128xf32, #tpu.memory_space<vmem>>, vector<1x128xf32>
    %4 = vector.broadcast %3 : vector<1x128xf32> to vector<32x128xf32>
    %5 = arith.addf %2, %4 : vector<32x128xf32>
    %cst_5 = arith.constant 0.000000e+00 : f32
    %6 = vector.broadcast %cst_5 : f32 to vector<32x128xf32>
    %7 = arith.maximumf %5, %6 : vector<32x128xf32>
    %8 = arith.truncf %7 : vector<32x128xf32> to vector<32x128xbf16>
    %c0_6 = arith.constant 0 : index
    %c0_7 = arith.constant 0 : index
    %9 = vector.load %arg5[%c0_6, %c0_7] : memref<32x128xbf16, #tpu.memory_space<vmem>>, vector<32x128xbf16>
    tpu.vector_store %arg5[%c0_6, %c0_7], %8 {strides = array<i32>} : memref<32x128xbf16, #tpu.memory_space<vmem>>, vector<32x128xbf16>,
    return
  }
  func.func @transform_0(%arg0: i32, %arg1: i32) -> (i32, i32) {
    %c0_i32 = arith.constant 0 : i32
    %c0_i32_0 = arith.constant 0 : i32
    return %arg0, %c0_i32 : i32, i32
  }
  func.func @transform_1(%arg0: i32, %arg1: i32) -> (i32, i32) {
    %c0_i32 = arith.constant 0 : i32
    %c0_i32_0 = arith.constant 0 : i32
    return %c0_i32, %arg1 : i32, i32
  }
  func.func @transform_2(%arg0: i32, %arg1: i32) -> (i32, i32) {
    %c0_i32 = arith.constant 0 : i32
    %c0_i32_0 = arith.constant 0 : i32
    return %c0_i32, %arg1 : i32, i32
  }
  func.func @transform_3(%arg0: i32, %arg1: i32) -> (i32, i32) {
    %c0_i32 = arith.constant 0 : i32
    return %arg0, %arg1 : i32, i32
  }
}

module attributes {stable_mosaic.version = 11 : i64} {
  func.func @_conv_mm_kernel(%arg0: i32, %arg1: i32, %arg2: memref<32x256xbf16, #tpu.memory_space<vmem>>, %arg3: memref<256x128xbf16, #tpu.memory_space<vmem>>, %arg4: memref<1x128xf32, #tpu.memory_space<vmem>>, %arg5: memref<32x128xbf16, #tpu.memory_space<vmem>>, %arg6: memref<32x128xbf16, #tpu.memory_space<vmem>>) attributes {dimension_semantics = [#tpu.dimension_semantics<parallel>, #tpu.dimension_semantics<parallel>], iteration_bounds = array<i64: 1, 1>, scalar_prefetch = 0 : i64, scratch_operands = 0 : i64, tpu.core_type = #tpu.core_type<tc>, window_params = [{transform_indices = @transform_0, window_bounds = array<i64: 32, 256>}, {transform_indices = @transform_1, window_bounds = array<i64: 256, 128>}, {transform_indices = @transform_2, window_bounds = array<i64: 1, 128>}, {transform_indices = @transform_3, window_bounds = array<i64: 32, 128>}, {transform_indices = @transform_4, window_bounds = array<i64: 32, 128>}]} {
    %c0 = arith.constant 0 : index
    %c0_0 = arith.constant 0 : index
    %0 = vector.load %arg2[%c0, %c0_0] : memref<32x256xbf16, #tpu.memory_space<vmem>>, vector<32x256xbf16>
    %c0_1 = arith.constant 0 : index
    %c0_2 = arith.constant 0 : index
    %1 = vector.load %arg3[%c0_1, %c0_2] : memref<256x128xbf16, #tpu.memory_space<vmem>>, vector<256x128xbf16>
    %cst = arith.constant dense<0.000000e+00> : vector<32x128xf32>
    %2 = tpu.matmul %0, %1, %cst {dimension_numbers = #tpu.dot_dimension_numbers<[1], [0], [0], [1], [0, 0, 1, 1], [], []>} : vector<32x256xbf16>, vector<256x128xbf16>, vector<32x128xf32> -> vector<32x128xf32>
    %c0_3 = arith.constant 0 : index
    %c0_4 = arith.constant 0 : index
    %3 = vector.load %arg4[%c0_3, %c0_4] : memref<1x128xf32, #tpu.memory_space<vmem>>, vector<1x128xf32>
    %4 = vector.broadcast %3 : vector<1x128xf32> to vector<32x128xf32>
    %5 = arith.addf %2, %4 : vector<32x128xf32>
    %c0_5 = arith.constant 0 : index
    %c0_6 = arith.constant 0 : index
    %6 = vector.load %arg5[%c0_5, %c0_6] : memref<32x128xbf16, #tpu.memory_space<vmem>>, vector<32x128xbf16>
    %7 = arith.extf %6 : vector<32x128xbf16> to vector<32x128xf32>
    %8 = arith.addf %5, %7 : vector<32x128xf32>
    %cst_7 = arith.constant 0.000000e+00 : f32
    %9 = vector.broadcast %cst_7 : f32 to vector<32x128xf32>
    %10 = arith.maximumf %8, %9 : vector<32x128xf32>
    %11 = arith.truncf %10 : vector<32x128xf32> to vector<32x128xbf16>
    %c0_8 = arith.constant 0 : index
    %c0_9 = arith.constant 0 : index
    %12 = vector.load %arg6[%c0_8, %c0_9] : memref<32x128xbf16, #tpu.memory_space<vmem>>, vector<32x128xbf16>
    tpu.vector_store %arg6[%c0_8, %c0_9], %11 {strides = array<i32>} : memref<32x128xbf16, #tpu.memory_space<vmem>>, vector<32x128xbf16>,
    return
  }
  func.func @transform_0(%arg0: i32, %arg1: i32) -> (i32, i32) {
    %c0_i32 = arith.constant 0 : i32
    %c0_i32_0 = arith.constant 0 : i32
    return %arg0, %c0_i32 : i32, i32
  }
  func.func @transform_1(%arg0: i32, %arg1: i32) -> (i32, i32) {
    %c0_i32 = arith.constant 0 : i32
    %c0_i32_0 = arith.constant 0 : i32
    return %c0_i32, %arg1 : i32, i32
  }
  func.func @transform_2(%arg0: i32, %arg1: i32) -> (i32, i32) {
    %c0_i32 = arith.constant 0 : i32
    %c0_i32_0 = arith.constant 0 : i32
    return %c0_i32, %arg1 : i32, i32
  }
  func.func @transform_3(%arg0: i32, %arg1: i32) -> (i32, i32) {
    %c0_i32 = arith.constant 0 : i32
    return %arg0, %arg1 : i32, i32
  }
  func.func @transform_4(%arg0: i32, %arg1: i32) -> (i32, i32) {
    %c0_i32 = arith.constant 0 : i32
    return %arg0, %arg1 : i32, i32
  }
}

module attributes {stable_mosaic.version = 11 : i64} {
  func.func @_conv_mm_kernel(%arg0: i32, %arg1: i32, %arg2: memref<8x256xbf16, #tpu.memory_space<vmem>>, %arg3: memref<256x128xbf16, #tpu.memory_space<vmem>>, %arg4: memref<1x128xf32, #tpu.memory_space<vmem>>, %arg5: memref<8x128xbf16, #tpu.memory_space<vmem>>) attributes {dimension_semantics = [#tpu.dimension_semantics<parallel>, #tpu.dimension_semantics<parallel>], iteration_bounds = array<i64: 1, 1>, scalar_prefetch = 0 : i64, scratch_operands = 0 : i64, tpu.core_type = #tpu.core_type<tc>, window_params = [{transform_indices = @transform_0, window_bounds = array<i64: 8, 256>}, {transform_indices = @transform_1, window_bounds = array<i64: 256, 128>}, {transform_indices = @transform_2, window_bounds = array<i64: 1, 128>}, {transform_indices = @transform_3, window_bounds = array<i64: 8, 128>}]} {
    %c0 = arith.constant 0 : index
    %c0_0 = arith.constant 0 : index
    %0 = vector.load %arg2[%c0, %c0_0] : memref<8x256xbf16, #tpu.memory_space<vmem>>, vector<8x256xbf16>
    %c0_1 = arith.constant 0 : index
    %c0_2 = arith.constant 0 : index
    %1 = vector.load %arg3[%c0_1, %c0_2] : memref<256x128xbf16, #tpu.memory_space<vmem>>, vector<256x128xbf16>
    %cst = arith.constant dense<0.000000e+00> : vector<8x128xf32>
    %2 = tpu.matmul %0, %1, %cst {dimension_numbers = #tpu.dot_dimension_numbers<[1], [0], [0], [1], [0, 0, 1, 1], [], []>} : vector<8x256xbf16>, vector<256x128xbf16>, vector<8x128xf32> -> vector<8x128xf32>
    %c0_3 = arith.constant 0 : index
    %c0_4 = arith.constant 0 : index
    %3 = vector.load %arg4[%c0_3, %c0_4] : memref<1x128xf32, #tpu.memory_space<vmem>>, vector<1x128xf32>
    %4 = vector.broadcast %3 : vector<1x128xf32> to vector<8x128xf32>
    %5 = arith.addf %2, %4 : vector<8x128xf32>
    %cst_5 = arith.constant 0.000000e+00 : f32
    %6 = vector.broadcast %cst_5 : f32 to vector<8x128xf32>
    %7 = arith.maximumf %5, %6 : vector<8x128xf32>
    %8 = arith.truncf %7 : vector<8x128xf32> to vector<8x128xbf16>
    %c0_6 = arith.constant 0 : index
    %c0_7 = arith.constant 0 : index
    %9 = vector.load %arg5[%c0_6, %c0_7] : memref<8x128xbf16, #tpu.memory_space<vmem>>, vector<8x128xbf16>
    tpu.vector_store %arg5[%c0_6, %c0_7], %8 {strides = array<i32>} : memref<8x128xbf16, #tpu.memory_space<vmem>>, vector<8x128xbf16>,
    return
  }
  func.func @transform_0(%arg0: i32, %arg1: i32) -> (i32, i32) {
    %c0_i32 = arith.constant 0 : i32
    %c0_i32_0 = arith.constant 0 : i32
    return %arg0, %c0_i32 : i32, i32
  }
  func.func @transform_1(%arg0: i32, %arg1: i32) -> (i32, i32) {
    %c0_i32 = arith.constant 0 : i32
    %c0_i32_0 = arith.constant 0 : i32
    return %c0_i32, %arg1 : i32, i32
  }
  func.func @transform_2(%arg0: i32, %arg1: i32) -> (i32, i32) {
    %c0_i32 = arith.constant 0 : i32
    %c0_i32_0 = arith.constant 0 : i32
    return %c0_i32, %arg1 : i32, i32
  }
  func.func @transform_3(%arg0: i32, %arg1: i32) -> (i32, i32) {
    %c0_i32 = arith.constant 0 : i32
    return %arg0, %arg1 : i32, i32
  }
}

module attributes {stable_mosaic.version = 11 : i64} {
  func.func @_conv_mm_kernel(%arg0: i32, %arg1: i32, %arg2: memref<8x384xbf16, #tpu.memory_space<vmem>>, %arg3: memref<384x128xbf16, #tpu.memory_space<vmem>>, %arg4: memref<1x128xf32, #tpu.memory_space<vmem>>, %arg5: memref<8x128xbf16, #tpu.memory_space<vmem>>, %arg6: memref<128x128xbf16, #tpu.memory_space<vmem>>, %arg7: memref<1x128xf32, #tpu.memory_space<vmem>>, %arg8: memref<8x128xbf16, #tpu.memory_space<vmem>>) attributes {dimension_semantics = [#tpu.dimension_semantics<parallel>, #tpu.dimension_semantics<parallel>], iteration_bounds = array<i64: 1, 1>, scalar_prefetch = 0 : i64, scratch_operands = 0 : i64, tpu.core_type = #tpu.core_type<tc>, window_params = [{transform_indices = @transform_0, window_bounds = array<i64: 8, 384>}, {transform_indices = @transform_1, window_bounds = array<i64: 384, 128>}, {transform_indices = @transform_2, window_bounds = array<i64: 1, 128>}, {transform_indices = @transform_3, window_bounds = array<i64: 8, 128>}, {transform_indices = @transform_4, window_bounds = array<i64: 128, 128>}, {transform_indices = @transform_5, window_bounds = array<i64: 1, 128>}, {transform_indices = @transform_6, window_bounds = array<i64: 8, 128>}]} {
    %c0 = arith.constant 0 : index
    %c0_0 = arith.constant 0 : index
    %0 = vector.load %arg2[%c0, %c0_0] : memref<8x384xbf16, #tpu.memory_space<vmem>>, vector<8x384xbf16>
    %c0_1 = arith.constant 0 : index
    %c0_2 = arith.constant 0 : index
    %1 = vector.load %arg3[%c0_1, %c0_2] : memref<384x128xbf16, #tpu.memory_space<vmem>>, vector<384x128xbf16>
    %cst = arith.constant dense<0.000000e+00> : vector<8x128xf32>
    %2 = tpu.matmul %0, %1, %cst {dimension_numbers = #tpu.dot_dimension_numbers<[1], [0], [0], [1], [0, 0, 1, 1], [], []>} : vector<8x384xbf16>, vector<384x128xbf16>, vector<8x128xf32> -> vector<8x128xf32>
    %c0_3 = arith.constant 0 : index
    %c0_4 = arith.constant 0 : index
    %3 = vector.load %arg4[%c0_3, %c0_4] : memref<1x128xf32, #tpu.memory_space<vmem>>, vector<1x128xf32>
    %4 = vector.broadcast %3 : vector<1x128xf32> to vector<8x128xf32>
    %5 = arith.addf %2, %4 : vector<8x128xf32>
    %c0_5 = arith.constant 0 : index
    %c0_6 = arith.constant 0 : index
    %6 = vector.load %arg5[%c0_5, %c0_6] : memref<8x128xbf16, #tpu.memory_space<vmem>>, vector<8x128xbf16>
    %c0_7 = arith.constant 0 : index
    %c0_8 = arith.constant 0 : index
    %7 = vector.load %arg6[%c0_7, %c0_8] : memref<128x128xbf16, #tpu.memory_space<vmem>>, vector<128x128xbf16>
    %cst_9 = arith.constant dense<0.000000e+00> : vector<8x128xf32>
    %8 = tpu.matmul %6, %7, %cst_9 {dimension_numbers = #tpu.dot_dimension_numbers<[1], [0], [0], [1], [0, 0, 1, 1], [], []>} : vector<8x128xbf16>, vector<128x128xbf16>, vector<8x128xf32> -> vector<8x128xf32>
    %c0_10 = arith.constant 0 : index
    %c0_11 = arith.constant 0 : index
    %9 = vector.load %arg7[%c0_10, %c0_11] : memref<1x128xf32, #tpu.memory_space<vmem>>, vector<1x128xf32>
    %10 = vector.broadcast %9 : vector<1x128xf32> to vector<8x128xf32>
    %11 = arith.addf %8, %10 : vector<8x128xf32>
    %12 = arith.addf %5, %11 : vector<8x128xf32>
    %cst_12 = arith.constant 0.000000e+00 : f32
    %13 = vector.broadcast %cst_12 : f32 to vector<8x128xf32>
    %14 = arith.maximumf %12, %13 : vector<8x128xf32>
    %15 = arith.truncf %14 : vector<8x128xf32> to vector<8x128xbf16>
    %c0_13 = arith.constant 0 : index
    %c0_14 = arith.constant 0 : index
    %16 = vector.load %arg8[%c0_13, %c0_14] : memref<8x128xbf16, #tpu.memory_space<vmem>>, vector<8x128xbf16>
    tpu.vector_store %arg8[%c0_13, %c0_14], %15 {strides = array<i32>} : memref<8x128xbf16, #tpu.memory_space<vmem>>, vector<8x128xbf16>,
    return
  }
  func.func @transform_0(%arg0: i32, %arg1: i32) -> (i32, i32) {
    %c0_i32 = arith.constant 0 : i32
    %c0_i32_0 = arith.constant 0 : i32
    return %arg0, %c0_i32 : i32, i32
  }
  func.func @transform_1(%arg0: i32, %arg1: i32) -> (i32, i32) {
    %c0_i32 = arith.constant 0 : i32
    %c0_i32_0 = arith.constant 0 : i32
    return %c0_i32, %arg1 : i32, i32
  }
  func.func @transform_2(%arg0: i32, %arg1: i32) -> (i32, i32) {
    %c0_i32 = arith.constant 0 : i32
    %c0_i32_0 = arith.constant 0 : i32
    return %c0_i32, %arg1 : i32, i32
  }
  func.func @transform_3(%arg0: i32, %arg1: i32) -> (i32, i32) {
    %c0_i32 = arith.constant 0 : i32
    %c0_i32_0 = arith.constant 0 : i32
    return %arg0, %c0_i32 : i32, i32
  }
  func.func @transform_4(%arg0: i32, %arg1: i32) -> (i32, i32) {
    %c0_i32 = arith.constant 0 : i32
    %c0_i32_0 = arith.constant 0 : i32
    return %c0_i32, %arg1 : i32, i32
  }
  func.func @transform_5(%arg0: i32, %arg1: i32) -> (i32, i32) {
    %c0_i32 = arith.constant 0 : i32
    %c0_i32_0 = arith.constant 0 : i32
    return %c0_i32, %arg1 : i32, i32
  }
  func.func @transform_6(%arg0: i32, %arg1: i32) -> (i32, i32) {
    %c0_i32 = arith.constant 0 : i32
    return %arg0, %arg1 : i32, i32
  }
}

module attributes {stable_mosaic.version = 11 : i64} {
  func.func @_conv_mm_kernel(%arg0: i32, %arg1: i32, %arg2: memref<8x384xbf16, #tpu.memory_space<vmem>>, %arg3: memref<384x128xbf16, #tpu.memory_space<vmem>>, %arg4: memref<1x128xf32, #tpu.memory_space<vmem>>, %arg5: memref<8x128xbf16, #tpu.memory_space<vmem>>) attributes {dimension_semantics = [#tpu.dimension_semantics<parallel>, #tpu.dimension_semantics<parallel>], iteration_bounds = array<i64: 1, 1>, scalar_prefetch = 0 : i64, scratch_operands = 0 : i64, tpu.core_type = #tpu.core_type<tc>, window_params = [{transform_indices = @transform_0, window_bounds = array<i64: 8, 384>}, {transform_indices = @transform_1, window_bounds = array<i64: 384, 128>}, {transform_indices = @transform_2, window_bounds = array<i64: 1, 128>}, {transform_indices = @transform_3, window_bounds = array<i64: 8, 128>}]} {
    %c0 = arith.constant 0 : index
    %c0_0 = arith.constant 0 : index
    %0 = vector.load %arg2[%c0, %c0_0] : memref<8x384xbf16, #tpu.memory_space<vmem>>, vector<8x384xbf16>
    %c0_1 = arith.constant 0 : index
    %c0_2 = arith.constant 0 : index
    %1 = vector.load %arg3[%c0_1, %c0_2] : memref<384x128xbf16, #tpu.memory_space<vmem>>, vector<384x128xbf16>
    %cst = arith.constant dense<0.000000e+00> : vector<8x128xf32>
    %2 = tpu.matmul %0, %1, %cst {dimension_numbers = #tpu.dot_dimension_numbers<[1], [0], [0], [1], [0, 0, 1, 1], [], []>} : vector<8x384xbf16>, vector<384x128xbf16>, vector<8x128xf32> -> vector<8x128xf32>
    %c0_3 = arith.constant 0 : index
    %c0_4 = arith.constant 0 : index
    %3 = vector.load %arg4[%c0_3, %c0_4] : memref<1x128xf32, #tpu.memory_space<vmem>>, vector<1x128xf32>
    %4 = vector.broadcast %3 : vector<1x128xf32> to vector<8x128xf32>
    %5 = arith.addf %2, %4 : vector<8x128xf32>
    %cst_5 = arith.constant 0.000000e+00 : f32
    %6 = vector.broadcast %cst_5 : f32 to vector<8x128xf32>
    %7 = arith.maximumf %5, %6 : vector<8x128xf32>
    %8 = arith.truncf %7 : vector<8x128xf32> to vector<8x128xbf16>
    %c0_6 = arith.constant 0 : index
    %c0_7 = arith.constant 0 : index
    %9 = vector.load %arg5[%c0_6, %c0_7] : memref<8x128xbf16, #tpu.memory_space<vmem>>, vector<8x128xbf16>
    tpu.vector_store %arg5[%c0_6, %c0_7], %8 {strides = array<i32>} : memref<8x128xbf16, #tpu.memory_space<vmem>>, vector<8x128xbf16>,
    return
  }
  func.func @transform_0(%arg0: i32, %arg1: i32) -> (i32, i32) {
    %c0_i32 = arith.constant 0 : i32
    %c0_i32_0 = arith.constant 0 : i32
    return %arg0, %c0_i32 : i32, i32
  }
  func.func @transform_1(%arg0: i32, %arg1: i32) -> (i32, i32) {
    %c0_i32 = arith.constant 0 : i32
    %c0_i32_0 = arith.constant 0 : i32
    return %c0_i32, %arg1 : i32, i32
  }
  func.func @transform_2(%arg0: i32, %arg1: i32) -> (i32, i32) {
    %c0_i32 = arith.constant 0 : i32
    %c0_i32_0 = arith.constant 0 : i32
    return %c0_i32, %arg1 : i32, i32
  }
  func.func @transform_3(%arg0: i32, %arg1: i32) -> (i32, i32) {
    %c0_i32 = arith.constant 0 : i32
    return %arg0, %arg1 : i32, i32
  }
}

module attributes {stable_mosaic.version = 11 : i64} {
  func.func @_conv_mm_kernel(%arg0: i32, %arg1: i32, %arg2: memref<8x384xbf16, #tpu.memory_space<vmem>>, %arg3: memref<384x128xbf16, #tpu.memory_space<vmem>>, %arg4: memref<1x128xf32, #tpu.memory_space<vmem>>, %arg5: memref<8x128xbf16, #tpu.memory_space<vmem>>, %arg6: memref<8x128xbf16, #tpu.memory_space<vmem>>) attributes {dimension_semantics = [#tpu.dimension_semantics<parallel>, #tpu.dimension_semantics<parallel>], iteration_bounds = array<i64: 1, 1>, scalar_prefetch = 0 : i64, scratch_operands = 0 : i64, tpu.core_type = #tpu.core_type<tc>, window_params = [{transform_indices = @transform_0, window_bounds = array<i64: 8, 384>}, {transform_indices = @transform_1, window_bounds = array<i64: 384, 128>}, {transform_indices = @transform_2, window_bounds = array<i64: 1, 128>}, {transform_indices = @transform_3, window_bounds = array<i64: 8, 128>}, {transform_indices = @transform_4, window_bounds = array<i64: 8, 128>}]} {
    %c0 = arith.constant 0 : index
    %c0_0 = arith.constant 0 : index
    %0 = vector.load %arg2[%c0, %c0_0] : memref<8x384xbf16, #tpu.memory_space<vmem>>, vector<8x384xbf16>
    %c0_1 = arith.constant 0 : index
    %c0_2 = arith.constant 0 : index
    %1 = vector.load %arg3[%c0_1, %c0_2] : memref<384x128xbf16, #tpu.memory_space<vmem>>, vector<384x128xbf16>
    %cst = arith.constant dense<0.000000e+00> : vector<8x128xf32>
    %2 = tpu.matmul %0, %1, %cst {dimension_numbers = #tpu.dot_dimension_numbers<[1], [0], [0], [1], [0, 0, 1, 1], [], []>} : vector<8x384xbf16>, vector<384x128xbf16>, vector<8x128xf32> -> vector<8x128xf32>
    %c0_3 = arith.constant 0 : index
    %c0_4 = arith.constant 0 : index
    %3 = vector.load %arg4[%c0_3, %c0_4] : memref<1x128xf32, #tpu.memory_space<vmem>>, vector<1x128xf32>
    %4 = vector.broadcast %3 : vector<1x128xf32> to vector<8x128xf32>
    %5 = arith.addf %2, %4 : vector<8x128xf32>
    %c0_5 = arith.constant 0 : index
    %c0_6 = arith.constant 0 : index
    %6 = vector.load %arg5[%c0_5, %c0_6] : memref<8x128xbf16, #tpu.memory_space<vmem>>, vector<8x128xbf16>
    %7 = arith.extf %6 : vector<8x128xbf16> to vector<8x128xf32>
    %8 = arith.addf %5, %7 : vector<8x128xf32>
    %cst_7 = arith.constant 0.000000e+00 : f32
    %9 = vector.broadcast %cst_7 : f32 to vector<8x128xf32>
    %10 = arith.maximumf %8, %9 : vector<8x128xf32>
    %11 = arith.truncf %10 : vector<8x128xf32> to vector<8x128xbf16>
    %c0_8 = arith.constant 0 : index
    %c0_9 = arith.constant 0 : index
    %12 = vector.load %arg6[%c0_8, %c0_9] : memref<8x128xbf16, #tpu.memory_space<vmem>>, vector<8x128xbf16>
    tpu.vector_store %arg6[%c0_8, %c0_9], %11 {strides = array<i32>} : memref<8x128xbf16, #tpu.memory_space<vmem>>, vector<8x128xbf16>,
    return
  }
  func.func @transform_0(%arg0: i32, %arg1: i32) -> (i32, i32) {
    %c0_i32 = arith.constant 0 : i32
    %c0_i32_0 = arith.constant 0 : i32
    return %arg0, %c0_i32 : i32, i32
  }
  func.func @transform_1(%arg0: i32, %arg1: i32) -> (i32, i32) {
    %c0_i32 = arith.constant 0 : i32
    %c0_i32_0 = arith.constant 0 : i32
    return %c0_i32, %arg1 : i32, i32
  }
  func.func @transform_2(%arg0: i32, %arg1: i32) -> (i32, i32) {
    %c0_i32 = arith.constant 0 : i32
    %c0_i32_0 = arith.constant 0 : i32
    return %c0_i32, %arg1 : i32, i32
  }
  func.func @transform_3(%arg0: i32, %arg1: i32) -> (i32, i32) {
    %c0_i32 = arith.constant 0 : i32
    return %arg0, %arg1 : i32, i32
  }
  func.func @transform_4(%arg0: i32, %arg1: i32) -> (i32, i32) {
    %c0_i32 = arith.constant 0 : i32
    return %arg0, %arg1 : i32, i32
  }
}

module attributes {stable_mosaic.version = 11 : i64} {
  func.func @_conv_mm_kernel(%arg0: i32, %arg1: i32, %arg2: memref<2x384xbf16, #tpu.memory_space<vmem>>, %arg3: memref<384x128xbf16, #tpu.memory_space<vmem>>, %arg4: memref<1x128xf32, #tpu.memory_space<vmem>>, %arg5: memref<2x128xbf16, #tpu.memory_space<vmem>>) attributes {dimension_semantics = [#tpu.dimension_semantics<parallel>, #tpu.dimension_semantics<parallel>], iteration_bounds = array<i64: 1, 1>, scalar_prefetch = 0 : i64, scratch_operands = 0 : i64, tpu.core_type = #tpu.core_type<tc>, window_params = [{transform_indices = @transform_0, window_bounds = array<i64: 2, 384>}, {transform_indices = @transform_1, window_bounds = array<i64: 384, 128>}, {transform_indices = @transform_2, window_bounds = array<i64: 1, 128>}, {transform_indices = @transform_3, window_bounds = array<i64: 2, 128>}]} {
    %c0 = arith.constant 0 : index
    %c0_0 = arith.constant 0 : index
    %0 = vector.load %arg2[%c0, %c0_0] : memref<2x384xbf16, #tpu.memory_space<vmem>>, vector<2x384xbf16>
    %c0_1 = arith.constant 0 : index
    %c0_2 = arith.constant 0 : index
    %1 = vector.load %arg3[%c0_1, %c0_2] : memref<384x128xbf16, #tpu.memory_space<vmem>>, vector<384x128xbf16>
    %cst = arith.constant dense<0.000000e+00> : vector<2x128xf32>
    %2 = tpu.matmul %0, %1, %cst {dimension_numbers = #tpu.dot_dimension_numbers<[1], [0], [0], [1], [0, 0, 1, 1], [], []>} : vector<2x384xbf16>, vector<384x128xbf16>, vector<2x128xf32> -> vector<2x128xf32>
    %c0_3 = arith.constant 0 : index
    %c0_4 = arith.constant 0 : index
    %3 = vector.load %arg4[%c0_3, %c0_4] : memref<1x128xf32, #tpu.memory_space<vmem>>, vector<1x128xf32>
    %4 = vector.broadcast %3 : vector<1x128xf32> to vector<2x128xf32>
    %5 = arith.addf %2, %4 : vector<2x128xf32>
    %cst_5 = arith.constant 0.000000e+00 : f32
    %6 = vector.broadcast %cst_5 : f32 to vector<2x128xf32>
    %7 = arith.maximumf %5, %6 : vector<2x128xf32>
    %8 = arith.truncf %7 : vector<2x128xf32> to vector<2x128xbf16>
    %c0_6 = arith.constant 0 : index
    %c0_7 = arith.constant 0 : index
    %9 = vector.load %arg5[%c0_6, %c0_7] : memref<2x128xbf16, #tpu.memory_space<vmem>>, vector<2x128xbf16>
    tpu.vector_store %arg5[%c0_6, %c0_7], %8 {strides = array<i32>} : memref<2x128xbf16, #tpu.memory_space<vmem>>, vector<2x128xbf16>,
    return
  }
  func.func @transform_0(%arg0: i32, %arg1: i32) -> (i32, i32) {
    %c0_i32 = arith.constant 0 : i32
    %c0_i32_0 = arith.constant 0 : i32
    return %arg0, %c0_i32 : i32, i32
  }
  func.func @transform_1(%arg0: i32, %arg1: i32) -> (i32, i32) {
    %c0_i32 = arith.constant 0 : i32
    %c0_i32_0 = arith.constant 0 : i32
    return %c0_i32, %arg1 : i32, i32
  }
  func.func @transform_2(%arg0: i32, %arg1: i32) -> (i32, i32) {
    %c0_i32 = arith.constant 0 : i32
    %c0_i32_0 = arith.constant 0 : i32
    return %c0_i32, %arg1 : i32, i32
  }
  func.func @transform_3(%arg0: i32, %arg1: i32) -> (i32, i32) {
    %c0_i32 = arith.constant 0 : i32
    return %arg0, %arg1 : i32, i32
  }
}

module attributes {stable_mosaic.version = 11 : i64} {
  func.func @_conv_mm_kernel(%arg0: i32, %arg1: i32, %arg2: memref<2x640xbf16, #tpu.memory_space<vmem>>, %arg3: memref<640x128xbf16, #tpu.memory_space<vmem>>, %arg4: memref<1x128xf32, #tpu.memory_space<vmem>>, %arg5: memref<2x128xbf16, #tpu.memory_space<vmem>>) attributes {dimension_semantics = [#tpu.dimension_semantics<parallel>, #tpu.dimension_semantics<parallel>], iteration_bounds = array<i64: 1, 1>, scalar_prefetch = 0 : i64, scratch_operands = 0 : i64, tpu.core_type = #tpu.core_type<tc>, window_params = [{transform_indices = @transform_0, window_bounds = array<i64: 2, 640>}, {transform_indices = @transform_1, window_bounds = array<i64: 640, 128>}, {transform_indices = @transform_2, window_bounds = array<i64: 1, 128>}, {transform_indices = @transform_3, window_bounds = array<i64: 2, 128>}]} {
    %c0 = arith.constant 0 : index
    %c0_0 = arith.constant 0 : index
    %0 = vector.load %arg2[%c0, %c0_0] : memref<2x640xbf16, #tpu.memory_space<vmem>>, vector<2x640xbf16>
    %c0_1 = arith.constant 0 : index
    %c0_2 = arith.constant 0 : index
    %1 = vector.load %arg3[%c0_1, %c0_2] : memref<640x128xbf16, #tpu.memory_space<vmem>>, vector<640x128xbf16>
    %cst = arith.constant dense<0.000000e+00> : vector<2x128xf32>
    %2 = tpu.matmul %0, %1, %cst {dimension_numbers = #tpu.dot_dimension_numbers<[1], [0], [0], [1], [0, 0, 1, 1], [], []>} : vector<2x640xbf16>, vector<640x128xbf16>, vector<2x128xf32> -> vector<2x128xf32>
    %c0_3 = arith.constant 0 : index
    %c0_4 = arith.constant 0 : index
    %3 = vector.load %arg4[%c0_3, %c0_4] : memref<1x128xf32, #tpu.memory_space<vmem>>, vector<1x128xf32>
    %4 = vector.broadcast %3 : vector<1x128xf32> to vector<2x128xf32>
    %5 = arith.addf %2, %4 : vector<2x128xf32>
    %cst_5 = arith.constant 0.000000e+00 : f32
    %6 = vector.broadcast %cst_5 : f32 to vector<2x128xf32>
    %7 = arith.maximumf %5, %6 : vector<2x128xf32>
    %8 = arith.truncf %7 : vector<2x128xf32> to vector<2x128xbf16>
    %c0_6 = arith.constant 0 : index
    %c0_7 = arith.constant 0 : index
    %9 = vector.load %arg5[%c0_6, %c0_7] : memref<2x128xbf16, #tpu.memory_space<vmem>>, vector<2x128xbf16>
    tpu.vector_store %arg5[%c0_6, %c0_7], %8 {strides = array<i32>} : memref<2x128xbf16, #tpu.memory_space<vmem>>, vector<2x128xbf16>,
    return
  }
  func.func @transform_0(%arg0: i32, %arg1: i32) -> (i32, i32) {
    %c0_i32 = arith.constant 0 : i32
    %c0_i32_0 = arith.constant 0 : i32
    return %arg0, %c0_i32 : i32, i32
  }
  func.func @transform_1(%arg0: i32, %arg1: i32) -> (i32, i32) {
    %c0_i32 = arith.constant 0 : i32
    %c0_i32_0 = arith.constant 0 : i32
    return %c0_i32, %arg1 : i32, i32
  }
  func.func @transform_2(%arg0: i32, %arg1: i32) -> (i32, i32) {
    %c0_i32 = arith.constant 0 : i32
    %c0_i32_0 = arith.constant 0 : i32
    return %c0_i32, %arg1 : i32, i32
  }
  func.func @transform_3(%arg0: i32, %arg1: i32) -> (i32, i32) {
    %c0_i32 = arith.constant 0 : i32
    return %arg0, %arg1 : i32, i32
  }
}

module attributes {stable_mosaic.version = 11 : i64} {
  func.func @_conv_mm_kernel(%arg0: i32, %arg1: i32, %arg2: memref<2x640xbf16, #tpu.memory_space<vmem>>, %arg3: memref<640x128xbf16, #tpu.memory_space<vmem>>, %arg4: memref<1x128xf32, #tpu.memory_space<vmem>>, %arg5: memref<2x128xbf16, #tpu.memory_space<vmem>>, %arg6: memref<2x128xbf16, #tpu.memory_space<vmem>>) attributes {dimension_semantics = [#tpu.dimension_semantics<parallel>, #tpu.dimension_semantics<parallel>], iteration_bounds = array<i64: 1, 1>, scalar_prefetch = 0 : i64, scratch_operands = 0 : i64, tpu.core_type = #tpu.core_type<tc>, window_params = [{transform_indices = @transform_0, window_bounds = array<i64: 2, 640>}, {transform_indices = @transform_1, window_bounds = array<i64: 640, 128>}, {transform_indices = @transform_2, window_bounds = array<i64: 1, 128>}, {transform_indices = @transform_3, window_bounds = array<i64: 2, 128>}, {transform_indices = @transform_4, window_bounds = array<i64: 2, 128>}]} {
    %c0 = arith.constant 0 : index
    %c0_0 = arith.constant 0 : index
    %0 = vector.load %arg2[%c0, %c0_0] : memref<2x640xbf16, #tpu.memory_space<vmem>>, vector<2x640xbf16>
    %c0_1 = arith.constant 0 : index
    %c0_2 = arith.constant 0 : index
    %1 = vector.load %arg3[%c0_1, %c0_2] : memref<640x128xbf16, #tpu.memory_space<vmem>>, vector<640x128xbf16>
    %cst = arith.constant dense<0.000000e+00> : vector<2x128xf32>
    %2 = tpu.matmul %0, %1, %cst {dimension_numbers = #tpu.dot_dimension_numbers<[1], [0], [0], [1], [0, 0, 1, 1], [], []>} : vector<2x640xbf16>, vector<640x128xbf16>, vector<2x128xf32> -> vector<2x128xf32>
    %c0_3 = arith.constant 0 : index
    %c0_4 = arith.constant 0 : index
    %3 = vector.load %arg4[%c0_3, %c0_4] : memref<1x128xf32, #tpu.memory_space<vmem>>, vector<1x128xf32>
    %4 = vector.broadcast %3 : vector<1x128xf32> to vector<2x128xf32>
    %5 = arith.addf %2, %4 : vector<2x128xf32>
    %c0_5 = arith.constant 0 : index
    %c0_6 = arith.constant 0 : index
    %6 = vector.load %arg5[%c0_5, %c0_6] : memref<2x128xbf16, #tpu.memory_space<vmem>>, vector<2x128xbf16>
    %7 = arith.extf %6 : vector<2x128xbf16> to vector<2x128xf32>
    %8 = arith.addf %5, %7 : vector<2x128xf32>
    %cst_7 = arith.constant 0.000000e+00 : f32
    %9 = vector.broadcast %cst_7 : f32 to vector<2x128xf32>
    %10 = arith.maximumf %8, %9 : vector<2x128xf32>
    %11 = arith.truncf %10 : vector<2x128xf32> to vector<2x128xbf16>
    %c0_8 = arith.constant 0 : index
    %c0_9 = arith.constant 0 : index
    %12 = vector.load %arg6[%c0_8, %c0_9] : memref<2x128xbf16, #tpu.memory_space<vmem>>, vector<2x128xbf16>
    tpu.vector_store %arg6[%c0_8, %c0_9], %11 {strides = array<i32>} : memref<2x128xbf16, #tpu.memory_space<vmem>>, vector<2x128xbf16>,
    return
  }
  func.func @transform_0(%arg0: i32, %arg1: i32) -> (i32, i32) {
    %c0_i32 = arith.constant 0 : i32
    %c0_i32_0 = arith.constant 0 : i32
    return %arg0, %c0_i32 : i32, i32
  }
  func.func @transform_1(%arg0: i32, %arg1: i32) -> (i32, i32) {
    %c0_i32 = arith.constant 0 : i32
    %c0_i32_0 = arith.constant 0 : i32
    return %c0_i32, %arg1 : i32, i32
  }
  func.func @transform_2(%arg0: i32, %arg1: i32) -> (i32, i32) {
    %c0_i32 = arith.constant 0 : i32
    %c0_i32_0 = arith.constant 0 : i32
    return %c0_i32, %arg1 : i32, i32
  }
  func.func @transform_3(%arg0: i32, %arg1: i32) -> (i32, i32) {
    %c0_i32 = arith.constant 0 : i32
    return %arg0, %arg1 : i32, i32
  }
  func.func @transform_4(%arg0: i32, %arg1: i32) -> (i32, i32) {
    %c0_i32 = arith.constant 0 : i32
    return %arg0, %arg1 : i32, i32
  }
}

module attributes {stable_mosaic.version = 11 : i64} {
  func.func @_conv_mm_kernel(%arg0: i32, %arg1: i32, %arg2: memref<2x640xbf16, #tpu.memory_space<vmem>>, %arg3: memref<640x128xbf16, #tpu.memory_space<vmem>>, %arg4: memref<1x128xf32, #tpu.memory_space<vmem>>, %arg5: memref<2x128xbf16, #tpu.memory_space<vmem>>, %arg6: memref<128x128xbf16, #tpu.memory_space<vmem>>, %arg7: memref<1x128xf32, #tpu.memory_space<vmem>>, %arg8: memref<2x128xbf16, #tpu.memory_space<vmem>>) attributes {dimension_semantics = [#tpu.dimension_semantics<parallel>, #tpu.dimension_semantics<parallel>], iteration_bounds = array<i64: 1, 1>, scalar_prefetch = 0 : i64, scratch_operands = 0 : i64, tpu.core_type = #tpu.core_type<tc>, window_params = [{transform_indices = @transform_0, window_bounds = array<i64: 2, 640>}, {transform_indices = @transform_1, window_bounds = array<i64: 640, 128>}, {transform_indices = @transform_2, window_bounds = array<i64: 1, 128>}, {transform_indices = @transform_3, window_bounds = array<i64: 2, 128>}, {transform_indices = @transform_4, window_bounds = array<i64: 128, 128>}, {transform_indices = @transform_5, window_bounds = array<i64: 1, 128>}, {transform_indices = @transform_6, window_bounds = array<i64: 2, 128>}]} {
    %c0 = arith.constant 0 : index
    %c0_0 = arith.constant 0 : index
    %0 = vector.load %arg2[%c0, %c0_0] : memref<2x640xbf16, #tpu.memory_space<vmem>>, vector<2x640xbf16>
    %c0_1 = arith.constant 0 : index
    %c0_2 = arith.constant 0 : index
    %1 = vector.load %arg3[%c0_1, %c0_2] : memref<640x128xbf16, #tpu.memory_space<vmem>>, vector<640x128xbf16>
    %cst = arith.constant dense<0.000000e+00> : vector<2x128xf32>
    %2 = tpu.matmul %0, %1, %cst {dimension_numbers = #tpu.dot_dimension_numbers<[1], [0], [0], [1], [0, 0, 1, 1], [], []>} : vector<2x640xbf16>, vector<640x128xbf16>, vector<2x128xf32> -> vector<2x128xf32>
    %c0_3 = arith.constant 0 : index
    %c0_4 = arith.constant 0 : index
    %3 = vector.load %arg4[%c0_3, %c0_4] : memref<1x128xf32, #tpu.memory_space<vmem>>, vector<1x128xf32>
    %4 = vector.broadcast %3 : vector<1x128xf32> to vector<2x128xf32>
    %5 = arith.addf %2, %4 : vector<2x128xf32>
    %c0_5 = arith.constant 0 : index
    %c0_6 = arith.constant 0 : index
    %6 = vector.load %arg5[%c0_5, %c0_6] : memref<2x128xbf16, #tpu.memory_space<vmem>>, vector<2x128xbf16>
    %c0_7 = arith.constant 0 : index
    %c0_8 = arith.constant 0 : index
    %7 = vector.load %arg6[%c0_7, %c0_8] : memref<128x128xbf16, #tpu.memory_space<vmem>>, vector<128x128xbf16>
    %cst_9 = arith.constant dense<0.000000e+00> : vector<2x128xf32>
    %8 = tpu.matmul %6, %7, %cst_9 {dimension_numbers = #tpu.dot_dimension_numbers<[1], [0], [0], [1], [0, 0, 1, 1], [], []>} : vector<2x128xbf16>, vector<128x128xbf16>, vector<2x128xf32> -> vector<2x128xf32>
    %c0_10 = arith.constant 0 : index
    %c0_11 = arith.constant 0 : index
    %9 = vector.load %arg7[%c0_10, %c0_11] : memref<1x128xf32, #tpu.memory_space<vmem>>, vector<1x128xf32>
    %10 = vector.broadcast %9 : vector<1x128xf32> to vector<2x128xf32>
    %11 = arith.addf %8, %10 : vector<2x128xf32>
    %12 = arith.addf %5, %11 : vector<2x128xf32>
    %cst_12 = arith.constant 0.000000e+00 : f32
    %13 = vector.broadcast %cst_12 : f32 to vector<2x128xf32>
    %14 = arith.maximumf %12, %13 : vector<2x128xf32>
    %15 = arith.truncf %14 : vector<2x128xf32> to vector<2x128xbf16>
    %c0_13 = arith.constant 0 : index
    %c0_14 = arith.constant 0 : index
    %16 = vector.load %arg8[%c0_13, %c0_14] : memref<2x128xbf16, #tpu.memory_space<vmem>>, vector<2x128xbf16>
    tpu.vector_store %arg8[%c0_13, %c0_14], %15 {strides = array<i32>} : memref<2x128xbf16, #tpu.memory_space<vmem>>, vector<2x128xbf16>,
    return
  }
  func.func @transform_0(%arg0: i32, %arg1: i32) -> (i32, i32) {
    %c0_i32 = arith.constant 0 : i32
    %c0_i32_0 = arith.constant 0 : i32
    return %arg0, %c0_i32 : i32, i32
  }
  func.func @transform_1(%arg0: i32, %arg1: i32) -> (i32, i32) {
    %c0_i32 = arith.constant 0 : i32
    %c0_i32_0 = arith.constant 0 : i32
    return %c0_i32, %arg1 : i32, i32
  }
  func.func @transform_2(%arg0: i32, %arg1: i32) -> (i32, i32) {
    %c0_i32 = arith.constant 0 : i32
    %c0_i32_0 = arith.constant 0 : i32
    return %c0_i32, %arg1 : i32, i32
  }
  func.func @transform_3(%arg0: i32, %arg1: i32) -> (i32, i32) {
    %c0_i32 = arith.constant 0 : i32
    %c0_i32_0 = arith.constant 0 : i32
    return %arg0, %c0_i32 : i32, i32
  }
  func.func @transform_4(%arg0: i32, %arg1: i32) -> (i32, i32) {
    %c0_i32 = arith.constant 0 : i32
    %c0_i32_0 = arith.constant 0 : i32
    return %c0_i32, %arg1 : i32, i32
  }
  func.func @transform_5(%arg0: i32, %arg1: i32) -> (i32, i32) {
    %c0_i32 = arith.constant 0 : i32
    %c0_i32_0 = arith.constant 0 : i32
    return %c0_i32, %arg1 : i32, i32
  }
  func.func @transform_6(%arg0: i32, %arg1: i32) -> (i32, i32) {
    %c0_i32 = arith.constant 0 : i32
    return %arg0, %arg1 : i32, i32
  }
}

module attributes {stable_mosaic.version = 11 : i64} {
  func.func @_head_kernel(%arg0: memref<2x1x128xbf16, #tpu.memory_space<vmem>>, %arg1: memref<128x128xf32, #tpu.memory_space<vmem>>, %arg2: memref<1x128xf32, #tpu.memory_space<vmem>>, %arg3: memref<2x1xf32, #tpu.memory_space<vmem>>) attributes {dimension_semantics = [], scalar_prefetch = 0 : i64, scratch_operands = 0 : i64, tpu.core_type = #tpu.core_type<tc>} {
    %c0 = arith.constant 0 : index
    %c0_0 = arith.constant 0 : index
    %c0_1 = arith.constant 0 : index
    %0 = vector.load %arg0[%c0, %c0_0, %c0_1] : memref<2x1x128xbf16, #tpu.memory_space<vmem>>, vector<2x1x128xbf16>
    %1 = arith.extf %0 : vector<2x1x128xbf16> to vector<2x1x128xf32>
    %cst = arith.constant dense<0.000000e+00> : vector<2x128xf32>
    %2 = vector.multi_reduction <add>, %1, %cst [1] : vector<2x1x128xf32> to vector<2x128xf32>
    %cst_2 = arith.constant 1.000000e+00 : f32
    %3 = vector.broadcast %cst_2 : f32 to vector<2x128xf32>
    %4 = arith.divf %2, %3 : vector<2x128xf32>
    %c0_3 = arith.constant 0 : index
    %c0_4 = arith.constant 0 : index
    %5 = vector.load %arg1[%c0_3, %c0_4] : memref<128x128xf32, #tpu.memory_space<vmem>>, vector<128x128xf32>
    %cst_5 = arith.constant dense<0.000000e+00> : vector<2x128xf32>
    %6 = tpu.matmul %4, %5, %cst_5 {dimension_numbers = #tpu.dot_dimension_numbers<[1], [0], [0], [1], [0, 0, 1, 1], [], []>} : vector<2x128xf32>, vector<128x128xf32>, vector<2x128xf32> -> vector<2x128xf32>
    %cst_6 = arith.constant 0.000000e+00 : f32
    %7 = vector.broadcast %cst_6 : f32 to vector<2x128xf32>
    %8 = arith.cmpf ogt, %6, %7 : vector<2x128xf32>
    %cst_7 = arith.constant 0.00999999977 : f32
    %9 = vector.broadcast %cst_7 : f32 to vector<2x128xf32>
    %10 = arith.mulf %9, %6 : vector<2x128xf32>
    %11 = arith.select %8, %6, %10 : vector<2x128xi1>, vector<2x128xf32>
    %c0_8 = arith.constant 0 : index
    %c0_9 = arith.constant 0 : index
    %12 = vector.load %arg2[%c0_8, %c0_9] : memref<1x128xf32, #tpu.memory_space<vmem>>, vector<1x128xf32>
    %13 = vector.broadcast %12 : vector<1x128xf32> to vector<2x128xf32>
    %14 = arith.mulf %11, %13 : vector<2x128xf32>
    %cst_10 = arith.constant dense<0.000000e+00> : vector<2xf32>
    %15 = vector.multi_reduction <add>, %14, %cst_10 [1] : vector<2x128xf32> to vector<2xf32>
    %16 = vector.shape_cast %15 : vector<2xf32> to vector<2x1xf32>
    %c0_11 = arith.constant 0 : index
    %c0_12 = arith.constant 0 : index
    %17 = vector.load %arg3[%c0_11, %c0_12] : memref<2x1xf32, #tpu.memory_space<vmem>>, vector<2x1xf32>
    tpu.vector_store %arg3[%c0_11, %c0_12], %16 {strides = array<i32>} : memref<2x1xf32, #tpu.memory_space<vmem>>, vector<2x1xf32>,
    return
  }
}

</mosaic_0001>

<bundles_post_ra>
// kernel: plate_classification_forward.19
= control target key start
LH: loop header
LB: loop body
LE: loop exit
PB: predicated region body
PF: predicated region fallthrough
CT: control target
= control target key end

     0   :  { %s1494_s12 = smov 0   ;;  %s1496_s13 = smov 0   ;;  %s1668_s0 = inlined_call_operand.vmem [shape: bf16[512,256], index: 0, kind: input, shape index: {}]   ;;  %s1669_s1 = inlined_call_operand.vmem [shape: bf16[256,128], index: 1, kind: input, shape index: {}]   ;;  %s1670_s2 = inlined_call_operand.vmem [shape: f32[1,128], index: 2, kind: input, shape index: {}]   ;;  %s1671_s3 = inlined_call_operand.vmem [shape: bf16[512,128], index: 3, kind: output, shape index: {}]  }
   0x1   :  { %s1498_s14 = smov 0  }
   0x2 LB: > { %s25_s15 = sadd.s32 1, %s1468_s13  ;;  %p1017_p0 = scmp.ge.s32.totalorder %s1472_s14, 1  ;;  %s1472_s14 = sphi %s1498_s14, %s13_s14   ;;  %s1468_s13 = sphi %s1496_s13, %s1673_s13   ;;  %s1464_s12 = sphi %s1494_s12, %s1672_s12  }
   0x3   : > { %p27_p1 = scmp.ge.s32.totalorder %s25_s15, 2  ;;  %p170_p2 = scmp.lt.s32.totalorder %s1472_s14, 3 }
   0x5   : > { %s1675_s15 = smov (%p27_p1, %s25_s15), 0  ;;  %p171_p3 = pnand %p1017_p0, %p170_p2 }
   0x6   : > { %v1386_v0 = vld [vmem:[%s1669_s1 + $0x40] sm:$0xff] (!%p171_p3)   ;;  %s1018_s18 = sshll.u32 (!%p171_p3), %s1464_s12, 5  ;;  %v1388_v2 = vld [vmem:[%s1669_s1 + $0x48] sm:$0xff] (!%p171_p3)   ;;  %v1390_v4 = vld [vmem:[%s1669_s1 + $0x50] sm:$0xff] (!%p171_p3)  }
   0x7   : > { %174 = sbr.rel (%p171_p3) target bundleno = 320 (0x140), region = 32  ;;  %v1387_v1 = vld [vmem:[%s1669_s1] sm:$0xff] (!%p171_p3)   ;;  %1234 = vmatprep.subr.bf16.mxu0 (!%p171_p3), %v1386_v0  ;;  %1346 = vmatprep.subr.bf16.mxu1 (!%p171_p3), %v1386_v0  ;;  %v1389_v3 = vld [vmem:[%s1669_s1 + $0x8] sm:$0xff] (!%p171_p3)   ;;  %p206_p4 = scmp.lt.s32.totalorder (!%p171_p3), %s1018_s18, 63  ;;  %v1391_v5 = vld [vmem:[%s1669_s1 + $0x10] sm:$0xff] (!%p171_p3)  }
   0x8   : > { %1235 = vmatpush3.bf16.msra.mxu0 (!%p171_p3), %v1387_v1  ;;  %1354 = vmatpush3.bf16.msra.mxu1 (!%p171_p3), %v1387_v1  ;;  %v1392_v6 = vld [vmem:[%s1669_s1 + $0x58] sm:$0xff] (!%p171_p3)   ;;  %v1394_v8 = vld [vmem:[%s1669_s1 + $0x60] sm:$0xff] (!%p171_p3)   ;;  %v1396_v10 = vld [vmem:[%s1669_s1 + $0x68] sm:$0xff] (!%p171_p3)  }
   0x9   : > { %1236 = vmatprep.subr.bf16.mxu0 (!%p171_p3), %v1388_v2  ;;  %1347 = vmatprep.subr.bf16.mxu1 (!%p171_p3), %v1388_v2  ;;  %v1393_v7 = vld [vmem:[%s1669_s1 + $0x18] sm:$0xff] (!%p171_p3)   ;;  %v1395_v9 = vld [vmem:[%s1669_s1 + $0x20] sm:$0xff] (!%p171_p3)   ;;  %v1397_v13 = vld [vmem:[%s1669_s1 + $0x28] sm:$0xff] (!%p171_p3)  }
   0xa   : > { %v1398_v14 = vld [vmem:[%s1669_s1 + $0x70] sm:$0xff] (!%p171_p3)   ;;  %v1400_v16 = vld [vmem:[%s1669_s1 + $0x78] sm:$0xff] (!%p171_p3)   ;;  %v1603_v50 = vld [vmem:[%s1670_s2] ss:$0 sm:$0xff] (!%p171_p3) }
   0xb   : > { %v1399_v15 = vld [vmem:[%s1669_s1 + $0x30] sm:$0xff] (!%p171_p3)   ;;  %v1401_v17 = vld [vmem:[%s1669_s1 + $0x38] sm:$0xff] (!%p171_p3)  }
   0xc   : > { %1237 = vmatpush3.bf16.msra.mxu0 (!%p171_p3), %v1389_v3  ;;  %1355 = vmatpush3.bf16.msra.mxu1 (!%p171_p3), %v1389_v3 }
   0xd   : > { %1238 = vmatprep.subr.bf16.mxu0 (!%p171_p3), %v1390_v4  ;;  %1348 = vmatprep.subr.bf16.mxu1 (!%p171_p3), %v1390_v4 }
   0xe   : > { %s1677_s18 = smov (!%p206_p4, %s1018_s18), 63 }
   0xf   : > { %s1106_s6 = sshll.u32 %s1677_s18, 3  ;;  %s1022_s5 = sshll.u32 %s1677_s18, 2 }
  0x10   : > { %1239 = vmatpush3.bf16.msra.mxu0 %v1391_v5  ;;  %1356 = vmatpush3.bf16.msra.mxu1 %v1391_v5  ;;  %s1545_s11 = scalar_lea.vmem %s1668_s0, %s1106_s6  ;;  %s1613_s8 = scalar_lea.vmem %s1671_s3, %s1022_s5 }
  0x11   : > { %1240 = vmatprep.subr.bf16.mxu0 %v1392_v6  ;;  %1349 = vmatprep.subr.bf16.mxu1 %v1392_v6  ;;  %v1404_v11 = vld [vmem:[%s1545_s11 + $0x4] ss:$8 sps:$4 sm:$0xff]   ;;  %v1402_v18 = vld [vmem:[%s1545_s11] ss:$8 sps:$4 sm:$0xff]   ;;  %v1408_v20 = vld [vmem:[%s1545_s11 + $0x14] ss:$8 sps:$4 sm:$0xff]  }
  0x12   : > { %v1407_v12 = vld [vmem:[%s1545_s11 + $0x84] ss:$8 sps:$4 sm:$0xff]   ;;  %588 = vmatprep.mubr.bf16.mxu0 %v1404_v11  ;;  %v1405_v19 = vld [vmem:[%s1545_s11 + $0x80] ss:$8 sps:$4 sm:$0xff]   ;;  %v1410_v21 = vld [vmem:[%s1545_s11 + $0x94] ss:$8 sps:$4 sm:$0xff]  }
  0x13   : > { %652 = vmatprep.mubr.bf16.mxu1 %v1407_v12  ;;  %v1412_v22 = vld [vmem:[%s1545_s11 + $0x10] ss:$8 sps:$4 sm:$0xff]   ;;  %v1414_v24 = vld [vmem:[%s1545_s11 + $0x24] ss:$8 sps:$4 sm:$0xff]   ;;  %v1418_v26 = vld [vmem:[%s1545_s11 + $0x20] ss:$8 sps:$4 sm:$0xff]  }
  0x14   : > { %1241 = vmatpush3.bf16.msra.mxu0 %v1393_v7  ;;  %1357 = vmatpush3.bf16.msra.mxu1 %v1393_v7  ;;  %v1413_v23 = vld [vmem:[%s1545_s11 + $0x90] ss:$8 sps:$4 sm:$0xff]   ;;  %v1416_v25 = vld [vmem:[%s1545_s11 + $0xa4] ss:$8 sps:$4 sm:$0xff]   ;;  %v1419_v27 = vld [vmem:[%s1545_s11 + $0xa0] ss:$8 sps:$4 sm:$0xff]  }
  0x15   : > { %1242 = vmatprep.subr.bf16.mxu0 %v1394_v8  ;;  %1350 = vmatprep.subr.bf16.mxu1 %v1394_v8  ;;  %v1420_v28 = vld [vmem:[%s1545_s11 + $0x34] ss:$8 sps:$4 sm:$0xff]   ;;  %v1424_v30 = vld [vmem:[%s1545_s11 + $0x30] ss:$8 sps:$4 sm:$0xff]   ;;  %v1426_v32 = vld [vmem:[%s1545_s11 + $0x44] ss:$8 sps:$4 sm:$0xff]  }
  0x16   : > { %v1422_v29 = vld [vmem:[%s1545_s11 + $0xb4] ss:$8 sps:$4 sm:$0xff]   ;;  %v1425_v31 = vld [vmem:[%s1545_s11 + $0xb0] ss:$8 sps:$4 sm:$0xff]   ;;  %v1428_v33 = vld [vmem:[%s1545_s11 + $0xc4] ss:$8 sps:$4 sm:$0xff]  }
  0x17   : > { %v1430_v34 = vld [vmem:[%s1545_s11 + $0x40] ss:$8 sps:$4 sm:$0xff]   ;;  %v1432_v36 = vld [vmem:[%s1545_s11 + $0x54] ss:$8 sps:$4 sm:$0xff]   ;;  %v1436_v38 = vld [vmem:[%s1545_s11 + $0x50] ss:$8 sps:$4 sm:$0xff]  }
  0x18   : > { %1243 = vmatpush3.bf16.msra.mxu0 %v1395_v9  ;;  %1358 = vmatpush3.bf16.msra.mxu1 %v1395_v9  ;;  %v1431_v35 = vld [vmem:[%s1545_s11 + $0xc0] ss:$8 sps:$4 sm:$0xff]   ;;  %v1434_v37 = vld [vmem:[%s1545_s11 + $0xd4] ss:$8 sps:$4 sm:$0xff]   ;;  %v1437_v39 = vld [vmem:[%s1545_s11 + $0xd0] ss:$8 sps:$4 sm:$0xff]  }
  0x19   : > { %1244 = vmatprep.subr.bf16.mxu0 %v1396_v10  ;;  %1351 = vmatprep.subr.bf16.mxu1 %v1396_v10  ;;  %v1438_v40 = vld [vmem:[%s1545_s11 + $0x64] ss:$8 sps:$4 sm:$0xff]   ;;  %v1442_v42 = vld [vmem:[%s1545_s11 + $0x60] ss:$8 sps:$4 sm:$0xff]   ;;  %v1444_v44 = vld [vmem:[%s1545_s11 + $0x74] ss:$8 sps:$4 sm:$0xff]  }
  0x1a   : > { %v1440_v41 = vld [vmem:[%s1545_s11 + $0xe4] ss:$8 sps:$4 sm:$0xff]   ;;  %v1443_v43 = vld [vmem:[%s1545_s11 + $0xe0] ss:$8 sps:$4 sm:$0xff]   ;;  %v1446_v45 = vld [vmem:[%s1545_s11 + $0xf4] ss:$8 sps:$4 sm:$0xff]  }
  0x1b   : > { %v1448_v46 = vld [vmem:[%s1545_s11 + $0x70] ss:$8 sps:$4 sm:$0xff]  }
  0x1c   : > { %1245 = vmatpush3.bf16.msra.mxu0 %v1397_v13  ;;  %1359 = vmatpush3.bf16.msra.mxu1 %v1397_v13  ;;  %v1449_v47 = vld [vmem:[%s1545_s11 + $0xf0] ss:$8 sps:$4 sm:$0xff]  }
  0x1d   : > { %1246 = vmatprep.subr.bf16.mxu0 %v1398_v14  ;;  %1352 = vmatprep.subr.bf16.mxu1 %v1398_v14 }
  0x20   : > { %1247 = vmatpush3.bf16.msra.mxu0 %v1399_v15  ;;  %1360 = vmatpush3.bf16.msra.mxu1 %v1399_v15 }
  0x21   : > { %1248 = vmatprep.subr.bf16.mxu0 %v1400_v16  ;;  %1353 = vmatprep.subr.bf16.mxu1 %v1400_v16 }
  0x24   : > { %1249 = vmatpush3.bf16.msra.mxu0 %v1401_v17  ;;  %1361 = vmatpush3.bf16.msra.mxu1 %v1401_v17 }
  0x27   : > { %589 = vmatmul.mubr.bf16.vlgmr.msra.gmra.mrb[0].mxu0 %v1402_v18  ;;  %653 = vmatmul.mubr.bf16.vlgmr.msra.gmra.mrb[0].mxu1 %v1405_v19 }
  0x28   : > { %596 = vmatprep.mubr.bf16.mxu0 %v1408_v20  ;;  %660 = vmatprep.mubr.bf16.mxu1 %v1410_v21 }
  0x2f   : > { %597 = vmatmul.mubr.bf16.gmra.mrb[4].mxu0 %v1412_v22  ;;  %661 = vmatmul.mubr.bf16.gmra.mrb[4].mxu1 %v1413_v23 }
  0x30   : > { %604 = vmatprep.mubr.bf16.mxu0 %v1414_v24  ;;  %668 = vmatprep.mubr.bf16.mxu1 %v1416_v25 }
  0x37   : > { %605 = vmatmul.mubr.bf16.gmra.mrb[8].mxu0 %v1418_v26  ;;  %669 = vmatmul.mubr.bf16.gmra.mrb[8].mxu1 %v1419_v27 }
  0x38   : > { %612 = vmatprep.mubr.bf16.mxu0 %v1420_v28  ;;  %676 = vmatprep.mubr.bf16.mxu1 %v1422_v29 }
  0x3f   : > { %613 = vmatmul.mubr.bf16.gmra.mrb[12].mxu0 %v1424_v30  ;;  %677 = vmatmul.mubr.bf16.gmra.mrb[12].mxu1 %v1425_v31 }
  0x40   : > { %620 = vmatprep.mubr.bf16.mxu0 %v1426_v32  ;;  %684 = vmatprep.mubr.bf16.mxu1 %v1428_v33 }
  0x47   : > { %621 = vmatmul.mubr.bf16.gmra.mrb[16].mxu0 %v1430_v34  ;;  %685 = vmatmul.mubr.bf16.gmra.mrb[16].mxu1 %v1431_v35 }
  0x48   : > { %628 = vmatprep.mubr.bf16.mxu0 %v1432_v36  ;;  %692 = vmatprep.mubr.bf16.mxu1 %v1434_v37 }
  0x4f   : > { %629 = vmatmul.mubr.bf16.gmra.mrb[20].mxu0 %v1436_v38  ;;  %693 = vmatmul.mubr.bf16.gmra.mrb[20].mxu1 %v1437_v39 }
  0x50   : > { %636 = vmatprep.mubr.bf16.mxu0 %v1438_v40  ;;  %700 = vmatprep.mubr.bf16.mxu1 %v1440_v41 }
  0x57   : > { %637 = vmatmul.mubr.bf16.gmra.mrb[24].mxu0 %v1442_v42  ;;  %701 = vmatmul.mubr.bf16.gmra.mrb[24].mxu1 %v1443_v43 }
  0x58   : > { %644 = vmatprep.mubr.bf16.mxu0 %v1444_v44  ;;  %708 = vmatprep.mubr.bf16.mxu1 %v1446_v45 }
  0x5f   : > { %645 = vmatmul.mubr.bf16.gmra.mrb[28].mxu0 %v1448_v46  ;;  %709 = vmatmul.mubr.bf16.gmra.mrb[28].mxu1 %v1449_v47 }
  0xfa   : > { %v1250_v48 = vpop.f32.mrb[0].mxu0  ;;  %v1298_v49 = vpop.f32.mrb[0].mxu1 }
  0xfb   : > { %v1251_v51 = vpop.f32.mrb[1].mxu0  ;;  %v1299_v52 = vpop.f32.mrb[1].mxu1 }
  0xfc   : > { %v1252_v53 = vadd.f32 %v1251_v51, %v1250_v48  ;;  %v1300_v54 = vadd.f32 %v1299_v52, %v1298_v49  ;;  %v1253_v55 = vpop.f32.mrb[2].mxu0  ;;  %v1301_v56 = vpop.f32.mrb[2].mxu1 }
  0xfd   : > { %v1254_v57 = vpop.f32.mrb[3].mxu0  ;;  %v1302_v58 = vpop.f32.mrb[3].mxu1 }
  0xfe   : > { %v591_v59 = vadd.f32 %v1252_v53, %v1603_v50  ;;  %v655_v60 = vadd.f32 %v1300_v54, %v1603_v50  ;;  %v1255_v61 = vadd.f32 %v1254_v57, %v1253_v55  ;;  %v1303_v62 = vadd.f32 %v1302_v58, %v1301_v56 }
 0x100   : > { %v594_v63 = vadd.f32 %v1255_v61, %v1603_v50  ;;  %v658_v0 = vadd.f32 %v1303_v62, %v1603_v50  ;;  %v717_v1 = vmax.f32 %v591_v59, 0.0  ;;  %v733_v2 = vmax.f32 %v655_v60, 0.0 }
 0x102   : > { %v718_v3 = vmax.f32 %v594_v63, 0.0  ;;  %v734_v4 = vmax.f32 %v658_v0, 0.0  ;;  %v1256_v5 = vpop.f32.mrb[4].mxu0  ;;  %v1304_v6 = vpop.f32.mrb[4].mxu1 }
 0x103   : > { %v1257_v7 = vpop.f32.mrb[5].mxu0  ;;  %v1305_v8 = vpop.f32.mrb[5].mxu1 }
 0x104   : > { %v1142_v9 = vpack.c.bf16 %v718_v3, %v717_v1  ;;  %v1182_v10 = vpack.c.bf16 %v734_v4, %v733_v2  ;;  %v1258_v11 = vadd.f32 %v1257_v7, %v1256_v5  ;;  %v1306_v12 = vadd.f32 %v1305_v8, %v1304_v6  ;;  %v1259_v13 = vpop.f32.mrb[6].mxu0  ;;  %v1307_v14 = vpop.f32.mrb[6].mxu1 }
 0x105   : > { %v1260_v15 = vpop.f32.mrb[7].mxu0  ;;  %v1308_v16 = vpop.f32.mrb[7].mxu1 }
 0x106   : > { %1143 = vst [vmem:[%s1613_s8] sm:$0xff] %v1142_v9   ;;  %1226 = vst [vmem:[%s1613_s8 + $0x40] sm:$0xff] %v1182_v10   ;;  %v599_v17 = vadd.f32 %v1258_v11, %v1603_v50  ;;  %v663_v18 = vadd.f32 %v1306_v12, %v1603_v50  ;;  %v1261_v19 = vadd.f32 %v1260_v15, %v1259_v13 }
 0x107   : > { %v1309_v20 = vadd.f32 %v1308_v16, %v1307_v14 }
 0x108   : > { %v602_v21 = vadd.f32 %v1261_v19, %v1603_v50  ;;  %v719_v23 = vmax.f32 %v599_v17, 0.0  ;;  %v735_v24 = vmax.f32 %v663_v18, 0.0 }
 0x109   : > { %v666_v22 = vadd.f32 %v1309_v20, %v1603_v50 }
 0x10a   : > { %v720_v25 = vmax.f32 %v602_v21, 0.0  ;;  %v1262_v27 = vpop.f32.mrb[8].mxu0  ;;  %v1310_v28 = vpop.f32.mrb[8].mxu1 }
 0x10b   : > { %v736_v26 = vmax.f32 %v666_v22, 0.0  ;;  %v1263_v29 = vpop.f32.mrb[9].mxu0  ;;  %v1311_v30 = vpop.f32.mrb[9].mxu1 }
 0x10c   : > { %v1147_v31 = vpack.c.bf16 %v720_v25, %v719_v23  ;;  %v1264_v33 = vadd.f32 %v1263_v29, %v1262_v27  ;;  %v1312_v34 = vadd.f32 %v1311_v30, %v1310_v28  ;;  %v1265_v35 = vpop.f32.mrb[10].mxu0  ;;  %v1313_v36 = vpop.f32.mrb[10].mxu1 }
 0x10d   : > { %v1187_v32 = vpack.c.bf16 %v736_v26, %v735_v24  ;;  %v1266_v37 = vpop.f32.mrb[11].mxu0  ;;  %v1314_v38 = vpop.f32.mrb[11].mxu1 }
 0x10e   : > { %1219 = vst [vmem:[%s1613_s8 + $0x8] sm:$0xff] %v1147_v31   ;;  %v607_v39 = vadd.f32 %v1264_v33, %v1603_v50  ;;  %v671_v40 = vadd.f32 %v1312_v34, %v1603_v50  ;;  %v1267_v41 = vadd.f32 %v1266_v37, %v1265_v35  ;;  %v1315_v42 = vadd.f32 %v1314_v38, %v1313_v36 }
 0x10f   : > { %1227 = vst [vmem:[%s1613_s8 + $0x48] sm:$0xff] %v1187_v32  }
 0x110   : > { %v610_v43 = vadd.f32 %v1267_v41, %v1603_v50  ;;  %v674_v44 = vadd.f32 %v1315_v42, %v1603_v50  ;;  %v721_v45 = vmax.f32 %v607_v39, 0.0  ;;  %v737_v46 = vmax.f32 %v671_v40, 0.0 }
 0x112   : > { %v722_v47 = vmax.f32 %v610_v43, 0.0  ;;  %v738_v48 = vmax.f32 %v674_v44, 0.0  ;;  %v1268_v49 = vpop.f32.mrb[12].mxu0  ;;  %v1316_v51 = vpop.f32.mrb[12].mxu1 }
 0x113   : > { %v1269_v52 = vpop.f32.mrb[13].mxu0  ;;  %v1317_v53 = vpop.f32.mrb[13].mxu1 }
 0x114   : > { %v1152_v54 = vpack.c.bf16 %v722_v47, %v721_v45  ;;  %v1192_v55 = vpack.c.bf16 %v738_v48, %v737_v46  ;;  %v1270_v56 = vadd.f32 %v1269_v52, %v1268_v49  ;;  %v1318_v57 = vadd.f32 %v1317_v53, %v1316_v51  ;;  %v1271_v58 = vpop.f32.mrb[14].mxu0  ;;  %v1319_v59 = vpop.f32.mrb[14].mxu1 }
 0x115   : > { %v1272_v60 = vpop.f32.mrb[15].mxu0  ;;  %v1320_v61 = vpop.f32.mrb[15].mxu1 }
 0x116   : > { %1220 = vst [vmem:[%s1613_s8 + $0x10] sm:$0xff] %v1152_v54   ;;  %1228 = vst [vmem:[%s1613_s8 + $0x50] sm:$0xff] %v1192_v55   ;;  %v615_v62 = vadd.f32 %v1270_v56, %v1603_v50  ;;  %v679_v63 = vadd.f32 %v1318_v57, %v1603_v50  ;;  %v1273_v0 = vadd.f32 %v1272_v60, %v1271_v58 }
 0x117   : > { %v1321_v1 = vadd.f32 %v1320_v61, %v1319_v59 }
 0x118   : > { %v618_v2 = vadd.f32 %v1273_v0, %v1603_v50  ;;  %v723_v4 = vmax.f32 %v615_v62, 0.0  ;;  %v739_v5 = vmax.f32 %v679_v63, 0.0 }
 0x119   : > { %v682_v3 = vadd.f32 %v1321_v1, %v1603_v50 }
 0x11a   : > { %v724_v6 = vmax.f32 %v618_v2, 0.0  ;;  %v1274_v8 = vpop.f32.mrb[16].mxu0  ;;  %v1322_v9 = vpop.f32.mrb[16].mxu1 }
 0x11b   : > { %v740_v7 = vmax.f32 %v682_v3, 0.0  ;;  %v1275_v10 = vpop.f32.mrb[17].mxu0  ;;  %v1323_v11 = vpop.f32.mrb[17].mxu1 }
 0x11c   : > { %v1157_v12 = vpack.c.bf16 %v724_v6, %v723_v4  ;;  %v1276_v14 = vadd.f32 %v1275_v10, %v1274_v8  ;;  %v1324_v15 = vadd.f32 %v1323_v11, %v1322_v9  ;;  %v1277_v16 = vpop.f32.mrb[18].mxu0  ;;  %v1325_v17 = vpop.f32.mrb[18].mxu1 }
 0x11d   : > { %v1197_v13 = vpack.c.bf16 %v740_v7, %v739_v5  ;;  %v1278_v18 = vpop.f32.mrb[19].mxu0  ;;  %v1326_v19 = vpop.f32.mrb[19].mxu1 }
 0x11e   : > { %1221 = vst [vmem:[%s1613_s8 + $0x18] sm:$0xff] %v1157_v12   ;;  %v623_v20 = vadd.f32 %v1276_v14, %v1603_v50  ;;  %v687_v21 = vadd.f32 %v1324_v15, %v1603_v50  ;;  %v1279_v22 = vadd.f32 %v1278_v18, %v1277_v16  ;;  %v1327_v23 = vadd.f32 %v1326_v19, %v1325_v17 }
 0x11f   : > { %1229 = vst [vmem:[%s1613_s8 + $0x58] sm:$0xff] %v1197_v13  }
 0x120   : > { %v626_v24 = vadd.f32 %v1279_v22, %v1603_v50  ;;  %v690_v25 = vadd.f32 %v1327_v23, %v1603_v50  ;;  %v725_v26 = vmax.f32 %v623_v20, 0.0  ;;  %v741_v27 = vmax.f32 %v687_v21, 0.0 }
 0x122   : > { %v726_v28 = vmax.f32 %v626_v24, 0.0  ;;  %v742_v29 = vmax.f32 %v690_v25, 0.0  ;;  %v1280_v30 = vpop.f32.mrb[20].mxu0  ;;  %v1328_v31 = vpop.f32.mrb[20].mxu1 }
 0x123   : > { %v1281_v32 = vpop.f32.mrb[21].mxu0  ;;  %v1329_v33 = vpop.f32.mrb[21].mxu1 }
 0x124   : > { %v1162_v34 = vpack.c.bf16 %v726_v28, %v725_v26  ;;  %v1202_v35 = vpack.c.bf16 %v742_v29, %v741_v27  ;;  %v1282_v36 = vadd.f32 %v1281_v32, %v1280_v30  ;;  %v1330_v37 = vadd.f32 %v1329_v33, %v1328_v31  ;;  %v1283_v38 = vpop.f32.mrb[22].mxu0  ;;  %v1331_v39 = vpop.f32.mrb[22].mxu1 }
 0x125   : > { %v1284_v40 = vpop.f32.mrb[23].mxu0  ;;  %v1332_v41 = vpop.f32.mrb[23].mxu1 }
 0x126   : > { %1222 = vst [vmem:[%s1613_s8 + $0x20] sm:$0xff] %v1162_v34   ;;  %1230 = vst [vmem:[%s1613_s8 + $0x60] sm:$0xff] %v1202_v35   ;;  %v631_v42 = vadd.f32 %v1282_v36, %v1603_v50  ;;  %v695_v43 = vadd.f32 %v1330_v37, %v1603_v50  ;;  %v1285_v44 = vadd.f32 %v1284_v40, %v1283_v38 }
 0x127   : > { %v1333_v45 = vadd.f32 %v1332_v41, %v1331_v39 }
 0x128   : > { %v634_v46 = vadd.f32 %v1285_v44, %v1603_v50  ;;  %v727_v48 = vmax.f32 %v631_v42, 0.0  ;;  %v743_v49 = vmax.f32 %v695_v43, 0.0 }
 0x129   : > { %v698_v47 = vadd.f32 %v1333_v45, %v1603_v50 }
 0x12a   : > { %v728_v51 = vmax.f32 %v634_v46, 0.0  ;;  %v1286_v53 = vpop.f32.mrb[24].mxu0  ;;  %v1334_v54 = vpop.f32.mrb[24].mxu1 }
 0x12b   : > { %v744_v52 = vmax.f32 %v698_v47, 0.0  ;;  %v1287_v55 = vpop.f32.mrb[25].mxu0  ;;  %v1335_v56 = vpop.f32.mrb[25].mxu1 }
 0x12c   : > { %v1167_v57 = vpack.c.bf16 %v728_v51, %v727_v48  ;;  %v1288_v59 = vadd.f32 %v1287_v55, %v1286_v53  ;;  %v1336_v60 = vadd.f32 %v1335_v56, %v1334_v54  ;;  %v1289_v61 = vpop.f32.mrb[26].mxu0  ;;  %v1337_v62 = vpop.f32.mrb[26].mxu1 }
 0x12d   : > { %v1207_v58 = vpack.c.bf16 %v744_v52, %v743_v49  ;;  %v1290_v63 = vpop.f32.mrb[27].mxu0  ;;  %v1338_v0 = vpop.f32.mrb[27].mxu1 }
 0x12e   : > { %1223 = vst [vmem:[%s1613_s8 + $0x28] sm:$0xff] %v1167_v57   ;;  %v639_v1 = vadd.f32 %v1288_v59, %v1603_v50  ;;  %v703_v2 = vadd.f32 %v1336_v60, %v1603_v50  ;;  %v1291_v3 = vadd.f32 %v1290_v63, %v1289_v61  ;;  %v1339_v4 = vadd.f32 %v1338_v0, %v1337_v62 }
 0x12f   : > { %1231 = vst [vmem:[%s1613_s8 + $0x68] sm:$0xff] %v1207_v58  }
 0x130   : > { %v642_v5 = vadd.f32 %v1291_v3, %v1603_v50  ;;  %v706_v6 = vadd.f32 %v1339_v4, %v1603_v50  ;;  %v729_v7 = vmax.f32 %v639_v1, 0.0  ;;  %v745_v8 = vmax.f32 %v703_v2, 0.0 }
 0x132   : > { %v730_v9 = vmax.f32 %v642_v5, 0.0  ;;  %v746_v10 = vmax.f32 %v706_v6, 0.0  ;;  %v1292_v11 = vpop.f32.mrb[28].mxu0  ;;  %v1340_v12 = vpop.f32.mrb[28].mxu1 }
 0x133   : > { %v1293_v13 = vpop.f32.mrb[29].mxu0  ;;  %v1341_v14 = vpop.f32.mrb[29].mxu1 }
 0x134   : > { %v1172_v15 = vpack.c.bf16 %v730_v9, %v729_v7  ;;  %v1212_v16 = vpack.c.bf16 %v746_v10, %v745_v8  ;;  %v1294_v17 = vadd.f32 %v1293_v13, %v1292_v11  ;;  %v1342_v18 = vadd.f32 %v1341_v14, %v1340_v12  ;;  %v1295_v19 = vpop.f32.mrb[30].mxu0  ;;  %v1343_v20 = vpop.f32.mrb[30].mxu1 }
 0x135   : > { %v1296_v21 = vpop.f32.mrb[31].mxu0  ;;  %v1344_v22 = vpop.f32.mrb[31].mxu1 }
 0x136   : > { %1224 = vst [vmem:[%s1613_s8 + $0x30] sm:$0xff] %v1172_v15   ;;  %1232 = vst [vmem:[%s1613_s8 + $0x70] sm:$0xff] %v1212_v16   ;;  %v647_v23 = vadd.f32 %v1294_v17, %v1603_v50  ;;  %v711_v24 = vadd.f32 %v1342_v18, %v1603_v50  ;;  %v1297_v25 = vadd.f32 %v1296_v21, %v1295_v19 }
 0x137   : > { %v1345_v26 = vadd.f32 %v1344_v22, %v1343_v20 }
 0x138   : > { %v650_v27 = vadd.f32 %v1297_v25, %v1603_v50  ;;  %v731_v29 = vmax.f32 %v647_v23, 0.0  ;;  %v747_v30 = vmax.f32 %v711_v24, 0.0 }
 0x139   : > { %v714_v28 = vadd.f32 %v1345_v26, %v1603_v50 }
 0x13a   : > { %v732_v31 = vmax.f32 %v650_v27, 0.0 }
 0x13b   : > { %v748_v32 = vmax.f32 %v714_v28, 0.0 }
 0x13c   : > { %v1177_v33 = vpack.c.bf16 %v732_v31, %v731_v29 }
 0x13d   : > { %v1217_v34 = vpack.c.bf16 %v748_v32, %v747_v30 }
 0x13e   : > { %1225 = vst [vmem:[%s1613_s8 + $0x38] sm:$0xff] %v1177_v33  }
 0x13f   : > { %1233 = vst [vmem:[%s1613_s8 + $0x78] sm:$0xff] %v1217_v34  }
 0x140 PF: > { %s13_s14 = sadd.s32 1, %s1472_s14   ;;  %s1672_s12 = smov %s1468_s13 }
 0x141   : > { %p10_p5 = scmp.ge.s32.totalorder %s13_s14, 4   ;;  %s1673_s13 = smov %s1675_s15 }
 0x143   :  { %12 = sbr.rel (!%p10_p5) target bundleno = 2 (0x2), region = 68 }

// kernel: plate_classification_forward.20
= control target key start
LH: loop header
LB: loop body
LE: loop exit
PB: predicated region body
PF: predicated region fallthrough
CT: control target
= control target key end

     0   :  { %s969_s6 = smov 0   ;;  %s971_s7 = smov 0   ;;  %s1253_s0 = inlined_call_operand.vmem [shape: bf16[9,128,128], index: 0, kind: input, shape index: {}]   ;;  %s1254_s1 = inlined_call_operand.vmem [shape: bf16[128,128], index: 1, kind: output, shape index: {}]  }
   0x1   :  { %s973_s8 = smov 0  }
   0x2 LB: > { %s870_s9 = sadd.s32 4294967295, %s957_s8   ;;  %s986_s10 = sadd.s32 1, %s957_s8   ;;  %s957_s8 = sphi %s973_s8, %s1257_s8   ;;  %s953_s7 = sphi %s971_s7, %s1256_s7   ;;  %s949_s6 = sphi %s969_s6, %s1255_s6  }
   0x3   : > { %s15_s11 = ssub.s32 %s957_s8, %s986_s10  ;;  %s18_s12 = sadd.s32 1, %s953_s7 }
   0x4   : > { %p16_p0 = scmp.eq.s32.totalorder %s15_s11, 0  ;;  %p25_p1 = scmp.ne.s32.totalorder %s953_s7, %s949_s6 }
   0x5   : > { %p26_p2 = scmp.eq.s32.totalorder %s957_s8, 0  ;;  %p873_p4 = scmp.ge.s32.totalorder %s957_s8, 2 }
   0x6   : > { %s995_s13 = scalar_select %p16_p0, %s953_s7, %s18_s12  }
   0x7   : > { %p27_p3 = por %p26_p2, %p25_p1  ;;  %77 = sbr.rel (%p873_p4) target bundleno = 37 (0x25), region = 16 }
   0xe   : > { %80 = sbr.rel (!%p27_p3) target bundleno = 37 (0x25), region = 20  ;;  %s82_s14 = sand.u32 (%p27_p3), 1, %s953_s7  }
   0xf   : > { %s881_s15 = sshll.u32 (%p27_p3), %s957_s8, 5  ;;  %s909_s16 = smul.u32 (%p27_p3), 288, %s82_s14 }
  0x10   : > { %s1003_s19 = scalar_lea.vmem (%p27_p3), %s1253_s0, %s881_s15 }
  0x11   : > { %v103_v0 = vld [vmem:[%s1003_s19] sm:$0xff] (%p27_p3)   ;;  %v107_v1 = vld [vmem:[%s1003_s19 + $0x8] sm:$0xff] (%p27_p3)   ;;  %v111_v2 = vld [vmem:[%s1003_s19 + $0x10] sm:$0xff] (%p27_p3)   ;;  %s1011_s20 = scalar_lea.vmem (%p27_p3), [#allocation2], %s909_s16 }
  0x12   : > { %v115_v3 = vld [vmem:[%s1003_s19 + $0x18] sm:$0xff] (%p27_p3)   ;;  %v119_v4 = vld [vmem:[%s1003_s19 + $0x40] sm:$0xff] (%p27_p3)   ;;  %v123_v5 = vld [vmem:[%s1003_s19 + $0x48] sm:$0xff] (%p27_p3)   ;;  %104 = vst [vmem:[%s1011_s20] sm:$0xff] (%p27_p3), %v103_v0  }
  0x13   : > { %108 = vst [vmem:[%s1011_s20 + $0x8] sm:$0xff] (%p27_p3), %v107_v1   ;;  %112 = vst [vmem:[%s1011_s20 + $0x10] sm:$0xff] (%p27_p3), %v111_v2   ;;  %v127_v6 = vld [vmem:[%s1003_s19 + $0x50] sm:$0xff] (%p27_p3)   ;;  %v131_v7 = vld [vmem:[%s1003_s19 + $0x58] sm:$0xff] (%p27_p3)  }
  0x14   : > { %116 = vst [vmem:[%s1011_s20 + $0x18] sm:$0xff] (%p27_p3), %v115_v3   ;;  %120 = vst [vmem:[%s1011_s20 + $0x20] sm:$0xff] (%p27_p3), %v119_v4   ;;  %v135_v8 = vld [vmem:[%s1003_s19 + $0x80] sm:$0xff] (%p27_p3)   ;;  %v139_v9 = vld [vmem:[%s1003_s19 + $0x88] sm:$0xff] (%p27_p3)  }
  0x15   : > { %124 = vst [vmem:[%s1011_s20 + $0x28] sm:$0xff] %v123_v5   ;;  %128 = vst [vmem:[%s1011_s20 + $0x30] sm:$0xff] %v127_v6   ;;  %v143_v10 = vld [vmem:[%s1003_s19 + $0x90] sm:$0xff]   ;;  %v147_v11 = vld [vmem:[%s1003_s19 + $0x98] sm:$0xff]  }
  0x16   : > { %132 = vst [vmem:[%s1011_s20 + $0x38] sm:$0xff] %v131_v7   ;;  %136 = vst [vmem:[%s1011_s20 + $0x40] sm:$0xff] %v135_v8   ;;  %v151_v12 = vld [vmem:[%s1003_s19 + $0xc0] sm:$0xff]   ;;  %v155_v13 = vld [vmem:[%s1003_s19 + $0xc8] sm:$0xff]  }
  0x17   : > { %140 = vst [vmem:[%s1011_s20 + $0x48] sm:$0xff] %v139_v9   ;;  %144 = vst [vmem:[%s1011_s20 + $0x50] sm:$0xff] %v143_v10   ;;  %v159_v14 = vld [vmem:[%s1003_s19 + $0xd0] sm:$0xff]   ;;  %v163_v15 = vld [vmem:[%s1003_s19 + $0xd8] sm:$0xff]  }
  0x18   : > { %148 = vst [vmem:[%s1011_s20 + $0x58] sm:$0xff] %v147_v11   ;;  %152 = vst [vmem:[%s1011_s20 + $0x60] sm:$0xff] %v151_v12   ;;  %v167_v16 = vld [vmem:[%s1003_s19 + $0x100] sm:$0xff]   ;;  %v171_v17 = vld [vmem:[%s1003_s19 + $0x108] sm:$0xff]  }
  0x19   : > { %156 = vst [vmem:[%s1011_s20 + $0x68] sm:$0xff] %v155_v13   ;;  %160 = vst [vmem:[%s1011_s20 + $0x70] sm:$0xff] %v159_v14   ;;  %v175_v18 = vld [vmem:[%s1003_s19 + $0x110] sm:$0xff]   ;;  %v179_v19 = vld [vmem:[%s1003_s19 + $0x118] sm:$0xff]  }
  0x1a   : > { %164 = vst [vmem:[%s1011_s20 + $0x78] sm:$0xff] %v163_v15   ;;  %168 = vst [vmem:[%s1011_s20 + $0x80] sm:$0xff] %v167_v16   ;;  %v183_v20 = vld [vmem:[%s1003_s19 + $0x140] sm:$0xff]   ;;  %v187_v21 = vld [vmem:[%s1003_s19 + $0x148] sm:$0xff]  }
  0x1b   : > { %172 = vst [vmem:[%s1011_s20 + $0x88] sm:$0xff] %v171_v17   ;;  %176 = vst [vmem:[%s1011_s20 + $0x90] sm:$0xff] %v175_v18   ;;  %v191_v22 = vld [vmem:[%s1003_s19 + $0x150] sm:$0xff]   ;;  %v195_v23 = vld [vmem:[%s1003_s19 + $0x158] sm:$0xff]  }
  0x1c   : > { %180 = vst [vmem:[%s1011_s20 + $0x98] sm:$0xff] %v179_v19   ;;  %184 = vst [vmem:[%s1011_s20 + $0xa0] sm:$0xff] %v183_v20   ;;  %v199_v24 = vld [vmem:[%s1003_s19 + $0x180] sm:$0xff]   ;;  %v203_v25 = vld [vmem:[%s1003_s19 + $0x188] sm:$0xff]  }
  0x1d   : > { %188 = vst [vmem:[%s1011_s20 + $0xa8] sm:$0xff] %v187_v21   ;;  %192 = vst [vmem:[%s1011_s20 + $0xb0] sm:$0xff] %v191_v22   ;;  %v207_v26 = vld [vmem:[%s1003_s19 + $0x190] sm:$0xff]   ;;  %v211_v27 = vld [vmem:[%s1003_s19 + $0x198] sm:$0xff]  }
  0x1e   : > { %196 = vst [vmem:[%s1011_s20 + $0xb8] sm:$0xff] %v195_v23   ;;  %200 = vst [vmem:[%s1011_s20 + $0xc0] sm:$0xff] %v199_v24   ;;  %v215_v28 = vld [vmem:[%s1003_s19 + $0x1c0] sm:$0xff]   ;;  %v219_v29 = vld [vmem:[%s1003_s19 + $0x1c8] sm:$0xff]  }
  0x1f   : > { %204 = vst [vmem:[%s1011_s20 + $0xc8] sm:$0xff] %v203_v25   ;;  %208 = vst [vmem:[%s1011_s20 + $0xd0] sm:$0xff] %v207_v26   ;;  %v223_v30 = vld [vmem:[%s1003_s19 + $0x1d0] sm:$0xff]   ;;  %v227_v31 = vld [vmem:[%s1003_s19 + $0x1d8] sm:$0xff]  }
  0x20   : > { %212 = vst [vmem:[%s1011_s20 + $0xd8] sm:$0xff] %v211_v27   ;;  %216 = vst [vmem:[%s1011_s20 + $0xe0] sm:$0xff] %v215_v28   ;;  %v231_v32 = vld [vmem:[%s1003_s19 + $0x200] sm:$0xff]   ;;  %v235_v33 = vld [vmem:[%s1003_s19 + $0x208] sm:$0xff]  }
  0x21   : > { %220 = vst [vmem:[%s1011_s20 + $0xe8] sm:$0xff] %v219_v29   ;;  %224 = vst [vmem:[%s1011_s20 + $0xf0] sm:$0xff] %v223_v30   ;;  %v239_v34 = vld [vmem:[%s1003_s19 + $0x210] sm:$0xff]   ;;  %v243_v35 = vld [vmem:[%s1003_s19 + $0x218] sm:$0xff]  }
  0x22   : > { %228 = vst [vmem:[%s1011_s20 + $0xf8] sm:$0xff] %v227_v31   ;;  %232 = vst [vmem:[%s1011_s20 + $0x100] sm:$0xff] %v231_v32  }
  0x23   : > { %236 = vst [vmem:[%s1011_s20 + $0x108] sm:$0xff] %v235_v33   ;;  %240 = vst [vmem:[%s1011_s20 + $0x110] sm:$0xff] %v239_v34  }
  0x24   : > { %244 = vst [vmem:[%s1011_s20 + $0x118] sm:$0xff] %v243_v35  }
  0x25 PF: > { %p876_p5 = scmp.ge.s32.totalorder %s957_s8, 1  ;;  %p412_p6 = scmp.lt.s32.totalorder %s957_s8, 3 }
  0x27   : > { %p413_p7 = pnand %p876_p5, %p412_p6 }
  0x28   : > { %s419_s21 = sand.u32 (!%p413_p7), 1, %s949_s6   ;;  %vm518_vm0 = vcmask (!%p413_p7), 1043456   ;;  %s877_s24 = sshll.u32 (!%p413_p7), %s870_s9, 3 }
  0x29   : > { %416 = sbr.rel (%p413_p7) target bundleno = 107 (0x6b), region = 61  ;;  %p440_p8 = scmp.lt.s32.totalorder (!%p413_p7), %s877_s24, 15 }
  0x2a   : > { %s910_s22 = smul.u32 (!%p413_p7), 288, %s419_s21 }
  0x2c   : > { %s1082_s23 = scalar_lea.vmem (!%p413_p7), [#allocation2], %s910_s22 }
  0x2d   : > { %v446_v36 = vld [vmem:[%s1082_s23] sm:$0xf] (!%p413_p7)  ;;  %v447_v39 = vld [vmem:[%s1082_s23 + $0x4] sm:$0xf] (!%p413_p7)  ;;  %v448_v10 = vld [vmem:[%s1082_s23 + $0x8] sm:$0xf] (!%p413_p7) }
  0x2e   : > { %v454_v37 = vld [vmem:[%s1082_s23 + $0x20] sm:$0xf] (!%p413_p7)  ;;  %v455_v40 = vld [vmem:[%s1082_s23 + $0x24] sm:$0xf] (!%p413_p7)  ;;  %v521_v42 = vsel (!%p413_p7), %vm518_vm0, %v446_v36, 4286644096 }
  0x2f   : > { %v462_v38 = vld [vmem:[%s1082_s23 + $0x40] sm:$0xf] (!%p413_p7)  ;;  %v463_v43 = vld [vmem:[%s1082_s23 + $0x44] sm:$0xf] (!%p413_p7)  ;;  %v524_v44 = vsel (!%p413_p7), %vm518_vm0, %v454_v37, 4286644096 }
  0x30   : > { %v470_v41 = vld [vmem:[%s1082_s23 + $0x60] sm:$0xf]  ;;  %v528_v45 = vsel %vm518_vm0, %v462_v38, 4286644096  ;;  %v526_v47 = vmax.bf16 %v524_v44, %v521_v42  ;;  %v471_v48 = vld [vmem:[%s1082_s23 + $0x64] sm:$0xf] }
  0x31   : > { %v478_v46 = vld [vmem:[%s1082_s23 + $0x80] sm:$0xf]  ;;  %v532_v49 = vsel %vm518_vm0, %v470_v41, 4286644096  ;;  %v556_v50 = vsel %vm518_vm0, %v447_v39, 4286644096 }
  0x32   : > { %v486_v51 = vld [vmem:[%s1082_s23 + $0xa0] sm:$0xf]  ;;  %v530_v52 = vmax.bf16 %v528_v45, %v526_v47  ;;  %v559_v53 = vsel %vm518_vm0, %v455_v40, 4286644096  ;;  %v563_v54 = vsel %vm518_vm0, %v463_v43, 4286644096 }
  0x33   : > { %v479_v55 = vld [vmem:[%s1082_s23 + $0x84] sm:$0xf]  ;;  %v536_v56 = vsel %vm518_vm0, %v478_v46, 4286644096  ;;  %v561_v57 = vmax.bf16 %v559_v53, %v556_v50  ;;  %v494_v58 = vld [vmem:[%s1082_s23 + $0xc0] sm:$0xf] }
  0x34   : > { %v502_v59 = vld [vmem:[%s1082_s23 + $0xe0] sm:$0xf]  ;;  %v534_v60 = vmax.bf16 %v532_v49, %v530_v52  ;;  %v567_v61 = vsel %vm518_vm0, %v471_v48, 4286644096  ;;  %s1259_s24 = smov (!%p440_p8, %s877_s24), 15 }
  0x35   : > { %v487_v62 = vld [vmem:[%s1082_s23 + $0xa4] sm:$0xf]  ;;  %v540_v63 = vsel %vm518_vm0, %v486_v51, 4286644096  ;;  %v565_v0 = vmax.bf16 %v563_v54, %v561_v57  ;;  %v510_v2 = vld [vmem:[%s1082_s23 + $0x100] sm:$0xf] }
  0x36   : > { %v495_v1 = vld [vmem:[%s1082_s23 + $0xc4] sm:$0xf]  ;;  %v538_v3 = vmax.bf16 %v536_v56, %v534_v60  ;;  %v571_v4 = vsel %vm518_vm0, %v479_v55, 4286644096  ;;  %v544_v7 = vsel %vm518_vm0, %v494_v58, 4286644096 }
  0x37   : > { %v503_v5 = vld [vmem:[%s1082_s23 + $0xe4] sm:$0xf]  ;;  %v548_v8 = vsel %vm518_vm0, %v502_v59, 4286644096  ;;  %v569_v9 = vmax.bf16 %v567_v61, %v565_v0  ;;  %v575_v12 = vsel %vm518_vm0, %v487_v62, 4286644096 }
  0x38   : > { %v511_v6 = vld [vmem:[%s1082_s23 + $0x104] sm:$0xf]  ;;  %v542_v11 = vmax.bf16 %v540_v63, %v538_v3  ;;  %v456_v13 = vld [vmem:[%s1082_s23 + $0x28] sm:$0xf]  ;;  %v552_v15 = vsel %vm518_vm0, %v510_v2, 4286644096 }
  0x39   : > { %v464_v14 = vld [vmem:[%s1082_s23 + $0x48] sm:$0xf]  ;;  %v573_v16 = vmax.bf16 %v571_v4, %v569_v9  ;;  %v579_v17 = vsel %vm518_vm0, %v495_v1, 4286644096  ;;  %v449_v18 = vld [vmem:[%s1082_s23 + $0xc] sm:$0xf] }
  0x3a   : > { %v546_v19 = vmax.bf16 %v544_v7, %v542_v11  ;;  %v457_v20 = vld [vmem:[%s1082_s23 + $0x2c] sm:$0xf]  ;;  %v472_v21 = vld [vmem:[%s1082_s23 + $0x68] sm:$0xf]  ;;  %v591_v22 = vsel %vm518_vm0, %v448_v10, 4286644096 }
  0x3b   : > { %v577_v23 = vmax.bf16 %v575_v12, %v573_v16  ;;  %v480_v24 = vld [vmem:[%s1082_s23 + $0x88] sm:$0xf]  ;;  %v594_v25 = vsel %vm518_vm0, %v456_v13, 4286644096  ;;  %v598_v26 = vsel %vm518_vm0, %v464_v14, 4286644096 }
  0x3c   : > { %v550_v27 = vmax.bf16 %v548_v8, %v546_v19  ;;  %v583_v28 = vsel %vm518_vm0, %v503_v5, 4286644096  ;;  %v587_v29 = vsel %vm518_vm0, %v511_v6, 4286644096  ;;  %v465_v30 = vld [vmem:[%s1082_s23 + $0x4c] sm:$0xf]  ;;  %v596_v31 = vmax.bf16 %v594_v25, %v591_v22 }
  0x3d   : > { %v581_v32 = vmax.bf16 %v579_v17, %v577_v23  ;;  %v473_v33 = vld [vmem:[%s1082_s23 + $0x6c] sm:$0xf]  ;;  %v488_v34 = vld [vmem:[%s1082_s23 + $0xa8] sm:$0xf]  ;;  %v602_v35 = vsel %vm518_vm0, %v472_v21, 4286644096 }
  0x3e   : > { %v600_v36 = vmax.bf16 %v598_v26, %v596_v31  ;;  %v606_v37 = vsel %vm518_vm0, %v480_v24, 4286644096  ;;  %v626_v38 = vsel %vm518_vm0, %v449_v18, 4286644096  ;;  %v629_v39 = vsel %vm518_vm0, %v457_v20, 4286644096 }
  0x3f   : > { %s878_s25 = sshll.u32 %s1259_s24, 2  ;;  %v554_v40 = vmax.bf16 %v552_v15, %v550_v27  ;;  %v585_v41 = vmax.bf16 %v583_v28, %v581_v32  ;;  %v481_v42 = vld [vmem:[%s1082_s23 + $0x8c] sm:$0xf]  ;;  %v631_v43 = vmax.bf16 %v629_v39, %v626_v38  ;;  %v633_v44 = vsel %vm518_vm0, %v465_v30, 4286644096 }
  0x40   : > { %v496_v45 = vld [vmem:[%s1082_s23 + $0xc8] sm:$0xf]  ;;  %v604_v47 = vmax.bf16 %v602_v35, %v600_v36  ;;  %v637_v48 = vsel %vm518_vm0, %v473_v33, 4286644096  ;;  %v489_v50 = vld [vmem:[%s1082_s23 + $0xac] sm:$0xf]  ;;  %s1153_s28 = scalar_lea.vmem %s1254_s1, %s878_s25 }
  0x41   : > { %v504_v46 = vld [vmem:[%s1082_s23 + $0xe8] sm:$0xf]  ;;  %v589_v49 = vmax.bf16 %v587_v29, %v585_v41  ;;  %v610_v51 = vsel %vm518_vm0, %v488_v34, 4286644096  ;;  %v635_v52 = vmax.bf16 %v633_v44, %v631_v43  ;;  %v497_v53 = vld [vmem:[%s1082_s23 + $0xcc] sm:$0xf] }
  0x42   : > { %v512_v54 = vld [vmem:[%s1082_s23 + $0x108] sm:$0xf]  ;;  %v608_v55 = vmax.bf16 %v606_v37, %v604_v47  ;;  %v641_v56 = vsel %vm518_vm0, %v481_v42, 4286644096  ;;  %v505_v58 = vld [vmem:[%s1082_s23 + $0xec] sm:$0xf] }
  0x43   : > { %v902_v57 = vcombine.low %v554_v40, %v589_v49  ;;  %v513_v59 = vld [vmem:[%s1082_s23 + $0x10c] sm:$0xf]  ;;  %v614_v60 = vsel %vm518_vm0, %v496_v45, 4286644096  ;;  %v618_v61 = vsel %vm518_vm0, %v504_v46, 4286644096  ;;  %v639_v62 = vmax.bf16 %v637_v48, %v635_v52 }
  0x44   : > { %v450_v63 = vld [vmem:[%s1082_s23 + $0x10] sm:$0xf]  ;;  %v612_v0 = vmax.bf16 %v610_v51, %v608_v55  ;;  %v645_v1 = vsel %vm518_vm0, %v489_v50, 4286644096  ;;  %v622_v4 = vsel %vm518_vm0, %v512_v54, 4286644096 }
  0x45   : > { %v458_v2 = vld [vmem:[%s1082_s23 + $0x30] sm:$0xf]  ;;  %886 = vst [vmem:[%s1153_s28] sm:$0xff] %v902_v57   ;;  %v643_v5 = vmax.bf16 %v641_v56, %v639_v62  ;;  %v649_v6 = vsel %vm518_vm0, %v497_v53, 4286644096  ;;  %v451_v7 = vld [vmem:[%s1082_s23 + $0x14] sm:$0xf] }
  0x46   : > { %v466_v3 = vld [vmem:[%s1082_s23 + $0x50] sm:$0xf]  ;;  %v616_v8 = vmax.bf16 %v614_v60, %v612_v0  ;;  %v459_v9 = vld [vmem:[%s1082_s23 + $0x34] sm:$0xf]  ;;  %v661_v11 = vsel %vm518_vm0, %v450_v63, 4286644096 }
  0x47   : > { %v474_v10 = vld [vmem:[%s1082_s23 + $0x70] sm:$0xf]  ;;  %v647_v12 = vmax.bf16 %v645_v1, %v643_v5  ;;  %v664_v14 = vsel %vm518_vm0, %v458_v2, 4286644096  ;;  %v668_v15 = vsel %vm518_vm0, %v466_v3, 4286644096 }
  0x48   : > { %v482_v13 = vld [vmem:[%s1082_s23 + $0x90] sm:$0xf]  ;;  %v620_v16 = vmax.bf16 %v618_v61, %v616_v8  ;;  %v653_v17 = vsel %vm518_vm0, %v505_v58, 4286644096  ;;  %v657_v18 = vsel %vm518_vm0, %v513_v59, 4286644096  ;;  %v666_v20 = vmax.bf16 %v664_v14, %v661_v11 }
  0x49   : > { %v467_v19 = vld [vmem:[%s1082_s23 + $0x54] sm:$0xf]  ;;  %v651_v21 = vmax.bf16 %v649_v6, %v647_v12  ;;  %v490_v23 = vld [vmem:[%s1082_s23 + $0xb0] sm:$0xf]  ;;  %v672_v24 = vsel %vm518_vm0, %v474_v10, 4286644096 }
  0x4a   : > { %v475_v22 = vld [vmem:[%s1082_s23 + $0x74] sm:$0xf]  ;;  %v670_v25 = vmax.bf16 %v668_v15, %v666_v20  ;;  %v676_v26 = vsel %vm518_vm0, %v482_v13, 4286644096  ;;  %v696_v27 = vsel %vm518_vm0, %v451_v7, 4286644096  ;;  %v624_v29 = vmax.bf16 %v622_v4, %v620_v16 }
  0x4b   : > { %v699_v28 = vsel %vm518_vm0, %v459_v9, 4286644096  ;;  %v655_v30 = vmax.bf16 %v653_v17, %v651_v21  ;;  %v483_v31 = vld [vmem:[%s1082_s23 + $0x94] sm:$0xf]  ;;  %v703_v33 = vsel %vm518_vm0, %v467_v19, 4286644096 }
  0x4c   : > { %v701_v32 = vmax.bf16 %v699_v28, %v696_v27  ;;  %v498_v34 = vld [vmem:[%s1082_s23 + $0xd0] sm:$0xf]  ;;  %v674_v36 = vmax.bf16 %v672_v24, %v670_v25  ;;  %v707_v37 = vsel %vm518_vm0, %v475_v22, 4286644096  ;;  %v491_v39 = vld [vmem:[%s1082_s23 + $0xb4] sm:$0xf] }
  0x4d   : > { %v506_v35 = vld [vmem:[%s1082_s23 + $0xf0] sm:$0xf]  ;;  %v659_v38 = vmax.bf16 %v657_v18, %v655_v30  ;;  %v680_v40 = vsel %vm518_vm0, %v490_v23, 4286644096  ;;  %v499_v42 = vld [vmem:[%s1082_s23 + $0xd4] sm:$0xf] }
  0x4e   : > { %v705_v41 = vmax.bf16 %v703_v33, %v701_v32  ;;  %v514_v43 = vld [vmem:[%s1082_s23 + $0x110] sm:$0xf]  ;;  %v678_v44 = vmax.bf16 %v676_v26, %v674_v36  ;;  %v711_v45 = vsel %vm518_vm0, %v483_v31, 4286644096  ;;  %v507_v47 = vld [vmem:[%s1082_s23 + $0xf4] sm:$0xf] }
  0x4f   : > { %v903_v46 = vcombine.low %v624_v29, %v659_v38  ;;  %v515_v48 = vld [vmem:[%s1082_s23 + $0x114] sm:$0xf]  ;;  %v684_v49 = vsel %vm518_vm0, %v498_v34, 4286644096  ;;  %v688_v50 = vsel %vm518_vm0, %v506_v35, 4286644096 }
  0x50   : > { %v709_v51 = vmax.bf16 %v707_v37, %v705_v41  ;;  %v452_v52 = vld [vmem:[%s1082_s23 + $0x18] sm:$0xf]  ;;  %v682_v53 = vmax.bf16 %v680_v40, %v678_v44  ;;  %v715_v54 = vsel %vm518_vm0, %v491_v39, 4286644096  ;;  %v692_v57 = vsel %vm518_vm0, %v514_v43, 4286644096 }
  0x51   : > { %v460_v55 = vld [vmem:[%s1082_s23 + $0x38] sm:$0xf]  ;;  %904 = vst [vmem:[%s1153_s28 + $0x8] sm:$0xff] %v903_v46   ;;  %v719_v59 = vsel %vm518_vm0, %v499_v42, 4286644096 }
  0x52   : > { %v468_v56 = vld [vmem:[%s1082_s23 + $0x58] sm:$0xf]  ;;  %v713_v58 = vmax.bf16 %v711_v45, %v709_v51  ;;  %v453_v60 = vld [vmem:[%s1082_s23 + $0x1c] sm:$0xf]  ;;  %v686_v61 = vmax.bf16 %v684_v49, %v682_v53  ;;  %v731_v0 = vsel %vm518_vm0, %v452_v52, 4286644096 }
  0x53   : > { %v461_v62 = vld [vmem:[%s1082_s23 + $0x3c] sm:$0xf]  ;;  %v476_v63 = vld [vmem:[%s1082_s23 + $0x78] sm:$0xf]  ;;  %v734_v3 = vsel %vm518_vm0, %v460_v55, 4286644096 }
  0x54   : > { %v717_v1 = vmax.bf16 %v715_v54, %v713_v58  ;;  %v484_v2 = vld [vmem:[%s1082_s23 + $0x98] sm:$0xf]  ;;  %v738_v4 = vsel %vm518_vm0, %v468_v56, 4286644096  ;;  %v690_v5 = vmax.bf16 %v688_v50, %v686_v61  ;;  %v723_v6 = vsel %vm518_vm0, %v507_v47, 4286644096 }
  0x55   : > { %v727_v7 = vsel %vm518_vm0, %v515_v48, 4286644096  ;;  %v469_v8 = vld [vmem:[%s1082_s23 + $0x5c] sm:$0xf]  ;;  %v736_v9 = vmax.bf16 %v734_v3, %v731_v0  ;;  %v492_v12 = vld [vmem:[%s1082_s23 + $0xb8] sm:$0xf] }
  0x56   : > { %v721_v10 = vmax.bf16 %v719_v59, %v717_v1  ;;  %v477_v11 = vld [vmem:[%s1082_s23 + $0x7c] sm:$0xf]  ;;  %v742_v13 = vsel %vm518_vm0, %v476_v63, 4286644096  ;;  %v746_v15 = vsel %vm518_vm0, %v484_v2, 4286644096  ;;  %v694_v18 = vmax.bf16 %v692_v57, %v690_v5 }
  0x57   : > { %v740_v14 = vmax.bf16 %v738_v4, %v736_v9  ;;  %v766_v16 = vsel %vm518_vm0, %v453_v60, 4286644096  ;;  %v769_v17 = vsel %vm518_vm0, %v461_v62, 4286644096  ;;  %v485_v20 = vld [vmem:[%s1082_s23 + $0x9c] sm:$0xf] }
  0x58   : > { %v725_v19 = vmax.bf16 %v723_v6, %v721_v10  ;;  %v771_v21 = vmax.bf16 %v769_v17, %v766_v16  ;;  %v773_v22 = vsel %vm518_vm0, %v469_v8, 4286644096  ;;  %v500_v23 = vld [vmem:[%s1082_s23 + $0xd8] sm:$0xf]  ;;  %v777_v25 = vsel %vm518_vm0, %v477_v11, 4286644096 }
  0x59   : > { %v744_v24 = vmax.bf16 %v742_v13, %v740_v14  ;;  %v493_v27 = vld [vmem:[%s1082_s23 + $0xbc] sm:$0xf]  ;;  %v750_v28 = vsel %vm518_vm0, %v492_v12, 4286644096  ;;  %v508_v30 = vld [vmem:[%s1082_s23 + $0xf8] sm:$0xf] }
  0x5a   : > { %v729_v26 = vmax.bf16 %v727_v7, %v725_v19  ;;  %v775_v29 = vmax.bf16 %v773_v22, %v771_v21  ;;  %v781_v32 = vsel %vm518_vm0, %v485_v20, 4286644096  ;;  %v501_v34 = vld [vmem:[%s1082_s23 + $0xdc] sm:$0xf]  ;;  %v754_v35 = vsel %vm518_vm0, %v500_v23, 4286644096 }
  0x5b   : > { %v748_v31 = vmax.bf16 %v746_v15, %v744_v24  ;;  %v785_v38 = vsel %vm518_vm0, %v493_v27, 4286644096  ;;  %v509_v39 = vld [vmem:[%s1082_s23 + $0xfc] sm:$0xf]  ;;  %v516_v40 = vld [vmem:[%s1082_s23 + $0x118] sm:$0xf] }
  0x5c   : > { %v905_v33 = vcombine.low %v694_v18, %v729_v26  ;;  %v779_v36 = vmax.bf16 %v777_v25, %v775_v29  ;;  %v758_v41 = vsel %vm518_vm0, %v508_v30, 4286644096  ;;  %v789_v44 = vsel %vm518_vm0, %v501_v34, 4286644096  ;;  %v517_v45 = vld [vmem:[%s1082_s23 + $0x11c] sm:$0xf] }
  0x5d   : > { %v752_v37 = vmax.bf16 %v750_v28, %v748_v31  ;;  %v762_v48 = vsel %vm518_vm0, %v516_v40, 4286644096  ;;  %v793_v49 = vsel %vm518_vm0, %v509_v39, 4286644096  ;;  %v797_v51 = vsel %vm518_vm0, %v517_v45, 4286644096 }
  0x5e   : > { %906 = vst [vmem:[%s1153_s28 + $0x10] sm:$0xff] %v905_v33   ;;  %v783_v42 = vmax.bf16 %v781_v32, %v779_v36 }
  0x5f   : > { %v756_v43 = vmax.bf16 %v754_v35, %v752_v37 }
  0x60   : > { %v787_v46 = vmax.bf16 %v785_v38, %v783_v42 }
  0x61   : > { %v760_v47 = vmax.bf16 %v758_v41, %v756_v43 }
  0x62   : > { %v791_v50 = vmax.bf16 %v789_v44, %v787_v46 }
  0x63   : > { %v764_v52 = vmax.bf16 %v762_v48, %v760_v47 }
  0x64   : > { %v795_v53 = vmax.bf16 %v793_v49, %v791_v50 }
  0x66   : > { %v799_v54 = vmax.bf16 %v797_v51, %v795_v53 }
  0x68   : > { %v907_v55 = vcombine.low %v764_v52, %v799_v54 }
  0x6a   : > { %908 = vst [vmem:[%s1153_s28 + $0x18] sm:$0xff] %v907_v55  }
  0x6b PF: > { %p8_p9 = scmp.ge.s32.totalorder %s986_s10, 4   ;;  %s1255_s6 = smov %s953_s7 }
  0x6c   : > { %s1256_s7 = smov %s995_s13  ;;  %s1257_s8 = smov %s986_s10 }
  0x6d   :  { %10 = sbr.rel (!%p8_p9) target bundleno = 2 (0x2), region = 100 }

// kernel: plate_classification_forward.21
= control target key start
LH: loop header
LB: loop body
LE: loop exit
PB: predicated region body
PF: predicated region fallthrough
CT: control target
= control target key end

     0   :  { %s741_s12 = smov 0   ;;  %s743_s13 = smov 0   ;;  %s814_s0 = inlined_call_operand.vmem [shape: bf16[128,128], index: 0, kind: input, shape index: {}]   ;;  %s815_s1 = inlined_call_operand.vmem [shape: bf16[128,128], index: 1, kind: input, shape index: {}]   ;;  %s816_s2 = inlined_call_operand.vmem [shape: f32[1,128], index: 2, kind: input, shape index: {}]   ;;  %s817_s3 = inlined_call_operand.vmem [shape: bf16[128,128], index: 3, kind: output, shape index: {}]  }
   0x1   :  { %s745_s14 = smov 0  }
   0x2 LB: > { %s25_s15 = sadd.s32 1, %s715_s13  ;;  %p550_p0 = scmp.ge.s32.totalorder %s719_s14, 1  ;;  %s719_s14 = sphi %s745_s14, %s13_s14   ;;  %s715_s13 = sphi %s743_s13, %s819_s13   ;;  %s711_s12 = sphi %s741_s12, %s818_s12  }
   0x3   : > { %p27_p1 = scmp.ge.s32.totalorder %s25_s15, 2  ;;  %p169_p2 = scmp.lt.s32.totalorder %s719_s14, 3 }
   0x5   : > { %s821_s15 = smov (%p27_p1, %s25_s15), 0  ;;  %p170_p3 = pnand %p550_p0, %p169_p2 }
   0x6   : > { %v685_v0 = vld [vmem:[%s815_s1] sm:$0xff] (!%p170_p3)   ;;  %s551_s18 = sshll.u32 (!%p170_p3), %s711_s12, 3  ;;  %v686_v1 = vld [vmem:[%s815_s1 + $0x8] sm:$0xff] (!%p170_p3)   ;;  %v687_v2 = vld [vmem:[%s815_s1 + $0x10] sm:$0xff] (!%p170_p3)  }
   0x7   : > { %173 = sbr.rel (%p170_p3) target bundleno = 261 (0x105), region = 32  ;;  %p204_p4 = scmp.lt.s32.totalorder (!%p170_p3), %s551_s18, 15  ;;  %621 = vmatprep.subr.bf16.mxu0 (!%p170_p3), %v685_v0  ;;  %645 = vmatprep.subr.bf16.mxu1 (!%p170_p3), %v685_v0  ;;  %v688_v3 = vld [vmem:[%s815_s1 + $0x18] sm:$0xff] (!%p170_p3)   ;;  %v689_v6 = vld [vmem:[%s815_s1 + $0x20] sm:$0xff] (!%p170_p3)   ;;  %v690_v7 = vld [vmem:[%s815_s1 + $0x28] sm:$0xff] (!%p170_p3)  }
   0x8   : > { %622 = vmatpush3.bf16.msra.mxu0 (!%p170_p3), %v685_v0  ;;  %653 = vmatpush3.bf16.msra.mxu1 (!%p170_p3), %v685_v0  ;;  %v691_v8 = vld [vmem:[%s815_s1 + $0x30] sm:$0xff] (!%p170_p3)   ;;  %v692_v9 = vld [vmem:[%s815_s1 + $0x38] sm:$0xff] (!%p170_p3)   ;;  %v555_v12 = vld [vmem:[%s816_s2] ss:$0 sm:$0xff] (!%p170_p3) }
   0x9   : > { %623 = vmatprep.subr.bf16.mxu0 (!%p170_p3), %v686_v1  ;;  %646 = vmatprep.subr.bf16.mxu1 (!%p170_p3), %v686_v1 }
   0xc   : > { %624 = vmatpush3.bf16.msra.mxu0 (!%p170_p3), %v686_v1  ;;  %654 = vmatpush3.bf16.msra.mxu1 (!%p170_p3), %v686_v1 }
   0xd   : > { %625 = vmatprep.subr.bf16.mxu0 (!%p170_p3), %v687_v2  ;;  %647 = vmatprep.subr.bf16.mxu1 (!%p170_p3), %v687_v2 }
   0xe   : > { %s823_s18 = smov (!%p204_p4, %s551_s18), 15 }
   0xf   : > { %s552_s23 = sshll.u32 %s823_s18, 2 }
  0x10   : > { %s776_s26 = scalar_lea.vmem %s814_s0, %s552_s23  ;;  %626 = vmatpush3.bf16.msra.mxu0 %v687_v2  ;;  %655 = vmatpush3.bf16.msra.mxu1 %v687_v2  ;;  %s223_s17 = scalar_lea.vmem %s817_s3, %s552_s23 }
  0x11   : > { %v693_v4 = vld [vmem:[%s776_s26] sm:$0xff]   ;;  %v694_v5 = vld [vmem:[%s776_s26 + $0x10] sm:$0xff]   ;;  %627 = vmatprep.subr.bf16.mxu0 %v688_v3  ;;  %648 = vmatprep.subr.bf16.mxu1 %v688_v3  ;;  %v695_v10 = vld [vmem:[%s776_s26 + $0x8] sm:$0xff]  }
  0x12   : > { %637 = vmatprep.mubr.bf16.mxu0 %v693_v4  ;;  %641 = vmatprep.mubr.bf16.mxu1 %v694_v5  ;;  %v696_v11 = vld [vmem:[%s776_s26 + $0x18] sm:$0xff]  }
  0x14   : > { %628 = vmatpush3.bf16.msra.mxu0 %v688_v3  ;;  %656 = vmatpush3.bf16.msra.mxu1 %v688_v3 }
  0x15   : > { %629 = vmatprep.subr.bf16.mxu0 %v689_v6  ;;  %649 = vmatprep.subr.bf16.mxu1 %v689_v6 }
  0x18   : > { %630 = vmatpush3.bf16.msra.mxu0 %v689_v6  ;;  %657 = vmatpush3.bf16.msra.mxu1 %v689_v6 }
  0x19   : > { %631 = vmatprep.subr.bf16.mxu0 %v690_v7  ;;  %650 = vmatprep.subr.bf16.mxu1 %v690_v7 }
  0x1c   : > { %632 = vmatpush3.bf16.msra.mxu0 %v690_v7  ;;  %658 = vmatpush3.bf16.msra.mxu1 %v690_v7 }
  0x1d   : > { %633 = vmatprep.subr.bf16.mxu0 %v691_v8  ;;  %651 = vmatprep.subr.bf16.mxu1 %v691_v8 }
  0x20   : > { %634 = vmatpush3.bf16.msra.mxu0 %v691_v8  ;;  %659 = vmatpush3.bf16.msra.mxu1 %v691_v8 }
  0x21   : > { %635 = vmatprep.subr.bf16.mxu0 %v692_v9  ;;  %652 = vmatprep.subr.bf16.mxu1 %v692_v9 }
  0x24   : > { %636 = vmatpush3.bf16.msra.mxu0 %v692_v9  ;;  %660 = vmatpush3.bf16.msra.mxu1 %v692_v9 }
  0x27   : > { %638 = vmatmul.mubr.bf16.vlgmr.msra.gmra.mrb[0].mxu0 %v695_v10  ;;  %642 = vmatmul.mubr.bf16.vlgmr.msra.gmra.mrb[0].mxu1 %v696_v11 }
  0xfa   : > { %v639_v13 = vpop.f32.mrb[0].mxu0  ;;  %v643_v14 = vpop.f32.mrb[0].mxu1 }
  0xfb   : > { %v372_v15 = vadd.f32 %v639_v13, %v555_v12  ;;  %v388_v16 = vadd.f32 %v643_v14, %v555_v12  ;;  %v363_v17 = vpop.f32.mrb[1].mxu0  ;;  %v379_v18 = vpop.f32.mrb[1].mxu1 }
  0xfc   : > { %v364_v19 = vadd.f32 %v555_v12, %v363_v17  ;;  %v380_v20 = vadd.f32 %v555_v12, %v379_v18  ;;  %v640_v21 = vpop.f32.mrb[2].mxu0  ;;  %v644_v22 = vpop.f32.mrb[2].mxu1 }
  0xfd   : > { %v375_v23 = vadd.f32 %v640_v21, %v555_v12  ;;  %v391_v24 = vadd.f32 %v644_v22, %v555_v12  ;;  %v366_v25 = vpop.f32.mrb[3].mxu0  ;;  %v382_v26 = vpop.f32.mrb[3].mxu1  ;;  %v396_v29 = vmax.f32 %v372_v15, 0.0  ;;  %v400_v30 = vmax.f32 %v388_v16, 0.0 }
  0xfe   : > { %v367_v27 = vadd.f32 %v555_v12, %v366_v25  ;;  %v383_v28 = vadd.f32 %v555_v12, %v382_v26  ;;  %v394_v33 = vmax.f32 %v364_v19, 0.0  ;;  %v398_v34 = vmax.f32 %v380_v20, 0.0 }
  0xff   : > { %v397_v31 = vmax.f32 %v375_v23, 0.0  ;;  %v401_v32 = vmax.f32 %v391_v24, 0.0 }
 0x100   : > { %v395_v35 = vmax.f32 %v367_v27, 0.0  ;;  %v399_v36 = vmax.f32 %v383_v28, 0.0 }
 0x101   : > { %v594_v37 = vpack.c.bf16 %v397_v31, %v396_v29  ;;  %v604_v38 = vpack.c.bf16 %v401_v32, %v400_v30 }
 0x102   : > { %v589_v39 = vpack.c.bf16 %v395_v35, %v394_v33  ;;  %v599_v40 = vpack.c.bf16 %v399_v36, %v398_v34 }
 0x103   : > { %606 = vst [vmem:[%s223_s17 + $0x8] sm:$0xff] %v594_v37   ;;  %608 = vst [vmem:[%s223_s17 + $0x18] sm:$0xff] %v604_v38  }
 0x104   : > { %590 = vst [vmem:[%s223_s17] sm:$0xff] %v589_v39   ;;  %607 = vst [vmem:[%s223_s17 + $0x10] sm:$0xff] %v599_v40  }
 0x105 PF: > { %s13_s14 = sadd.s32 1, %s719_s14   ;;  %s818_s12 = smov %s715_s13 }
 0x106   : > { %p10_p5 = scmp.ge.s32.totalorder %s13_s14, 4   ;;  %s819_s13 = smov %s821_s15 }
 0x108   :  { %12 = sbr.rel (!%p10_p5) target bundleno = 2 (0x2), region = 68 }

// kernel: plate_classification_forward.22
= control target key start
LH: loop header
LB: loop body
LE: loop exit
PB: predicated region body
PF: predicated region fallthrough
CT: control target
= control target key end

     0   :  { %s866_s15 = smov 0   ;;  %s868_s16 = smov 0   ;;  %s940_s0 = inlined_call_operand.vmem [shape: bf16[128,128], index: 0, kind: input, shape index: {}]   ;;  %s941_s1 = inlined_call_operand.vmem [shape: bf16[128,128], index: 1, kind: input, shape index: {}]   ;;  %s942_s2 = inlined_call_operand.vmem [shape: f32[1,128], index: 2, kind: input, shape index: {}]   ;;  %s943_s3 = inlined_call_operand.vmem [shape: bf16[128,128], index: 3, kind: input, shape index: {}]   ;;  %s944_s4 = inlined_call_operand.vmem [shape: bf16[128,128], index: 4, kind: output, shape index: {}]  }
   0x1   :  { %s870_s17 = smov 0  }
   0x2 LB: > { %s26_s18 = sadd.s32 1, %s835_s16  ;;  %p649_p0 = scmp.ge.s32.totalorder %s839_s17, 1  ;;  %s839_s17 = sphi %s870_s17, %s14_s17   ;;  %s835_s16 = sphi %s868_s16, %s946_s16   ;;  %s831_s15 = sphi %s866_s15, %s945_s15  }
   0x3   : > { %p28_p1 = scmp.ge.s32.totalorder %s26_s18, 2  ;;  %p210_p2 = scmp.lt.s32.totalorder %s839_s17, 3 }
   0x5   : > { %s948_s18 = smov (%p28_p1, %s26_s18), 0  ;;  %p211_p3 = pnand %p649_p0, %p210_p2 }
   0x6   : > { %v805_v0 = vld [vmem:[%s941_s1] sm:$0xff] (!%p211_p3)   ;;  %s650_s21 = sshll.u32 (!%p211_p3), %s831_s15, 3  ;;  %v806_v1 = vld [vmem:[%s941_s1 + $0x8] sm:$0xff] (!%p211_p3)   ;;  %v807_v2 = vld [vmem:[%s941_s1 + $0x10] sm:$0xff] (!%p211_p3)  }
   0x7   : > { %214 = sbr.rel (%p211_p3) target bundleno = 263 (0x107), region = 36  ;;  %p255_p4 = scmp.lt.s32.totalorder (!%p211_p3), %s650_s21, 15  ;;  %741 = vmatprep.subr.bf16.mxu0 (!%p211_p3), %v805_v0  ;;  %765 = vmatprep.subr.bf16.mxu1 (!%p211_p3), %v805_v0  ;;  %v808_v3 = vld [vmem:[%s941_s1 + $0x18] sm:$0xff] (!%p211_p3)   ;;  %v809_v6 = vld [vmem:[%s941_s1 + $0x20] sm:$0xff] (!%p211_p3)   ;;  %v810_v7 = vld [vmem:[%s941_s1 + $0x28] sm:$0xff] (!%p211_p3)  }
   0x8   : > { %742 = vmatpush3.bf16.msra.mxu0 (!%p211_p3), %v805_v0  ;;  %773 = vmatpush3.bf16.msra.mxu1 (!%p211_p3), %v805_v0  ;;  %v811_v8 = vld [vmem:[%s941_s1 + $0x30] sm:$0xff] (!%p211_p3)   ;;  %v812_v9 = vld [vmem:[%s941_s1 + $0x38] sm:$0xff] (!%p211_p3)   ;;  %v656_v16 = vld [vmem:[%s942_s2] ss:$0 sm:$0xff] (!%p211_p3) }
   0x9   : > { %743 = vmatprep.subr.bf16.mxu0 (!%p211_p3), %v806_v1  ;;  %766 = vmatprep.subr.bf16.mxu1 (!%p211_p3), %v806_v1 }
   0xc   : > { %744 = vmatpush3.bf16.msra.mxu0 (!%p211_p3), %v806_v1  ;;  %774 = vmatpush3.bf16.msra.mxu1 (!%p211_p3), %v806_v1 }
   0xd   : > { %745 = vmatprep.subr.bf16.mxu0 (!%p211_p3), %v807_v2  ;;  %767 = vmatprep.subr.bf16.mxu1 (!%p211_p3), %v807_v2 }
   0xe   : > { %s950_s21 = smov (!%p255_p4, %s650_s21), 15 }
   0xf   : > { %s893_s26 = sshll.u32 %s950_s21, 2 }
  0x10   : > { %s899_s29 = scalar_lea.vmem %s940_s0, %s893_s26  ;;  %746 = vmatpush3.bf16.msra.mxu0 %v807_v2  ;;  %775 = vmatpush3.bf16.msra.mxu1 %v807_v2  ;;  %s274_s19 = scalar_lea.vmem %s943_s3, %s893_s26 }
  0x11   : > { %v813_v4 = vld [vmem:[%s899_s29] sm:$0xff]   ;;  %v814_v5 = vld [vmem:[%s899_s29 + $0x10] sm:$0xff]   ;;  %747 = vmatprep.subr.bf16.mxu0 %v808_v3  ;;  %768 = vmatprep.subr.bf16.mxu1 %v808_v3  ;;  %v815_v10 = vld [vmem:[%s899_s29 + $0x8] sm:$0xff]   ;;  %s283_s24 = scalar_lea.vmem %s944_s4, %s893_s26 }
  0x12   : > { %757 = vmatprep.mubr.bf16.mxu0 %v813_v4  ;;  %761 = vmatprep.mubr.bf16.mxu1 %v814_v5  ;;  %v816_v11 = vld [vmem:[%s899_s29 + $0x18] sm:$0xff]   ;;  %v723_v12 = vld [vmem:[%s274_s19 + $0x8] sm:$0xff]   ;;  %v688_v14 = vld [vmem:[%s274_s19] sm:$0xff]  }
  0x13   : > { %v725_v13 = vld [vmem:[%s274_s19 + $0x18] sm:$0xff]   ;;  %v724_v15 = vld [vmem:[%s274_s19 + $0x10] sm:$0xff]   ;;  %v693_v17 = vunpack.c.l.bf16 %v723_v12  ;;  %v689_v21 = vunpack.c.l.bf16 %v688_v14  ;;  %v694_v27 = vunpack.c.h.bf16 %v723_v12  ;;  %v690_v33 = vunpack.c.h.bf16 %v688_v14 }
  0x14   : > { %748 = vmatpush3.bf16.msra.mxu0 %v808_v3  ;;  %776 = vmatpush3.bf16.msra.mxu1 %v808_v3  ;;  %v701_v18 = vunpack.c.l.bf16 %v725_v13  ;;  %v697_v22 = vunpack.c.l.bf16 %v724_v15  ;;  %v702_v28 = vunpack.c.h.bf16 %v725_v13  ;;  %v698_v34 = vunpack.c.h.bf16 %v724_v15 }
  0x15   : > { %749 = vmatprep.subr.bf16.mxu0 %v809_v6  ;;  %769 = vmatprep.subr.bf16.mxu1 %v809_v6 }
  0x18   : > { %750 = vmatpush3.bf16.msra.mxu0 %v809_v6  ;;  %777 = vmatpush3.bf16.msra.mxu1 %v809_v6 }
  0x19   : > { %751 = vmatprep.subr.bf16.mxu0 %v810_v7  ;;  %770 = vmatprep.subr.bf16.mxu1 %v810_v7 }
  0x1c   : > { %752 = vmatpush3.bf16.msra.mxu0 %v810_v7  ;;  %778 = vmatpush3.bf16.msra.mxu1 %v810_v7 }
  0x1d   : > { %753 = vmatprep.subr.bf16.mxu0 %v811_v8  ;;  %771 = vmatprep.subr.bf16.mxu1 %v811_v8 }
  0x20   : > { %754 = vmatpush3.bf16.msra.mxu0 %v811_v8  ;;  %779 = vmatpush3.bf16.msra.mxu1 %v811_v8 }
  0x21   : > { %755 = vmatprep.subr.bf16.mxu0 %v812_v9  ;;  %772 = vmatprep.subr.bf16.mxu1 %v812_v9 }
  0x24   : > { %756 = vmatpush3.bf16.msra.mxu0 %v812_v9  ;;  %780 = vmatpush3.bf16.msra.mxu1 %v812_v9 }
  0x27   : > { %758 = vmatmul.mubr.bf16.vlgmr.msra.gmra.mrb[0].mxu0 %v815_v10  ;;  %762 = vmatmul.mubr.bf16.vlgmr.msra.gmra.mrb[0].mxu1 %v816_v11 }
  0xfa   : > { %v759_v19 = vpop.f32.mrb[0].mxu0  ;;  %v763_v20 = vpop.f32.mrb[0].mxu1 }
  0xfb   : > { %v432_v23 = vadd.f32 %v759_v19, %v656_v16  ;;  %v448_v24 = vadd.f32 %v763_v20, %v656_v16  ;;  %v423_v25 = vpop.f32.mrb[1].mxu0  ;;  %v439_v26 = vpop.f32.mrb[1].mxu1 }
  0xfc   : > { %v424_v29 = vadd.f32 %v656_v16, %v423_v25  ;;  %v440_v30 = vadd.f32 %v656_v16, %v439_v26  ;;  %v760_v31 = vpop.f32.mrb[2].mxu0  ;;  %v764_v32 = vpop.f32.mrb[2].mxu1 }
  0xfd   : > { %v472_v35 = vadd.f32 %v693_v17, %v432_v23  ;;  %v476_v36 = vadd.f32 %v701_v18, %v448_v24  ;;  %v435_v37 = vadd.f32 %v760_v31, %v656_v16  ;;  %v451_v38 = vadd.f32 %v764_v32, %v656_v16  ;;  %v426_v39 = vpop.f32.mrb[3].mxu0  ;;  %v442_v40 = vpop.f32.mrb[3].mxu1 }
  0xfe   : > { %v470_v41 = vadd.f32 %v689_v21, %v424_v29  ;;  %v474_v42 = vadd.f32 %v697_v22, %v440_v30  ;;  %v427_v43 = vadd.f32 %v656_v16, %v426_v39  ;;  %v443_v44 = vadd.f32 %v656_v16, %v442_v40 }
  0xff   : > { %v473_v45 = vadd.f32 %v694_v27, %v435_v37  ;;  %v477_v46 = vadd.f32 %v702_v28, %v451_v38  ;;  %v480_v49 = vmax.f32 %v472_v35, 0.0  ;;  %v484_v50 = vmax.f32 %v476_v36, 0.0 }
 0x100   : > { %v471_v47 = vadd.f32 %v690_v33, %v427_v43  ;;  %v475_v48 = vadd.f32 %v698_v34, %v443_v44  ;;  %v478_v53 = vmax.f32 %v470_v41, 0.0  ;;  %v482_v54 = vmax.f32 %v474_v42, 0.0 }
 0x101   : > { %v481_v51 = vmax.f32 %v473_v45, 0.0  ;;  %v485_v52 = vmax.f32 %v477_v46, 0.0 }
 0x102   : > { %v479_v55 = vmax.f32 %v471_v47, 0.0  ;;  %v483_v56 = vmax.f32 %v475_v48, 0.0 }
 0x103   : > { %v711_v57 = vpack.c.bf16 %v481_v51, %v480_v49  ;;  %v721_v58 = vpack.c.bf16 %v485_v52, %v484_v50 }
 0x104   : > { %v706_v59 = vpack.c.bf16 %v479_v55, %v478_v53  ;;  %v716_v60 = vpack.c.bf16 %v483_v56, %v482_v54 }
 0x105   : > { %726 = vst [vmem:[%s283_s24 + $0x8] sm:$0xff] %v711_v57   ;;  %728 = vst [vmem:[%s283_s24 + $0x18] sm:$0xff] %v721_v58  }
 0x106   : > { %707 = vst [vmem:[%s283_s24] sm:$0xff] %v706_v59   ;;  %727 = vst [vmem:[%s283_s24 + $0x10] sm:$0xff] %v716_v60  }
 0x107 PF: > { %s14_s17 = sadd.s32 1, %s839_s17   ;;  %s945_s15 = smov %s835_s16 }
 0x108   : > { %p11_p5 = scmp.ge.s32.totalorder %s14_s17, 4   ;;  %s946_s16 = smov %s948_s18 }
 0x10a   :  { %13 = sbr.rel (!%p11_p5) target bundleno = 2 (0x2), region = 75 }

// kernel: plate_classification_forward.25
= control target key start
LH: loop header
LB: loop body
LE: loop exit
PB: predicated region body
PF: predicated region fallthrough
CT: control target
= control target key end

     0   :  { %s308_s1 = inlined_call_operand.vmem [shape: bf16[128,128], index: 1, kind: input, shape index: {}]   ;;  %s309_s0 = inlined_call_operand.vmem [shape: bf16[32,128], index: 0, kind: input, shape index: {}]   ;;  %s310_s2 = inlined_call_operand.vmem [shape: f32[1,128], index: 2, kind: input, shape index: {}]   ;;  %s311_s3 = inlined_call_operand.vmem [shape: bf16[32,128], index: 3, kind: output, shape index: {}]  }
   0x1   :  { %v239_v0 = vld [vmem:[%s308_s1] sm:$0xff]   ;;  %v240_v1 = vld [vmem:[%s308_s1 + $0x8] sm:$0xff]   ;;  %v241_v2 = vld [vmem:[%s308_s1 + $0x10] sm:$0xff]  }
   0x2   :  { %219 = vmatprep.subr.bf16.mxu0 %v239_v0  ;;  %v242_v3 = vld [vmem:[%s308_s1 + $0x18] sm:$0xff]   ;;  %v247_v4 = vld [vmem:[%s309_s0] sm:$0xff]   ;;  %v244_v6 = vld [vmem:[%s308_s1 + $0x28] sm:$0xff]  }
   0x3   :  { %220 = vmatpush3.bf16.msra.mxu0 %v239_v0  ;;  %235 = vmatprep.mubr.bf16.mxu0 %v247_v4  ;;  %v243_v5 = vld [vmem:[%s308_s1 + $0x20] sm:$0xff]   ;;  %v245_v7 = vld [vmem:[%s308_s1 + $0x30] sm:$0xff]   ;;  %v246_v8 = vld [vmem:[%s308_s1 + $0x38] sm:$0xff]  }
   0x4   :  { %221 = vmatprep.subr.bf16.mxu0 %v240_v1  ;;  %v248_v9 = vld [vmem:[%s309_s0 + $0x8] sm:$0xff]   ;;  %v179_v10 = vld [vmem:[%s310_s2] ss:$0 sm:$0xff] }
   0x7   :  { %222 = vmatpush3.bf16.msra.mxu0 %v240_v1 }
   0x8   :  { %223 = vmatprep.subr.bf16.mxu0 %v241_v2 }
   0xb   :  { %224 = vmatpush3.bf16.msra.mxu0 %v241_v2 }
   0xc   :  { %225 = vmatprep.subr.bf16.mxu0 %v242_v3 }
   0xf   :  { %226 = vmatpush3.bf16.msra.mxu0 %v242_v3 }
  0x10   :  { %227 = vmatprep.subr.bf16.mxu0 %v243_v5 }
  0x13   :  { %228 = vmatpush3.bf16.msra.mxu0 %v243_v5 }
  0x14   :  { %229 = vmatprep.subr.bf16.mxu0 %v244_v6 }
  0x17   :  { %230 = vmatpush3.bf16.msra.mxu0 %v244_v6 }
  0x18   :  { %231 = vmatprep.subr.bf16.mxu0 %v245_v7 }
  0x1b   :  { %232 = vmatpush3.bf16.msra.mxu0 %v245_v7 }
  0x1c   :  { %233 = vmatprep.subr.bf16.mxu0 %v246_v8 }
  0x1f   :  { %234 = vmatpush3.bf16.msra.mxu0 %v246_v8 }
  0x22   :  { %236 = vmatmul.mubr.bf16.vlgmr.msra.gmra.mrb[0].mxu0 %v248_v9 }
  0xf5   :  { %v237_v11 = vpop.f32.mrb[0].mxu0 }
  0xf6   :  { %v145_v12 = vadd.f32 %v237_v11, %v179_v10  ;;  %v136_v13 = vpop.f32.mrb[1].mxu0 }
  0xf7   :  { %v137_v14 = vadd.f32 %v179_v10, %v136_v13  ;;  %v238_v15 = vpop.f32.mrb[2].mxu0 }
  0xf8   :  { %v148_v16 = vadd.f32 %v238_v15, %v179_v10  ;;  %v139_v17 = vpop.f32.mrb[3].mxu0  ;;  %v153_v19 = vmax.f32 %v145_v12, 0.0 }
  0xf9   :  { %v140_v18 = vadd.f32 %v179_v10, %v139_v17  ;;  %v151_v21 = vmax.f32 %v137_v14, 0.0 }
  0xfa   :  { %v154_v20 = vmax.f32 %v148_v16, 0.0 }
  0xfb   :  { %v152_v22 = vmax.f32 %v140_v18, 0.0 }
  0xfc   :  { %v206_v23 = vpack.c.bf16 %v154_v20, %v153_v19 }
  0xfd   :  { %v201_v24 = vpack.c.bf16 %v152_v22, %v151_v21 }
  0xfe   :  { %208 = vst [vmem:[%s311_s3 + $0x8] sm:$0xff] %v206_v23  }
  0xff   :  { %202 = vst [vmem:[%s311_s3] sm:$0xff] %v201_v24  }

// kernel: plate_classification_forward.27
= control target key start
LH: loop header
LB: loop body
LE: loop exit
PB: predicated region body
PF: predicated region fallthrough
CT: control target
= control target key end

     0   :  { %s446_s1 = inlined_call_operand.vmem [shape: bf16[256,128], index: 1, kind: input, shape index: {}]   ;;  %s447_s0 = inlined_call_operand.vmem [shape: bf16[32,256], index: 0, kind: input, shape index: {}]   ;;  %s448_s2 = inlined_call_operand.vmem [shape: f32[1,128], index: 2, kind: input, shape index: {}]   ;;  %s449_s3 = inlined_call_operand.vmem [shape: bf16[32,128], index: 3, kind: output, shape index: {}]  }
   0x1   :  { %v335_v0 = vld [vmem:[%s446_s1 + $0x40] sm:$0xff]   ;;  %v337_v2 = vld [vmem:[%s446_s1 + $0x48] sm:$0xff]   ;;  %v339_v4 = vld [vmem:[%s446_s1 + $0x50] sm:$0xff]  }
   0x2   :  { %v336_v1 = vld [vmem:[%s446_s1] sm:$0xff]   ;;  %291 = vmatprep.subr.bf16.mxu0 %v335_v0  ;;  %319 = vmatprep.subr.bf16.mxu1 %v335_v0  ;;  %v338_v3 = vld [vmem:[%s446_s1 + $0x8] sm:$0xff]   ;;  %v340_v5 = vld [vmem:[%s446_s1 + $0x10] sm:$0xff]  }
   0x3   :  { %292 = vmatpush3.bf16.msra.mxu0 %v336_v1  ;;  %327 = vmatpush3.bf16.msra.mxu1 %v336_v1  ;;  %v341_v6 = vld [vmem:[%s446_s1 + $0x58] sm:$0xff]   ;;  %v343_v8 = vld [vmem:[%s446_s1 + $0x60] sm:$0xff]   ;;  %v345_v10 = vld [vmem:[%s446_s1 + $0x68] sm:$0xff]  }
   0x4   :  { %293 = vmatprep.subr.bf16.mxu0 %v337_v2  ;;  %320 = vmatprep.subr.bf16.mxu1 %v337_v2  ;;  %v342_v7 = vld [vmem:[%s446_s1 + $0x18] sm:$0xff]   ;;  %v344_v9 = vld [vmem:[%s446_s1 + $0x20] sm:$0xff]   ;;  %v346_v13 = vld [vmem:[%s446_s1 + $0x28] sm:$0xff]  }
   0x5   :  { %v353_v11 = vld [vmem:[%s447_s0 + $0x4] ss:$8 sps:$4 sm:$0xff]   ;;  %v356_v12 = vld [vmem:[%s447_s0 + $0x14] ss:$8 sps:$4 sm:$0xff]   ;;  %v351_v18 = vld [vmem:[%s447_s0] ss:$8 sps:$4 sm:$0xff]  }
   0x6   :  { %v347_v14 = vld [vmem:[%s446_s1 + $0x70] sm:$0xff]   ;;  %206 = vmatprep.mubr.bf16.mxu0 %v353_v11  ;;  %214 = vmatprep.mubr.bf16.mxu1 %v356_v12  ;;  %v349_v16 = vld [vmem:[%s446_s1 + $0x78] sm:$0xff]   ;;  %v251_v22 = vld [vmem:[%s448_s2] ss:$0 sm:$0xff] }
   0x7   :  { %294 = vmatpush3.bf16.msra.mxu0 %v338_v3  ;;  %328 = vmatpush3.bf16.msra.mxu1 %v338_v3  ;;  %v348_v15 = vld [vmem:[%s446_s1 + $0x30] sm:$0xff]   ;;  %v350_v17 = vld [vmem:[%s446_s1 + $0x38] sm:$0xff]  }
   0x8   :  { %295 = vmatprep.subr.bf16.mxu0 %v339_v4  ;;  %321 = vmatprep.subr.bf16.mxu1 %v339_v4  ;;  %v354_v19 = vld [vmem:[%s447_s0 + $0x10] ss:$8 sps:$4 sm:$0xff]  }
   0xb   :  { %296 = vmatpush3.bf16.msra.mxu0 %v340_v5  ;;  %329 = vmatpush3.bf16.msra.mxu1 %v340_v5 }
   0xc   :  { %297 = vmatprep.subr.bf16.mxu0 %v341_v6  ;;  %322 = vmatprep.subr.bf16.mxu1 %v341_v6 }
   0xf   :  { %298 = vmatpush3.bf16.msra.mxu0 %v342_v7  ;;  %330 = vmatpush3.bf16.msra.mxu1 %v342_v7 }
  0x10   :  { %299 = vmatprep.subr.bf16.mxu0 %v343_v8  ;;  %323 = vmatprep.subr.bf16.mxu1 %v343_v8 }
  0x13   :  { %300 = vmatpush3.bf16.msra.mxu0 %v344_v9  ;;  %331 = vmatpush3.bf16.msra.mxu1 %v344_v9 }
  0x14   :  { %301 = vmatprep.subr.bf16.mxu0 %v345_v10  ;;  %324 = vmatprep.subr.bf16.mxu1 %v345_v10 }
  0x17   :  { %302 = vmatpush3.bf16.msra.mxu0 %v346_v13  ;;  %332 = vmatpush3.bf16.msra.mxu1 %v346_v13 }
  0x18   :  { %303 = vmatprep.subr.bf16.mxu0 %v347_v14  ;;  %325 = vmatprep.subr.bf16.mxu1 %v347_v14 }
  0x1b   :  { %304 = vmatpush3.bf16.msra.mxu0 %v348_v15  ;;  %333 = vmatpush3.bf16.msra.mxu1 %v348_v15 }
  0x1c   :  { %305 = vmatprep.subr.bf16.mxu0 %v349_v16  ;;  %326 = vmatprep.subr.bf16.mxu1 %v349_v16 }
  0x1f   :  { %306 = vmatpush3.bf16.msra.mxu0 %v350_v17  ;;  %334 = vmatpush3.bf16.msra.mxu1 %v350_v17 }
  0x22   :  { %207 = vmatmul.mubr.bf16.vlgmr.msra.gmra.mrb[0].mxu0 %v351_v18  ;;  %215 = vmatmul.mubr.bf16.vlgmr.msra.gmra.mrb[0].mxu1 %v354_v19 }
  0xf5   :  { %v307_v20 = vpop.f32.mrb[0].mxu0  ;;  %v313_v21 = vpop.f32.mrb[0].mxu1 }
  0xf6   :  { %v308_v23 = vpop.f32.mrb[1].mxu0  ;;  %v314_v24 = vpop.f32.mrb[1].mxu1 }
  0xf7   :  { %v309_v25 = vadd.f32 %v308_v23, %v307_v20  ;;  %v315_v26 = vadd.f32 %v314_v24, %v313_v21  ;;  %v310_v27 = vpop.f32.mrb[2].mxu0  ;;  %v316_v28 = vpop.f32.mrb[2].mxu1 }
  0xf8   :  { %v311_v29 = vpop.f32.mrb[3].mxu0  ;;  %v317_v30 = vpop.f32.mrb[3].mxu1 }
  0xf9   :  { %v209_v31 = vadd.f32 %v309_v25, %v251_v22  ;;  %v217_v32 = vadd.f32 %v315_v26, %v251_v22  ;;  %v312_v33 = vadd.f32 %v311_v29, %v310_v27  ;;  %v318_v34 = vadd.f32 %v317_v30, %v316_v28 }
  0xfb   :  { %v212_v35 = vadd.f32 %v312_v33, %v251_v22  ;;  %v220_v36 = vadd.f32 %v318_v34, %v251_v22  ;;  %v223_v37 = vmax.f32 %v209_v31, 0.0  ;;  %v225_v38 = vmax.f32 %v217_v32, 0.0 }
  0xfd   :  { %v224_v39 = vmax.f32 %v212_v35, 0.0  ;;  %v226_v40 = vmax.f32 %v220_v36, 0.0 }
  0xff   :  { %v283_v41 = vpack.c.bf16 %v224_v39, %v223_v37  ;;  %v288_v42 = vpack.c.bf16 %v226_v40, %v225_v38 }
 0x101   :  { %284 = vst [vmem:[%s449_s3] sm:$0xff] %v283_v41   ;;  %290 = vst [vmem:[%s449_s3 + $0x8] sm:$0xff] %v288_v42  }

// kernel: plate_classification_forward.26
= control target key start
LH: loop header
LB: loop body
LE: loop exit
PB: predicated region body
PF: predicated region fallthrough
CT: control target
= control target key end

     0   :  { %s678_s1 = inlined_call_operand.vmem [shape: bf16[256,128], index: 1, kind: input, shape index: {}]   ;;  %s679_s4 = inlined_call_operand.vmem [shape: bf16[128,128], index: 4, kind: input, shape index: {}]   ;;  %s680_s0 = inlined_call_operand.vmem [shape: bf16[32,256], index: 0, kind: input, shape index: {}]   ;;  %s681_s3 = inlined_call_operand.vmem [shape: bf16[32,128], index: 3, kind: input, shape index: {}]   ;;  %s682_s2 = inlined_call_operand.vmem [shape: f32[1,128], index: 2, kind: input, shape index: {}]   ;;  %s683_s5 = inlined_call_operand.vmem [shape: f32[1,128], index: 5, kind: input, shape index: {}]   ;;  %s684_s6 = inlined_call_operand.vmem [shape: bf16[32,128], index: 6, kind: output, shape index: {}]  }
   0x1   :  { %v509_v0 = vld [vmem:[%s678_s1 + $0x40] sm:$0xff]   ;;  %v512_v3 = vld [vmem:[%s678_s1 + $0x48] sm:$0xff]   ;;  %v515_v6 = vld [vmem:[%s678_s1 + $0x50] sm:$0xff]  }
   0x2   :  { %v510_v1 = vld [vmem:[%s678_s1] sm:$0xff]   ;;  %451 = vmatprep.subr.bf16.mxu0 %v509_v0  ;;  %v513_v4 = vld [vmem:[%s678_s1 + $0x8] sm:$0xff]   ;;  %v516_v7 = vld [vmem:[%s678_s1 + $0x10] sm:$0xff]  }
   0x3   :  { %v511_v2 = vld [vmem:[%s679_s4] sm:$0xff]   ;;  %452 = vmatpush3.bf16.msra.mxu0 %v510_v1  ;;  %v514_v5 = vld [vmem:[%s679_s4 + $0x8] sm:$0xff]   ;;  %v517_v8 = vld [vmem:[%s679_s4 + $0x10] sm:$0xff]  }
   0x4   :  { %489 = vmatprep.subr.bf16.mxu1 %v511_v2  ;;  %453 = vmatprep.subr.bf16.mxu0 %v512_v3  ;;  %v518_v9 = vld [vmem:[%s678_s1 + $0x58] sm:$0xff]   ;;  %v521_v12 = vld [vmem:[%s678_s1 + $0x60] sm:$0xff]   ;;  %v524_v15 = vld [vmem:[%s678_s1 + $0x68] sm:$0xff]  }
   0x5   :  { %490 = vmatpush3.bf16.msra.mxu1 %v511_v2  ;;  %v519_v10 = vld [vmem:[%s678_s1 + $0x18] sm:$0xff]   ;;  %v523_v13 = vld [vmem:[%s679_s4 + $0x20] sm:$0xff]   ;;  %v526_v16 = vld [vmem:[%s679_s4 + $0x28] sm:$0xff]  }
   0x6   :  { %491 = vmatprep.subr.bf16.mxu1 %v514_v5  ;;  %v520_v11 = vld [vmem:[%s679_s4 + $0x18] sm:$0xff]   ;;  %v522_v14 = vld [vmem:[%s678_s1 + $0x20] sm:$0xff]   ;;  %v525_v17 = vld [vmem:[%s678_s1 + $0x28] sm:$0xff]  }
   0x7   :  { %454 = vmatpush3.bf16.msra.mxu0 %v513_v4  ;;  %v527_v18 = vld [vmem:[%s678_s1 + $0x70] sm:$0xff]   ;;  %v530_v21 = vld [vmem:[%s678_s1 + $0x78] sm:$0xff]   ;;  %v535_v23 = vld [vmem:[%s680_s0 + $0x4] ss:$8 sps:$4 sm:$0xff]  }
   0x8   :  { %455 = vmatprep.subr.bf16.mxu0 %v515_v6  ;;  %v528_v19 = vld [vmem:[%s678_s1 + $0x30] sm:$0xff]   ;;  %v532_v22 = vld [vmem:[%s679_s4 + $0x38] sm:$0xff]   ;;  %v536_v24 = vld [vmem:[%s681_s3] sm:$0xff]   ;;  %215 = vmatprep.mubr.bf16.mxu0 %v535_v23 }
   0x9   :  { %492 = vmatpush3.bf16.msra.mxu1 %v514_v5  ;;  %v529_v20 = vld [vmem:[%s679_s4 + $0x30] sm:$0xff]   ;;  %v531_v25 = vld [vmem:[%s678_s1 + $0x38] sm:$0xff]   ;;  %505 = vmatprep.mubr.bf16.mxu1 %v536_v24  ;;  %v533_v26 = vld [vmem:[%s680_s0] ss:$8 sps:$4 sm:$0xff]  }
   0xa   :  { %493 = vmatprep.subr.bf16.mxu1 %v517_v8  ;;  %v538_v27 = vld [vmem:[%s680_s0 + $0x14] ss:$8 sps:$4 sm:$0xff]   ;;  %v537_v28 = vld [vmem:[%s681_s3 + $0x8] sm:$0xff]   ;;  %v540_v29 = vld [vmem:[%s680_s0 + $0x10] ss:$8 sps:$4 sm:$0xff]  }
   0xb   :  { %456 = vmatpush3.bf16.msra.mxu0 %v516_v7  ;;  %v400_v31 = vld [vmem:[%s682_s2] ss:$0 sm:$0xff] }
   0xc   :  { %457 = vmatprep.subr.bf16.mxu0 %v518_v9  ;;  %v421_v33 = vld [vmem:[%s683_s5] ss:$0 sm:$0xff] }
   0xd   :  { %494 = vmatpush3.bf16.msra.mxu1 %v517_v8 }
   0xe   :  { %495 = vmatprep.subr.bf16.mxu1 %v520_v11 }
   0xf   :  { %458 = vmatpush3.bf16.msra.mxu0 %v519_v10 }
  0x10   :  { %459 = vmatprep.subr.bf16.mxu0 %v521_v12 }
  0x11   :  { %496 = vmatpush3.bf16.msra.mxu1 %v520_v11 }
  0x12   :  { %497 = vmatprep.subr.bf16.mxu1 %v523_v13 }
  0x13   :  { %460 = vmatpush3.bf16.msra.mxu0 %v522_v14 }
  0x14   :  { %461 = vmatprep.subr.bf16.mxu0 %v524_v15 }
  0x15   :  { %498 = vmatpush3.bf16.msra.mxu1 %v523_v13 }
  0x16   :  { %499 = vmatprep.subr.bf16.mxu1 %v526_v16 }
  0x17   :  { %462 = vmatpush3.bf16.msra.mxu0 %v525_v17 }
  0x18   :  { %463 = vmatprep.subr.bf16.mxu0 %v527_v18 }
  0x19   :  { %500 = vmatpush3.bf16.msra.mxu1 %v526_v16 }
  0x1a   :  { %501 = vmatprep.subr.bf16.mxu1 %v529_v20 }
  0x1b   :  { %464 = vmatpush3.bf16.msra.mxu0 %v528_v19 }
  0x1c   :  { %465 = vmatprep.subr.bf16.mxu0 %v530_v21 }
  0x1d   :  { %502 = vmatpush3.bf16.msra.mxu1 %v529_v20 }
  0x1e   :  { %503 = vmatprep.subr.bf16.mxu1 %v532_v22 }
  0x1f   :  { %466 = vmatpush3.bf16.msra.mxu0 %v531_v25 }
  0x21   :  { %504 = vmatpush3.bf16.msra.mxu1 %v532_v22 }
  0x22   :  { %216 = vmatmul.mubr.bf16.vlgmr.msra.gmra.mrb[0].mxu0 %v533_v26 }
  0x23   :  { %223 = vmatprep.mubr.bf16.mxu0 %v538_v27 }
  0x24   :  { %506 = vmatmul.mubr.bf16.vlgmr.msra.gmra.mrb[0].mxu1 %v537_v28 }
  0x2a   :  { %224 = vmatmul.mubr.bf16.gmra.mrb[4].mxu0 %v540_v29 }
  0xf5   :  { %v467_v30 = vpop.f32.mrb[0].mxu0 }
  0xf6   :  { %v468_v32 = vpop.f32.mrb[1].mxu0 }
  0xf7   :  { %v469_v34 = vadd.f32 %v468_v32, %v467_v30  ;;  %v470_v35 = vpop.f32.mrb[2].mxu0  ;;  %v507_v36 = vpop.f32.mrb[0].mxu1 }
  0xf8   :  { %v471_v37 = vpop.f32.mrb[3].mxu0  ;;  %v353_v38 = vpop.f32.mrb[1].mxu1  ;;  %v362_v50 = vadd.f32 %v507_v36, %v421_v33 }
  0xf9   :  { %v218_v39 = vadd.f32 %v469_v34, %v400_v31  ;;  %v472_v40 = vadd.f32 %v471_v37, %v470_v35  ;;  %v354_v41 = vadd.f32 %v421_v33, %v353_v38  ;;  %v508_v42 = vpop.f32.mrb[2].mxu1 }
  0xfa   :  { %v356_v43 = vpop.f32.mrb[3].mxu1  ;;  %v365_v59 = vadd.f32 %v508_v42, %v421_v33 }
  0xfb   :  { %v221_v44 = vadd.f32 %v472_v40, %v400_v31  ;;  %v368_v45 = vadd.f32 %v354_v41, %v218_v39  ;;  %v357_v46 = vadd.f32 %v421_v33, %v356_v43 }
  0xfd   :  { %v369_v47 = vadd.f32 %v357_v46, %v221_v44  ;;  %v473_v48 = vpop.f32.mrb[4].mxu0  ;;  %v372_v51 = vmax.f32 %v368_v45, 0.0 }
  0xfe   :  { %v474_v49 = vpop.f32.mrb[5].mxu0 }
  0xff   :  { %v373_v52 = vmax.f32 %v369_v47, 0.0  ;;  %v475_v53 = vadd.f32 %v474_v49, %v473_v48  ;;  %v476_v54 = vpop.f32.mrb[6].mxu0 }
 0x100   :  { %v477_v55 = vpop.f32.mrb[7].mxu0 }
 0x101   :  { %v443_v56 = vpack.c.bf16 %v373_v52, %v372_v51  ;;  %v226_v57 = vadd.f32 %v475_v53, %v400_v31  ;;  %v478_v58 = vadd.f32 %v477_v55, %v476_v54 }
 0x103   :  { %444 = vst [vmem:[%s684_s6] sm:$0xff] %v443_v56   ;;  %v370_v60 = vadd.f32 %v362_v50, %v226_v57  ;;  %v229_v61 = vadd.f32 %v478_v58, %v400_v31 }
 0x105   :  { %v371_v62 = vadd.f32 %v365_v59, %v229_v61  ;;  %v374_v63 = vmax.f32 %v370_v60, 0.0 }
 0x107   :  { %v375_v0 = vmax.f32 %v371_v62, 0.0 }
 0x109   :  { %v448_v1 = vpack.c.bf16 %v375_v0, %v374_v63 }
 0x10b   :  { %450 = vst [vmem:[%s684_s6 + $0x8] sm:$0xff] %v448_v1  }

// kernel: plate_classification_forward.28
= control target key start
LH: loop header
LB: loop body
LE: loop exit
PB: predicated region body
PF: predicated region fallthrough
CT: control target
= control target key end

     0   :  { %s481_s1 = inlined_call_operand.vmem [shape: bf16[256,128], index: 1, kind: input, shape index: {}]   ;;  %s482_s0 = inlined_call_operand.vmem [shape: bf16[32,256], index: 0, kind: input, shape index: {}]   ;;  %s483_s3 = inlined_call_operand.vmem [shape: bf16[32,128], index: 3, kind: input, shape index: {}]   ;;  %s484_s2 = inlined_call_operand.vmem [shape: f32[1,128], index: 2, kind: input, shape index: {}]   ;;  %s485_s4 = inlined_call_operand.vmem [shape: bf16[32,128], index: 4, kind: output, shape index: {}]  }
   0x1   :  { %v359_v0 = vld [vmem:[%s481_s1 + $0x40] sm:$0xff]   ;;  %v361_v2 = vld [vmem:[%s481_s1 + $0x48] sm:$0xff]   ;;  %v363_v4 = vld [vmem:[%s481_s1 + $0x50] sm:$0xff]  }
   0x2   :  { %v360_v1 = vld [vmem:[%s481_s1] sm:$0xff]   ;;  %315 = vmatprep.subr.bf16.mxu0 %v359_v0  ;;  %343 = vmatprep.subr.bf16.mxu1 %v359_v0  ;;  %v362_v3 = vld [vmem:[%s481_s1 + $0x8] sm:$0xff]   ;;  %v364_v5 = vld [vmem:[%s481_s1 + $0x10] sm:$0xff]  }
   0x3   :  { %316 = vmatpush3.bf16.msra.mxu0 %v360_v1  ;;  %351 = vmatpush3.bf16.msra.mxu1 %v360_v1  ;;  %v365_v6 = vld [vmem:[%s481_s1 + $0x58] sm:$0xff]   ;;  %v367_v8 = vld [vmem:[%s481_s1 + $0x60] sm:$0xff]   ;;  %v369_v10 = vld [vmem:[%s481_s1 + $0x68] sm:$0xff]  }
   0x4   :  { %317 = vmatprep.subr.bf16.mxu0 %v361_v2  ;;  %344 = vmatprep.subr.bf16.mxu1 %v361_v2  ;;  %v366_v7 = vld [vmem:[%s481_s1 + $0x18] sm:$0xff]   ;;  %v368_v9 = vld [vmem:[%s481_s1 + $0x20] sm:$0xff]   ;;  %v370_v13 = vld [vmem:[%s481_s1 + $0x28] sm:$0xff]  }
   0x5   :  { %v377_v11 = vld [vmem:[%s482_s0 + $0x4] ss:$8 sps:$4 sm:$0xff]   ;;  %v380_v12 = vld [vmem:[%s482_s0 + $0x14] ss:$8 sps:$4 sm:$0xff]   ;;  %v375_v18 = vld [vmem:[%s482_s0] ss:$8 sps:$4 sm:$0xff]  }
   0x6   :  { %v371_v14 = vld [vmem:[%s481_s1 + $0x70] sm:$0xff]   ;;  %209 = vmatprep.mubr.bf16.mxu0 %v377_v11  ;;  %217 = vmatprep.mubr.bf16.mxu1 %v380_v12  ;;  %v373_v16 = vld [vmem:[%s481_s1 + $0x78] sm:$0xff]   ;;  %v296_v20 = vld [vmem:[%s483_s3] sm:$0xff]  }
   0x7   :  { %318 = vmatpush3.bf16.msra.mxu0 %v362_v3  ;;  %352 = vmatpush3.bf16.msra.mxu1 %v362_v3  ;;  %v372_v15 = vld [vmem:[%s481_s1 + $0x30] sm:$0xff]   ;;  %v374_v17 = vld [vmem:[%s481_s1 + $0x38] sm:$0xff]   ;;  %v313_v21 = vld [vmem:[%s483_s3 + $0x8] sm:$0xff]   ;;  %v297_v28 = vunpack.c.l.bf16 %v296_v20  ;;  %v298_v34 = vunpack.c.h.bf16 %v296_v20 }
   0x8   :  { %319 = vmatprep.subr.bf16.mxu0 %v363_v4  ;;  %345 = vmatprep.subr.bf16.mxu1 %v363_v4  ;;  %v378_v19 = vld [vmem:[%s482_s0 + $0x10] ss:$8 sps:$4 sm:$0xff]   ;;  %v266_v24 = vld [vmem:[%s484_s2] ss:$0 sm:$0xff]  ;;  %v301_v30 = vunpack.c.l.bf16 %v313_v21  ;;  %v302_v36 = vunpack.c.h.bf16 %v313_v21 }
   0xb   :  { %320 = vmatpush3.bf16.msra.mxu0 %v364_v5  ;;  %353 = vmatpush3.bf16.msra.mxu1 %v364_v5 }
   0xc   :  { %321 = vmatprep.subr.bf16.mxu0 %v365_v6  ;;  %346 = vmatprep.subr.bf16.mxu1 %v365_v6 }
   0xf   :  { %322 = vmatpush3.bf16.msra.mxu0 %v366_v7  ;;  %354 = vmatpush3.bf16.msra.mxu1 %v366_v7 }
  0x10   :  { %323 = vmatprep.subr.bf16.mxu0 %v367_v8  ;;  %347 = vmatprep.subr.bf16.mxu1 %v367_v8 }
  0x13   :  { %324 = vmatpush3.bf16.msra.mxu0 %v368_v9  ;;  %355 = vmatpush3.bf16.msra.mxu1 %v368_v9 }
  0x14   :  { %325 = vmatprep.subr.bf16.mxu0 %v369_v10  ;;  %348 = vmatprep.subr.bf16.mxu1 %v369_v10 }
  0x17   :  { %326 = vmatpush3.bf16.msra.mxu0 %v370_v13  ;;  %356 = vmatpush3.bf16.msra.mxu1 %v370_v13 }
  0x18   :  { %327 = vmatprep.subr.bf16.mxu0 %v371_v14  ;;  %349 = vmatprep.subr.bf16.mxu1 %v371_v14 }
  0x1b   :  { %328 = vmatpush3.bf16.msra.mxu0 %v372_v15  ;;  %357 = vmatpush3.bf16.msra.mxu1 %v372_v15 }
  0x1c   :  { %329 = vmatprep.subr.bf16.mxu0 %v373_v16  ;;  %350 = vmatprep.subr.bf16.mxu1 %v373_v16 }
  0x1f   :  { %330 = vmatpush3.bf16.msra.mxu0 %v374_v17  ;;  %358 = vmatpush3.bf16.msra.mxu1 %v374_v17 }
  0x22   :  { %210 = vmatmul.mubr.bf16.vlgmr.msra.gmra.mrb[0].mxu0 %v375_v18  ;;  %218 = vmatmul.mubr.bf16.vlgmr.msra.gmra.mrb[0].mxu1 %v378_v19 }
  0xf5   :  { %v331_v22 = vpop.f32.mrb[0].mxu0  ;;  %v337_v23 = vpop.f32.mrb[0].mxu1 }
  0xf6   :  { %v332_v25 = vpop.f32.mrb[1].mxu0  ;;  %v338_v26 = vpop.f32.mrb[1].mxu1 }
  0xf7   :  { %v333_v27 = vadd.f32 %v332_v25, %v331_v22  ;;  %v339_v29 = vadd.f32 %v338_v26, %v337_v23  ;;  %v334_v31 = vpop.f32.mrb[2].mxu0  ;;  %v340_v32 = vpop.f32.mrb[2].mxu1 }
  0xf8   :  { %v335_v33 = vpop.f32.mrb[3].mxu0  ;;  %v341_v35 = vpop.f32.mrb[3].mxu1 }
  0xf9   :  { %v212_v37 = vadd.f32 %v333_v27, %v266_v24  ;;  %v220_v38 = vadd.f32 %v339_v29, %v266_v24  ;;  %v336_v39 = vadd.f32 %v335_v33, %v334_v31  ;;  %v342_v40 = vadd.f32 %v341_v35, %v340_v32 }
  0xfb   :  { %v234_v41 = vadd.f32 %v297_v28, %v212_v37  ;;  %v236_v42 = vadd.f32 %v301_v30, %v220_v38  ;;  %v215_v43 = vadd.f32 %v336_v39, %v266_v24  ;;  %v223_v44 = vadd.f32 %v342_v40, %v266_v24 }
  0xfd   :  { %v235_v45 = vadd.f32 %v298_v34, %v215_v43  ;;  %v237_v46 = vadd.f32 %v302_v36, %v223_v44  ;;  %v238_v47 = vmax.f32 %v234_v41, 0.0  ;;  %v240_v48 = vmax.f32 %v236_v42, 0.0 }
  0xff   :  { %v239_v49 = vmax.f32 %v235_v45, 0.0  ;;  %v241_v50 = vmax.f32 %v237_v46, 0.0 }
 0x101   :  { %v306_v51 = vpack.c.bf16 %v239_v49, %v238_v47  ;;  %v311_v52 = vpack.c.bf16 %v241_v50, %v240_v48 }
 0x103   :  { %307 = vst [vmem:[%s485_s4] sm:$0xff] %v306_v51   ;;  %314 = vst [vmem:[%s485_s4 + $0x8] sm:$0xff] %v311_v52  }

// kernel: plate_classification_forward.29
= control target key start
LH: loop header
LB: loop body
LE: loop exit
PB: predicated region body
PF: predicated region fallthrough
CT: control target
= control target key end

     0   :  { %s341_s1 = inlined_call_operand.vmem [shape: bf16[256,128], index: 1, kind: input, shape index: {}]   ;;  %s342_s0 = inlined_call_operand.vmem [shape: bf16[8,256], index: 0, kind: input, shape index: {}]   ;;  %s343_s2 = inlined_call_operand.vmem [shape: f32[1,128], index: 2, kind: input, shape index: {}]   ;;  %s344_s3 = inlined_call_operand.vmem [shape: bf16[8,128], index: 3, kind: output, shape index: {}]  }
   0x1   :  { %v246_v0 = vld [vmem:[%s341_s1 + $0x40] sm:$0xff]   ;;  %v248_v2 = vld [vmem:[%s341_s1 + $0x48] sm:$0xff]   ;;  %v250_v4 = vld [vmem:[%s341_s1 + $0x50] sm:$0xff]  }
   0x2   :  { %v247_v1 = vld [vmem:[%s341_s1] sm:$0xff]   ;;  %224 = vmatprep.subr.bf16.mxu0 %v246_v0  ;;  %v249_v3 = vld [vmem:[%s341_s1 + $0x8] sm:$0xff]   ;;  %v251_v5 = vld [vmem:[%s341_s1 + $0x10] sm:$0xff]  }
   0x3   :  { %225 = vmatpush3.bf16.msra.mxu0 %v247_v1  ;;  %v252_v6 = vld [vmem:[%s341_s1 + $0x58] sm:$0xff]   ;;  %v254_v8 = vld [vmem:[%s341_s1 + $0x60] sm:$0xff]   ;;  %v256_v10 = vld [vmem:[%s341_s1 + $0x68] sm:$0xff]  }
   0x4   :  { %226 = vmatprep.subr.bf16.mxu0 %v248_v2  ;;  %v253_v7 = vld [vmem:[%s341_s1 + $0x18] sm:$0xff]   ;;  %v255_v9 = vld [vmem:[%s341_s1 + $0x20] sm:$0xff]   ;;  %v257_v13 = vld [vmem:[%s341_s1 + $0x28] sm:$0xff]  }
   0x5   :  { %v15_v11 = vld [vmem:[%s342_s0] sm:$0xff]  ;;  %v258_v14 = vld [vmem:[%s341_s1 + $0x70] sm:$0xff]   ;;  %v260_v16 = vld [vmem:[%s341_s1 + $0x78] sm:$0xff]  }
   0x6   :  { %v207_v12 = vcombine.high %v15_v11, %v15_v11  ;;  %v259_v15 = vld [vmem:[%s341_s1 + $0x30] sm:$0xff]   ;;  %v261_v17 = vld [vmem:[%s341_s1 + $0x38] sm:$0xff]   ;;  %v206_v18 = vcombine.low %v15_v11, %v15_v11  ;;  %v205_v20 = vld [vmem:[%s343_s2] ss:$0 sm:$0xff] }
   0x7   :  { %227 = vmatpush3.bf16.msra.mxu0 %v249_v3 }
   0x8   :  { %228 = vmatprep.subr.bf16.mxu0 %v250_v4  ;;  %190 = vmatprep.mubr.bf16.mxu0 %v207_v12 }
   0xb   :  { %229 = vmatpush3.bf16.msra.mxu0 %v251_v5 }
   0xc   :  { %230 = vmatprep.subr.bf16.mxu0 %v252_v6 }
   0xf   :  { %231 = vmatpush3.bf16.msra.mxu0 %v253_v7 }
  0x10   :  { %232 = vmatprep.subr.bf16.mxu0 %v254_v8 }
  0x13   :  { %233 = vmatpush3.bf16.msra.mxu0 %v255_v9 }
  0x14   :  { %234 = vmatprep.subr.bf16.mxu0 %v256_v10 }
  0x17   :  { %235 = vmatpush3.bf16.msra.mxu0 %v257_v13 }
  0x18   :  { %236 = vmatprep.subr.bf16.mxu0 %v258_v14 }
  0x1b   :  { %237 = vmatpush3.bf16.msra.mxu0 %v259_v15 }
  0x1c   :  { %238 = vmatprep.subr.bf16.mxu0 %v260_v16 }
  0x1f   :  { %239 = vmatpush3.bf16.msra.mxu0 %v261_v17 }
  0x22   :  { %191 = vmatmul.mubr.bf16.vlgmr.msra.gmra.mrb[0].mxu0 %v206_v18 }
  0xf5   :  { %v240_v19 = vpop.f32.mrb[0].mxu0 }
  0xf6   :  { %v241_v21 = vpop.f32.mrb[1].mxu0 }
  0xf7   :  { %v242_v22 = vadd.f32 %v241_v21, %v240_v19  ;;  %v243_v23 = vpop.f32.mrb[2].mxu0 }
  0xf8   :  { %v244_v24 = vpop.f32.mrb[3].mxu0 }
  0xf9   :  { %v193_v25 = vadd.f32 %v242_v22, %v205_v20 }
  0xfb   :  { %v198_v26 = vmax.f32 %v193_v25, 0.0 }
  0xfd   :  { %v199_v27 = vpack.c.bf16 %v198_v26, %v198_v26 }
  0xff   :  { %200 = vst [vmem:[%s344_s3] sm:$0xf] %v199_v27 }

// kernel: plate_classification_forward.31
= control target key start
LH: loop header
LB: loop body
LE: loop exit
PB: predicated region body
PF: predicated region fallthrough
CT: control target
= control target key end

     0   :  { %v422_v1 = vmov 0.0   ;;  %vm423_vm0 = vmmov 0   ;;  %s528_s1 = inlined_call_operand.vmem [shape: bf16[384,128], index: 1, kind: input, shape index: {}]   ;;  %s529_s0 = inlined_call_operand.vmem [shape: bf16[8,384], index: 0, kind: input, shape index: {}]   ;;  %s530_s2 = inlined_call_operand.vmem [shape: f32[1,128], index: 2, kind: input, shape index: {}]   ;;  %s531_s3 = inlined_call_operand.vmem [shape: bf16[8,128], index: 3, kind: output, shape index: {}]  }
   0x1   :  { %v395_v0 = vld [vmem:[%s528_s1 + $0x40] sm:$0xff]   ;;  %373 = vmatprep.subr.bf16.mxu1 %v422_v1  ;;  %389 = vmatprep.mubr.msk.bf16.mxu1 %vm423_vm0, %v422_v1  ;;  %v398_v4 = vld [vmem:[%s528_s1 + $0x48] sm:$0xff]   ;;  %v401_v7 = vld [vmem:[%s528_s1 + $0x50] sm:$0xff]  }
   0x2   :  { %v396_v2 = vld [vmem:[%s528_s1] sm:$0xff]   ;;  %342 = vmatprep.subr.bf16.mxu0 %v395_v0  ;;  %v399_v5 = vld [vmem:[%s528_s1 + $0x8] sm:$0xff]   ;;  %v402_v8 = vld [vmem:[%s528_s1 + $0x10] sm:$0xff]  }
   0x3   :  { %v397_v3 = vld [vmem:[%s528_s1 + $0x80] sm:$0xff]   ;;  %343 = vmatpush3.bf16.msra.mxu0 %v396_v2  ;;  %v400_v6 = vld [vmem:[%s528_s1 + $0x88] sm:$0xff]   ;;  %v403_v9 = vld [vmem:[%s528_s1 + $0x90] sm:$0xff]  }
   0x4   :  { %374 = vmatpush3.bf16.msra.mxu1 %v397_v3  ;;  %344 = vmatprep.subr.bf16.mxu0 %v398_v4  ;;  %v404_v10 = vld [vmem:[%s528_s1 + $0x58] sm:$0xff]   ;;  %v407_v13 = vld [vmem:[%s528_s1 + $0x60] sm:$0xff]   ;;  %v410_v16 = vld [vmem:[%s528_s1 + $0x68] sm:$0xff]  }
   0x5   :  { %375 = vmatprep.subr.bf16.mxu1 %v422_v1  ;;  %v405_v11 = vld [vmem:[%s528_s1 + $0x18] sm:$0xff]   ;;  %v408_v14 = vld [vmem:[%s528_s1 + $0x20] sm:$0xff]   ;;  %v411_v17 = vld [vmem:[%s528_s1 + $0x28] sm:$0xff]  }
   0x6   :  { %v406_v12 = vld [vmem:[%s528_s1 + $0x98] sm:$0xff]   ;;  %v409_v15 = vld [vmem:[%s528_s1 + $0xa0] sm:$0xff]   ;;  %v412_v18 = vld [vmem:[%s528_s1 + $0xa8] sm:$0xff]  }
   0x7   :  { %345 = vmatpush3.bf16.msra.mxu0 %v399_v5  ;;  %v413_v19 = vld [vmem:[%s528_s1 + $0x70] sm:$0xff]   ;;  %v15_v22 = vld [vmem:[%s529_s0] sm:$0xff]  ;;  %v416_v23 = vld [vmem:[%s528_s1 + $0x78] sm:$0xff]  }
   0x8   :  { %376 = vmatpush3.bf16.msra.mxu1 %v400_v6  ;;  %346 = vmatprep.subr.bf16.mxu0 %v401_v7  ;;  %v414_v20 = vld [vmem:[%s528_s1 + $0x30] sm:$0xff]   ;;  %v316_v24 = vcombine.high %v15_v22, %v15_v22  ;;  %v417_v25 = vld [vmem:[%s528_s1 + $0x38] sm:$0xff]   ;;  %v315_v27 = vcombine.low %v15_v22, %v15_v22  ;;  %v420_v28 = vld [vmem:[%s529_s0 + $0x8] ss:$0 sps:$4 sm:$0xff]  }
   0x9   :  { %377 = vmatprep.subr.bf16.mxu1 %v422_v1  ;;  %v415_v21 = vld [vmem:[%s528_s1 + $0xb0] sm:$0xff]   ;;  %v421_v26 = vld [vmem:[%s528_s1 + $0xb8] sm:$0xff]   ;;  %v314_v31 = vld [vmem:[%s530_s2] ss:$0 sm:$0xff] }
   0xa   :  { %259 = vmatprep.mubr.bf16.mxu0 %v316_v24 }
   0xb   :  { %347 = vmatpush3.bf16.msra.mxu0 %v402_v8 }
   0xc   :  { %378 = vmatpush3.bf16.msra.mxu1 %v403_v9  ;;  %348 = vmatprep.subr.bf16.mxu0 %v404_v10 }
   0xd   :  { %379 = vmatprep.subr.bf16.mxu1 %v422_v1 }
   0xf   :  { %349 = vmatpush3.bf16.msra.mxu0 %v405_v11 }
  0x10   :  { %380 = vmatpush3.bf16.msra.mxu1 %v406_v12  ;;  %350 = vmatprep.subr.bf16.mxu0 %v407_v13 }
  0x11   :  { %381 = vmatprep.subr.bf16.mxu1 %v422_v1 }
  0x13   :  { %351 = vmatpush3.bf16.msra.mxu0 %v408_v14 }
  0x14   :  { %382 = vmatpush3.bf16.msra.mxu1 %v409_v15  ;;  %352 = vmatprep.subr.bf16.mxu0 %v410_v16 }
  0x15   :  { %383 = vmatprep.subr.bf16.mxu1 %v422_v1 }
  0x17   :  { %353 = vmatpush3.bf16.msra.mxu0 %v411_v17 }
  0x18   :  { %384 = vmatpush3.bf16.msra.mxu1 %v412_v18  ;;  %354 = vmatprep.subr.bf16.mxu0 %v413_v19 }
  0x19   :  { %385 = vmatprep.subr.bf16.mxu1 %v422_v1 }
  0x1b   :  { %355 = vmatpush3.bf16.msra.mxu0 %v414_v20 }
  0x1c   :  { %386 = vmatpush3.bf16.msra.mxu1 %v415_v21  ;;  %356 = vmatprep.subr.bf16.mxu0 %v416_v23 }
  0x1d   :  { %387 = vmatprep.subr.bf16.mxu1 %v422_v1 }
  0x1f   :  { %357 = vmatpush3.bf16.msra.mxu0 %v417_v25 }
  0x20   :  { %388 = vmatpush3.bf16.msra.mxu1 %v421_v26 }
  0x22   :  { %260 = vmatmul.mubr.bf16.vlgmr.msra.gmra.mrb[0].mxu0 %v315_v27 }
  0x23   :  { %390 = vmatmul.mubr.bf16.vlgmr.msra.gmra.mrb[0].mxu1 %v420_v28 }
  0xf5   :  { %v358_v29 = vpop.f32.mrb[0].mxu0 }
  0xf6   :  { %v359_v30 = vpop.f32.mrb[1].mxu0  ;;  %v301_v32 = vpop.f32.mrb[0].mxu1 }
  0xf7   :  { %v360_v33 = vadd.f32 %v359_v30, %v358_v29  ;;  %v361_v34 = vpop.f32.mrb[2].mxu0  ;;  %v391_v35 = vpop.f32.mrb[1].mxu1 }
  0xf8   :  { %v362_v36 = vpop.f32.mrb[3].mxu0  ;;  %v304_v37 = vpop.f32.mrb[2].mxu1 }
  0xf9   :  { %v262_v38 = vadd.f32 %v360_v33, %v314_v31  ;;  %v392_v39 = vpop.f32.mrb[3].mxu1 }
  0xfb   :  { %v302_v40 = vadd.f32 %v301_v32, %v262_v38 }
  0xfd   :  { %v307_v41 = vmax.f32 %v302_v40, 0.0 }
  0xff   :  { %v308_v42 = vpack.c.bf16 %v307_v41, %v307_v41 }
 0x101   :  { %309 = vst [vmem:[%s531_s3] sm:$0xf] %v308_v42 }

// kernel: plate_classification_forward.30
= control target key start
LH: loop header
LB: loop body
LE: loop exit
PB: predicated region body
PF: predicated region fallthrough
CT: control target
= control target key end

     0   :  { %v596_v0 = vmov 0.0   ;;  %vm597_vm0 = vmmov 0   ;;  %s767_s1 = inlined_call_operand.vmem [shape: bf16[384,128], index: 1, kind: input, shape index: {}]   ;;  %s768_s0 = inlined_call_operand.vmem [shape: bf16[8,384], index: 0, kind: input, shape index: {}]   ;;  %s769_s4 = inlined_call_operand.vmem [shape: bf16[128,128], index: 4, kind: input, shape index: {}]   ;;  %s770_s3 = inlined_call_operand.vmem [shape: bf16[8,128], index: 3, kind: input, shape index: {}]   ;;  %s771_s2 = inlined_call_operand.vmem [shape: f32[1,128], index: 2, kind: input, shape index: {}]   ;;  %s772_s5 = inlined_call_operand.vmem [shape: f32[1,128], index: 5, kind: input, shape index: {}]   ;;  %s773_s6 = inlined_call_operand.vmem [shape: bf16[8,128], index: 6, kind: output, shape index: {}]  }
   0x1   :  { %513 = vmatprep.subr.bf16.mxu1 %v596_v0  ;;  %v561_v1 = vld [vmem:[%s767_s1 + $0x80] sm:$0xff]   ;;  %529 = vmatprep.mubr.msk.bf16.mxu1 %vm597_vm0, %v596_v0  ;;  %v562_v2 = vld [vmem:[%s767_s1 + $0x88] sm:$0xff]   ;;  %v563_v3 = vld [vmem:[%s767_s1 + $0x90] sm:$0xff]  }
   0x2   :  { %514 = vmatpush3.bf16.msra.mxu1 %v561_v1  ;;  %v567_v4 = vld [vmem:[%s767_s1 + $0x40] sm:$0xff]   ;;  %v564_v6 = vld [vmem:[%s767_s1 + $0x98] sm:$0xff]   ;;  %v570_v7 = vld [vmem:[%s767_s1 + $0x48] sm:$0xff]  }
   0x3   :  { %515 = vmatprep.subr.bf16.mxu1 %v596_v0  ;;  %v568_v5 = vld [vmem:[%s767_s1] sm:$0xff]   ;;  %473 = vmatprep.subr.bf16.mxu0 %v567_v4  ;;  %v571_v8 = vld [vmem:[%s767_s1 + $0x8] sm:$0xff]   ;;  %v573_v9 = vld [vmem:[%s767_s1 + $0x50] sm:$0xff]  }
   0x4   :  { %474 = vmatpush3.bf16.msra.mxu0 %v568_v5  ;;  %v574_v10 = vld [vmem:[%s767_s1 + $0x10] sm:$0xff]   ;;  %v565_v11 = vld [vmem:[%s767_s1 + $0xa0] sm:$0xff]   ;;  %v577_v12 = vld [vmem:[%s767_s1 + $0x58] sm:$0xff]  }
   0x5   :  { %475 = vmatprep.subr.bf16.mxu0 %v570_v7  ;;  %v578_v13 = vld [vmem:[%s767_s1 + $0x18] sm:$0xff]   ;;  %v566_v14 = vld [vmem:[%s767_s1 + $0xa8] sm:$0xff]   ;;  %v580_v15 = vld [vmem:[%s767_s1 + $0x60] sm:$0xff]  }
   0x6   :  { %516 = vmatpush3.bf16.msra.mxu1 %v562_v2  ;;  %v569_v16 = vld [vmem:[%s767_s1 + $0xb0] sm:$0xff]   ;;  %v581_v17 = vld [vmem:[%s767_s1 + $0x20] sm:$0xff]   ;;  %v583_v18 = vld [vmem:[%s767_s1 + $0x68] sm:$0xff]  }
   0x7   :  { %517 = vmatprep.subr.bf16.mxu1 %v596_v0  ;;  %v572_v19 = vld [vmem:[%s767_s1 + $0xb8] sm:$0xff]   ;;  %v584_v20 = vld [vmem:[%s767_s1 + $0x28] sm:$0xff]   ;;  %v586_v21 = vld [vmem:[%s767_s1 + $0x70] sm:$0xff]  }
   0x8   :  { %476 = vmatpush3.bf16.msra.mxu0 %v571_v8  ;;  %v575_v22 = vld [vmem:[%s768_s0 + $0x8] ss:$0 sps:$4 sm:$0xff]   ;;  %v576_v23 = vld [vmem:[%s769_s4] sm:$0xff]   ;;  %v587_v24 = vld [vmem:[%s767_s1 + $0x30] sm:$0xff]  }
   0x9   :  { %477 = vmatprep.subr.bf16.mxu0 %v573_v9  ;;  %v24_v25 = vld [vmem:[%s768_s0] sm:$0xff]  ;;  %v589_v26 = vld [vmem:[%s767_s1 + $0x78] sm:$0xff]   ;;  %v579_v29 = vld [vmem:[%s769_s4 + $0x8] sm:$0xff]  }
   0xa   :  { %518 = vmatpush3.bf16.msra.mxu1 %v563_v3  ;;  %v438_v27 = vcombine.high %v24_v25, %v24_v25  ;;  %v590_v28 = vld [vmem:[%s767_s1 + $0x38] sm:$0xff]   ;;  %v437_v30 = vcombine.low %v24_v25, %v24_v25  ;;  %v582_v31 = vld [vmem:[%s769_s4 + $0x10] sm:$0xff]   ;;  %v588_v33 = vld [vmem:[%s769_s4 + $0x20] sm:$0xff]  }
   0xb   :  { %519 = vmatprep.subr.bf16.mxu1 %v596_v0  ;;  %v585_v32 = vld [vmem:[%s769_s4 + $0x18] sm:$0xff]   ;;  %v593_v34 = vld [vmem:[%s769_s4 + $0x28] sm:$0xff]   ;;  %v594_v35 = vld [vmem:[%s769_s4 + $0x30] sm:$0xff]  }
   0xc   :  { %478 = vmatpush3.bf16.msra.mxu0 %v574_v10  ;;  %268 = vmatprep.mubr.bf16.mxu0 %v438_v27  ;;  %v595_v36 = vld [vmem:[%s769_s4 + $0x38] sm:$0xff]   ;;  %v316_v37 = vld [vmem:[%s770_s3] sm:$0xf] }
   0xd   :  { %479 = vmatprep.subr.bf16.mxu0 %v577_v12  ;;  %v436_v43 = vld [vmem:[%s771_s2] ss:$0 sm:$0xff] }
   0xe   :  { %520 = vmatpush3.bf16.msra.mxu1 %v564_v6  ;;  %v464_v45 = vld [vmem:[%s772_s5] ss:$0 sm:$0xff] }
   0xf   :  { %521 = vmatprep.subr.bf16.mxu1 %v596_v0 }
  0x10   :  { %480 = vmatpush3.bf16.msra.mxu0 %v578_v13 }
  0x11   :  { %481 = vmatprep.subr.bf16.mxu0 %v580_v15 }
  0x12   :  { %522 = vmatpush3.bf16.msra.mxu1 %v565_v11 }
  0x13   :  { %523 = vmatprep.subr.bf16.mxu1 %v596_v0 }
  0x14   :  { %482 = vmatpush3.bf16.msra.mxu0 %v581_v17 }
  0x15   :  { %483 = vmatprep.subr.bf16.mxu0 %v583_v18 }
  0x16   :  { %524 = vmatpush3.bf16.msra.mxu1 %v566_v14 }
  0x17   :  { %525 = vmatprep.subr.bf16.mxu1 %v596_v0 }
  0x18   :  { %484 = vmatpush3.bf16.msra.mxu0 %v584_v20 }
  0x19   :  { %485 = vmatprep.subr.bf16.mxu0 %v586_v21 }
  0x1a   :  { %526 = vmatpush3.bf16.msra.mxu1 %v569_v16 }
  0x1b   :  { %527 = vmatprep.subr.bf16.mxu1 %v596_v0 }
  0x1c   :  { %486 = vmatpush3.bf16.msra.mxu0 %v587_v24 }
  0x1d   :  { %487 = vmatprep.subr.bf16.mxu0 %v589_v26 }
  0x1e   :  { %528 = vmatpush3.bf16.msra.mxu1 %v572_v19 }
  0x1f   :  { %533 = vmatprep.subr.bf16.mxu1 %v596_v0 }
  0x20   :  { %488 = vmatpush3.bf16.msra.mxu0 %v590_v28 }
  0x21   :  { %530 = vmatmul.mubr.bf16.vlgmr.msra.gmra.mrb[0].mxu1 %v575_v22 }
  0x22   :  { %534 = vmatpush3.bf16.msra.mxu1 %v576_v23  ;;  %549 = vmatprep.mubr.msk.bf16.mxu1 %vm597_vm0, %v596_v0 }
  0x23   :  { %535 = vmatprep.subr.bf16.mxu1 %v596_v0  ;;  %269 = vmatmul.mubr.bf16.vlgmr.msra.gmra.mrb[0].mxu0 %v437_v30 }
  0x26   :  { %536 = vmatpush3.bf16.msra.mxu1 %v579_v29 }
  0x27   :  { %537 = vmatprep.subr.bf16.mxu1 %v596_v0 }
  0x2a   :  { %538 = vmatpush3.bf16.msra.mxu1 %v582_v31 }
  0x2b   :  { %539 = vmatprep.subr.bf16.mxu1 %v596_v0 }
  0x2e   :  { %540 = vmatpush3.bf16.msra.mxu1 %v585_v32 }
  0x2f   :  { %541 = vmatprep.subr.bf16.mxu1 %v596_v0 }
  0x32   :  { %542 = vmatpush3.bf16.msra.mxu1 %v588_v33 }
  0x33   :  { %543 = vmatprep.subr.bf16.mxu1 %v596_v0 }
  0x36   :  { %544 = vmatpush3.bf16.msra.mxu1 %v593_v34 }
  0x37   :  { %545 = vmatprep.subr.bf16.mxu1 %v596_v0 }
  0x3a   :  { %546 = vmatpush3.bf16.msra.mxu1 %v594_v35 }
  0x3b   :  { %547 = vmatprep.subr.bf16.mxu1 %v596_v0 }
  0x3e   :  { %548 = vmatpush3.bf16.msra.mxu1 %v595_v36 }
  0x41   :  { %550 = vmatmul.mubr.bf16.vlgmr.msra.gmra.mrb[0].mxu1 %v316_v37 }
  0xf6   :  { %v489_v38 = vpop.f32.mrb[0].mxu0 }
  0xf7   :  { %v490_v39 = vpop.f32.mrb[1].mxu0 }
  0xf8   :  { %v491_v40 = vadd.f32 %v490_v39, %v489_v38  ;;  %v492_v41 = vpop.f32.mrb[2].mxu0 }
  0xf9   :  { %v493_v42 = vpop.f32.mrb[3].mxu0 }
  0xfa   :  { %v271_v44 = vadd.f32 %v491_v40, %v436_v43 }
  0xfc   :  { %v553_v46 = vadd.f32 %v464_v45, %v271_v44 }
 0x114   :  { %v422_v47 = vpop.f32.mrb[0].mxu1 }
 0x115   :  { %v554_v48 = vadd.f32 %v553_v46, %v422_v47  ;;  %v551_v49 = vpop.f32.mrb[1].mxu1 }
 0x116   :  { %v425_v50 = vpop.f32.mrb[2].mxu1 }
 0x117   :  { %v429_v51 = vmax.f32 %v554_v48, 0.0  ;;  %v552_v52 = vpop.f32.mrb[3].mxu1 }
 0x119   :  { %v430_v53 = vpack.c.bf16 %v429_v51, %v429_v51 }
 0x11b   :  { %431 = vst [vmem:[%s773_s6] sm:$0xf] %v430_v53 }

// kernel: plate_classification_forward.32
= control target key start
LH: loop header
LB: loop body
LE: loop exit
PB: predicated region body
PF: predicated region fallthrough
CT: control target
= control target key end

     0   :  { %v428_v1 = vmov 0.0   ;;  %vm429_vm0 = vmmov 0   ;;  %s542_s1 = inlined_call_operand.vmem [shape: bf16[384,128], index: 1, kind: input, shape index: {}]   ;;  %s543_s0 = inlined_call_operand.vmem [shape: bf16[8,384], index: 0, kind: input, shape index: {}]   ;;  %s544_s2 = inlined_call_operand.vmem [shape: f32[1,128], index: 2, kind: input, shape index: {}]   ;;  %s545_s3 = inlined_call_operand.vmem [shape: bf16[8,128], index: 3, kind: input, shape index: {}]   ;;  %s546_s4 = inlined_call_operand.vmem [shape: bf16[8,128], index: 4, kind: output, shape index: {}]  }
   0x1   :  { %v401_v0 = vld [vmem:[%s542_s1 + $0x40] sm:$0xff]   ;;  %379 = vmatprep.subr.bf16.mxu1 %v428_v1  ;;  %395 = vmatprep.mubr.msk.bf16.mxu1 %vm429_vm0, %v428_v1  ;;  %v404_v4 = vld [vmem:[%s542_s1 + $0x48] sm:$0xff]   ;;  %v407_v7 = vld [vmem:[%s542_s1 + $0x50] sm:$0xff]  }
   0x2   :  { %v402_v2 = vld [vmem:[%s542_s1] sm:$0xff]   ;;  %348 = vmatprep.subr.bf16.mxu0 %v401_v0  ;;  %v405_v5 = vld [vmem:[%s542_s1 + $0x8] sm:$0xff]   ;;  %v408_v8 = vld [vmem:[%s542_s1 + $0x10] sm:$0xff]  }
   0x3   :  { %v403_v3 = vld [vmem:[%s542_s1 + $0x80] sm:$0xff]   ;;  %349 = vmatpush3.bf16.msra.mxu0 %v402_v2  ;;  %v406_v6 = vld [vmem:[%s542_s1 + $0x88] sm:$0xff]   ;;  %v409_v9 = vld [vmem:[%s542_s1 + $0x90] sm:$0xff]  }
   0x4   :  { %380 = vmatpush3.bf16.msra.mxu1 %v403_v3  ;;  %350 = vmatprep.subr.bf16.mxu0 %v404_v4  ;;  %v410_v10 = vld [vmem:[%s542_s1 + $0x58] sm:$0xff]   ;;  %v413_v13 = vld [vmem:[%s542_s1 + $0x60] sm:$0xff]   ;;  %v416_v16 = vld [vmem:[%s542_s1 + $0x68] sm:$0xff]  }
   0x5   :  { %381 = vmatprep.subr.bf16.mxu1 %v428_v1  ;;  %v411_v11 = vld [vmem:[%s542_s1 + $0x18] sm:$0xff]   ;;  %v414_v14 = vld [vmem:[%s542_s1 + $0x20] sm:$0xff]   ;;  %v417_v17 = vld [vmem:[%s542_s1 + $0x28] sm:$0xff]  }
   0x6   :  { %v412_v12 = vld [vmem:[%s542_s1 + $0x98] sm:$0xff]   ;;  %v415_v15 = vld [vmem:[%s542_s1 + $0xa0] sm:$0xff]   ;;  %v418_v18 = vld [vmem:[%s542_s1 + $0xa8] sm:$0xff]  }
   0x7   :  { %351 = vmatpush3.bf16.msra.mxu0 %v405_v5  ;;  %v419_v19 = vld [vmem:[%s542_s1 + $0x70] sm:$0xff]   ;;  %v18_v22 = vld [vmem:[%s543_s0] sm:$0xff]  ;;  %v422_v23 = vld [vmem:[%s542_s1 + $0x78] sm:$0xff]  }
   0x8   :  { %382 = vmatpush3.bf16.msra.mxu1 %v406_v6  ;;  %352 = vmatprep.subr.bf16.mxu0 %v407_v7  ;;  %v420_v20 = vld [vmem:[%s542_s1 + $0x30] sm:$0xff]   ;;  %v322_v24 = vcombine.high %v18_v22, %v18_v22  ;;  %v423_v25 = vld [vmem:[%s542_s1 + $0x38] sm:$0xff]   ;;  %v321_v27 = vcombine.low %v18_v22, %v18_v22  ;;  %v426_v28 = vld [vmem:[%s543_s0 + $0x8] ss:$0 sps:$4 sm:$0xff]  }
   0x9   :  { %383 = vmatprep.subr.bf16.mxu1 %v428_v1  ;;  %v421_v21 = vld [vmem:[%s542_s1 + $0xb0] sm:$0xff]   ;;  %v427_v26 = vld [vmem:[%s542_s1 + $0xb8] sm:$0xff]   ;;  %v320_v31 = vld [vmem:[%s544_s2] ss:$0 sm:$0xff] }
   0xa   :  { %262 = vmatprep.mubr.bf16.mxu0 %v322_v24  ;;  %v310_v33 = vld [vmem:[%s545_s3] sm:$0xf] }
   0xb   :  { %353 = vmatpush3.bf16.msra.mxu0 %v408_v8  ;;  %v311_v40 = vunpack.c.l.bf16 %v310_v33 }
   0xc   :  { %384 = vmatpush3.bf16.msra.mxu1 %v409_v9  ;;  %354 = vmatprep.subr.bf16.mxu0 %v410_v10 }
   0xd   :  { %385 = vmatprep.subr.bf16.mxu1 %v428_v1 }
   0xf   :  { %355 = vmatpush3.bf16.msra.mxu0 %v411_v11 }
  0x10   :  { %386 = vmatpush3.bf16.msra.mxu1 %v412_v12  ;;  %356 = vmatprep.subr.bf16.mxu0 %v413_v13 }
  0x11   :  { %387 = vmatprep.subr.bf16.mxu1 %v428_v1 }
  0x13   :  { %357 = vmatpush3.bf16.msra.mxu0 %v414_v14 }
  0x14   :  { %388 = vmatpush3.bf16.msra.mxu1 %v415_v15  ;;  %358 = vmatprep.subr.bf16.mxu0 %v416_v16 }
  0x15   :  { %389 = vmatprep.subr.bf16.mxu1 %v428_v1 }
  0x17   :  { %359 = vmatpush3.bf16.msra.mxu0 %v417_v17 }
  0x18   :  { %390 = vmatpush3.bf16.msra.mxu1 %v418_v18  ;;  %360 = vmatprep.subr.bf16.mxu0 %v419_v19 }
  0x19   :  { %391 = vmatprep.subr.bf16.mxu1 %v428_v1 }
  0x1b   :  { %361 = vmatpush3.bf16.msra.mxu0 %v420_v20 }
  0x1c   :  { %392 = vmatpush3.bf16.msra.mxu1 %v421_v21  ;;  %362 = vmatprep.subr.bf16.mxu0 %v422_v23 }
  0x1d   :  { %393 = vmatprep.subr.bf16.mxu1 %v428_v1 }
  0x1f   :  { %363 = vmatpush3.bf16.msra.mxu0 %v423_v25 }
  0x20   :  { %394 = vmatpush3.bf16.msra.mxu1 %v427_v26 }
  0x22   :  { %263 = vmatmul.mubr.bf16.vlgmr.msra.gmra.mrb[0].mxu0 %v321_v27 }
  0x23   :  { %396 = vmatmul.mubr.bf16.vlgmr.msra.gmra.mrb[0].mxu1 %v426_v28 }
  0xf5   :  { %v364_v29 = vpop.f32.mrb[0].mxu0 }
  0xf6   :  { %v365_v30 = vpop.f32.mrb[1].mxu0  ;;  %v304_v32 = vpop.f32.mrb[0].mxu1 }
  0xf7   :  { %v366_v34 = vadd.f32 %v365_v30, %v364_v29  ;;  %v367_v35 = vpop.f32.mrb[2].mxu0  ;;  %v397_v36 = vpop.f32.mrb[1].mxu1 }
  0xf8   :  { %v368_v37 = vpop.f32.mrb[3].mxu0  ;;  %v307_v38 = vpop.f32.mrb[2].mxu1 }
  0xf9   :  { %v265_v39 = vadd.f32 %v366_v34, %v320_v31  ;;  %v398_v41 = vpop.f32.mrb[3].mxu1 }
  0xfb   :  { %v305_v42 = vadd.f32 %v304_v32, %v265_v39 }
  0xfd   :  { %v312_v43 = vadd.f32 %v311_v40, %v305_v42 }
  0xff   :  { %v313_v44 = vmax.f32 %v312_v43, 0.0 }
 0x101   :  { %v314_v45 = vpack.c.bf16 %v313_v44, %v313_v44 }
 0x103   :  { %315 = vst [vmem:[%s546_s4] sm:$0xf] %v314_v45 }

// kernel: plate_classification_forward.33
= control target key start
LH: loop header
LB: loop body
LE: loop exit
PB: predicated region body
PF: predicated region fallthrough
CT: control target
= control target key end

     0   :  { %v433_v1 = vmov 0.0   ;;  %vm434_vm0 = vmmov 0   ;;  %v435_v15 = vmov 1966171168   ;;  %v83_v17 = vlaneseq  ;;  %s546_s1 = inlined_call_operand.vmem [shape: bf16[384,128], index: 1, kind: input, shape index: {}]   ;;  %s547_s0 = inlined_call_operand.vmem [shape: bf16[2,384], index: 0, kind: input, shape index: {}]   ;;  %s548_s2 = inlined_call_operand.vmem [shape: f32[1,128], index: 2, kind: input, shape index: {}]   ;;  %s549_s3 = inlined_call_operand.vmem [shape: bf16[2,128], index: 3, kind: output, shape index: {}]  }
   0x1   :  { %v409_v0 = vld [vmem:[%s546_s1 + $0x40] sm:$0xff]   ;;  %386 = vmatprep.subr.bf16.mxu1 %v433_v1  ;;  %402 = vmatprep.mubr.msk.bf16.mxu1 %vm434_vm0, %v433_v1  ;;  %v412_v4 = vld [vmem:[%s546_s1 + $0x48] sm:$0xff]   ;;  %v415_v7 = vld [vmem:[%s546_s1 + $0x50] sm:$0xff]   ;;  %v81_v16 = vunpack.c.l.s4 %v435_v15 }
   0x2   :  { %v410_v2 = vld [vmem:[%s546_s1] sm:$0xff]   ;;  %355 = vmatprep.subr.bf16.mxu0 %v409_v0  ;;  %v413_v5 = vld [vmem:[%s546_s1 + $0x8] sm:$0xff]   ;;  %v416_v8 = vld [vmem:[%s546_s1 + $0x10] sm:$0xff]   ;;  %v84_v22 = vshrl.u32 %v83_v17, 7 }
   0x3   :  { %v411_v3 = vld [vmem:[%s546_s1 + $0x80] sm:$0xff]   ;;  %356 = vmatpush3.bf16.msra.mxu0 %v410_v2  ;;  %v414_v6 = vld [vmem:[%s546_s1 + $0x88] sm:$0xff]   ;;  %v417_v9 = vld [vmem:[%s546_s1 + $0x90] sm:$0xff]   ;;  %v82_v21 = vunpack.c.0.s8 %v81_v16 }
   0x4   :  { %387 = vmatpush3.bf16.msra.mxu1 %v411_v3  ;;  %357 = vmatprep.subr.bf16.mxu0 %v412_v4  ;;  %v418_v10 = vld [vmem:[%s546_s1 + $0x58] sm:$0xff]   ;;  %v421_v13 = vld [vmem:[%s546_s1 + $0x60] sm:$0xff]   ;;  %v424_v19 = vld [vmem:[%s546_s1 + $0x68] sm:$0xff]  }
   0x5   :  { %388 = vmatprep.subr.bf16.mxu1 %v433_v1  ;;  %v419_v11 = vld [vmem:[%s546_s1 + $0x18] sm:$0xff]   ;;  %v422_v14 = vld [vmem:[%s546_s1 + $0x20] sm:$0xff]   ;;  %v425_v20 = vld [vmem:[%s546_s1 + $0x28] sm:$0xff]   ;;  %v85_v26 = vsub.s32 %v82_v21, %v84_v22 }
   0x6   :  { %v420_v12 = vld [vmem:[%s546_s1 + $0x98] sm:$0xff]   ;;  %v423_v18 = vld [vmem:[%s546_s1 + $0xa0] sm:$0xff]   ;;  %v426_v23 = vld [vmem:[%s546_s1 + $0xa8] sm:$0xff]  }
   0x7   :  { %358 = vmatpush3.bf16.msra.mxu0 %v413_v5  ;;  %v427_v24 = vld [vmem:[%s546_s1 + $0x70] sm:$0xff]   ;;  %v330_v27 = vld.sshfl [vmem:[%s547_s0] sm:$0x13 pattern:$0x75316420]  ;;  %v430_v29 = vld [vmem:[%s546_s1 + $0x78] sm:$0xff]  }
   0x8   :  { %389 = vmatpush3.bf16.msra.mxu1 %v414_v6  ;;  %359 = vmatprep.subr.bf16.mxu0 %v415_v7  ;;  %v428_v25 = vld [vmem:[%s546_s1 + $0x30] sm:$0xff]   ;;  %v79_v30 = vcombine.high %v330_v27, %v330_v27  ;;  %v431_v32 = vld [vmem:[%s546_s1 + $0x38] sm:$0xff]   ;;  %v86_v33 = vrot.slane %v330_v27, %v85_v26  ;;  %v329_v38 = vld [vmem:[%s548_s2] ss:$0 sm:$0xff] }
   0x9   :  { %390 = vmatprep.subr.bf16.mxu1 %v433_v1  ;;  %v429_v28 = vld [vmem:[%s546_s1 + $0xb0] sm:$0xff]   ;;  %v432_v34 = vld [vmem:[%s546_s1 + $0xb8] sm:$0xff]  }
   0xa   :  { %v93_v31 = vrot.slane %v79_v30, %v85_v26  ;;  %v94_v35 = vcombine.high %v86_v33, %v86_v33 }
   0xb   :  { %360 = vmatpush3.bf16.msra.mxu0 %v416_v8 }
   0xc   :  { %391 = vmatpush3.bf16.msra.mxu1 %v417_v9  ;;  %361 = vmatprep.subr.bf16.mxu0 %v418_v10 }
   0xd   :  { %392 = vmatprep.subr.bf16.mxu1 %v433_v1  ;;  %274 = vmatprep.mubr.bf16.mxu0 %v93_v31 }
   0xf   :  { %362 = vmatpush3.bf16.msra.mxu0 %v419_v11 }
  0x10   :  { %393 = vmatpush3.bf16.msra.mxu1 %v420_v12  ;;  %363 = vmatprep.subr.bf16.mxu0 %v421_v13 }
  0x11   :  { %394 = vmatprep.subr.bf16.mxu1 %v433_v1 }
  0x13   :  { %364 = vmatpush3.bf16.msra.mxu0 %v422_v14 }
  0x14   :  { %395 = vmatpush3.bf16.msra.mxu1 %v423_v18  ;;  %365 = vmatprep.subr.bf16.mxu0 %v424_v19 }
  0x15   :  { %396 = vmatprep.subr.bf16.mxu1 %v433_v1 }
  0x17   :  { %366 = vmatpush3.bf16.msra.mxu0 %v425_v20 }
  0x18   :  { %397 = vmatpush3.bf16.msra.mxu1 %v426_v23  ;;  %367 = vmatprep.subr.bf16.mxu0 %v427_v24 }
  0x19   :  { %398 = vmatprep.subr.bf16.mxu1 %v433_v1 }
  0x1b   :  { %368 = vmatpush3.bf16.msra.mxu0 %v428_v25 }
  0x1c   :  { %399 = vmatpush3.bf16.msra.mxu1 %v429_v28  ;;  %369 = vmatprep.subr.bf16.mxu0 %v430_v29 }
  0x1d   :  { %400 = vmatprep.subr.bf16.mxu1 %v433_v1 }
  0x1f   :  { %370 = vmatpush3.bf16.msra.mxu0 %v431_v32 }
  0x20   :  { %401 = vmatpush3.bf16.msra.mxu1 %v432_v34 }
  0x22   :  { %275 = vmatmul.mubr.bf16.vlgmr.msra.gmra.mrb[0].mxu0 %v86_v33 }
  0x23   :  { %403 = vmatmul.mubr.bf16.vlgmr.msra.gmra.mrb[0].mxu1 %v94_v35 }
  0xf5   :  { %v371_v36 = vpop.f32.mrb[0].mxu0 }
  0xf6   :  { %v372_v37 = vpop.f32.mrb[1].mxu0  ;;  %v316_v39 = vpop.f32.mrb[0].mxu1 }
  0xf7   :  { %v373_v40 = vadd.f32 %v372_v37, %v371_v36  ;;  %v374_v41 = vpop.f32.mrb[2].mxu0  ;;  %v404_v42 = vpop.f32.mrb[1].mxu1 }
  0xf8   :  { %v375_v43 = vpop.f32.mrb[3].mxu0  ;;  %v319_v44 = vpop.f32.mrb[2].mxu1 }
  0xf9   :  { %v277_v45 = vadd.f32 %v373_v40, %v329_v38  ;;  %v405_v46 = vpop.f32.mrb[3].mxu1 }
  0xfb   :  { %v317_v47 = vadd.f32 %v316_v39, %v277_v45 }
  0xfd   :  { %v322_v48 = vmax.f32 %v317_v47, 0.0 }
  0xff   :  { %v323_v49 = vpack.c.bf16 %v322_v48, %v322_v48 }
 0x101   :  { %324 = vst [vmem:[%s549_s3] sm:$0x1] %v323_v49 }

// kernel: plate_classification_forward.35
= control target key start
LH: loop header
LB: loop body
LE: loop exit
PB: predicated region body
PF: predicated region fallthrough
CT: control target
= control target key end

     0   :  { %v673_v21 = vmov 1966171168   ;;  %v108_v23 = vlaneseq  ;;  %v674_v40 = vmov 0.0   ;;  %vm675_vm0 = vmmov 0   ;;  %s825_s1 = inlined_call_operand.vmem [shape: bf16[640,128], index: 1, kind: input, shape index: {}]   ;;  %s826_s0 = inlined_call_operand.vmem [shape: bf16[2,640], index: 0, kind: input, shape index: {}]   ;;  %s827_s2 = inlined_call_operand.vmem [shape: f32[1,128], index: 2, kind: input, shape index: {}]   ;;  %s828_s3 = inlined_call_operand.vmem [shape: bf16[2,128], index: 3, kind: output, shape index: {}]  }
   0x1   :  { %v632_v0 = vld [vmem:[%s825_s1 + $0x40] sm:$0xff]   ;;  %v636_v4 = vld [vmem:[%s825_s1 + $0x48] sm:$0xff]   ;;  %v640_v8 = vld [vmem:[%s825_s1 + $0x50] sm:$0xff]   ;;  %v106_v22 = vunpack.c.l.s4 %v673_v21 }
   0x2   :  { %v633_v1 = vld [vmem:[%s825_s1] sm:$0xff]   ;;  %556 = vmatprep.subr.bf16.mxu0 %v632_v0  ;;  %v637_v5 = vld [vmem:[%s825_s1 + $0x8] sm:$0xff]   ;;  %v641_v9 = vld [vmem:[%s825_s1 + $0x10] sm:$0xff]   ;;  %v109_v29 = vshrl.u32 %v108_v23, 7 }
   0x3   :  { %v634_v2 = vld [vmem:[%s825_s1 + $0xc0] sm:$0xff]   ;;  %557 = vmatpush3.bf16.msra.mxu0 %v633_v1  ;;  %v638_v6 = vld [vmem:[%s825_s1 + $0xc8] sm:$0xff]   ;;  %v642_v10 = vld [vmem:[%s825_s1 + $0xd0] sm:$0xff]   ;;  %v107_v28 = vunpack.c.0.s8 %v106_v22 }
   0x4   :  { %v635_v3 = vld [vmem:[%s825_s1 + $0x80] sm:$0xff]   ;;  %578 = vmatprep.subr.bf16.mxu1 %v634_v2  ;;  %558 = vmatprep.subr.bf16.mxu0 %v636_v4  ;;  %v639_v7 = vld [vmem:[%s825_s1 + $0x88] sm:$0xff]   ;;  %v643_v11 = vld [vmem:[%s825_s1 + $0x90] sm:$0xff]  }
   0x5   :  { %579 = vmatpush3.bf16.msra.mxu1 %v635_v3  ;;  %v644_v12 = vld [vmem:[%s825_s1 + $0x58] sm:$0xff]   ;;  %v648_v16 = vld [vmem:[%s825_s1 + $0x60] sm:$0xff]   ;;  %v652_v20 = vld [vmem:[%s825_s1 + $0x68] sm:$0xff]   ;;  %v110_v34 = vsub.s32 %v107_v28, %v109_v29 }
   0x6   :  { %580 = vmatprep.subr.bf16.mxu1 %v638_v6  ;;  %v645_v13 = vld [vmem:[%s825_s1 + $0x18] sm:$0xff]   ;;  %v649_v17 = vld [vmem:[%s825_s1 + $0x20] sm:$0xff]   ;;  %v653_v24 = vld [vmem:[%s825_s1 + $0x28] sm:$0xff]  }
   0x7   :  { %559 = vmatpush3.bf16.msra.mxu0 %v637_v5  ;;  %v646_v14 = vld [vmem:[%s825_s1 + $0xd8] sm:$0xff]   ;;  %v650_v18 = vld [vmem:[%s825_s1 + $0xe0] sm:$0xff]   ;;  %v654_v25 = vld [vmem:[%s825_s1 + $0xe8] sm:$0xff]  }
   0x8   :  { %560 = vmatprep.subr.bf16.mxu0 %v640_v8  ;;  %v647_v15 = vld [vmem:[%s825_s1 + $0x98] sm:$0xff]   ;;  %v651_v19 = vld [vmem:[%s825_s1 + $0xa0] sm:$0xff]   ;;  %v655_v26 = vld [vmem:[%s825_s1 + $0xa8] sm:$0xff]  }
   0x9   :  { %581 = vmatpush3.bf16.msra.mxu1 %v639_v7  ;;  %v656_v27 = vld [vmem:[%s825_s1 + $0x70] sm:$0xff]   ;;  %v660_v33 = vld [vmem:[%s825_s1 + $0x78] sm:$0xff]   ;;  %v15_v37 = vld [vmem:[%s826_s0] sm:$0x1f] }
   0xa   :  { %582 = vmatprep.subr.bf16.mxu1 %v642_v10  ;;  %v657_v30 = vld [vmem:[%s825_s1 + $0x30] sm:$0xff]   ;;  %v661_v35 = vld [vmem:[%s825_s1 + $0x38] sm:$0xff]   ;;  %v111_v38 = vrot.slane %v15_v37, %v110_v34  ;;  %v665_v44 = vld [vmem:[%s825_s1 + $0x100] sm:$0xff]   ;;  %v104_v52 = vcombine.high %v15_v37, %v15_v37 }
   0xb   :  { %561 = vmatpush3.bf16.msra.mxu0 %v641_v9  ;;  %v658_v31 = vld [vmem:[%s825_s1 + $0xf0] sm:$0xff]   ;;  %v662_v36 = vld [vmem:[%s825_s1 + $0xf8] sm:$0xff]   ;;  %v666_v47 = vld [vmem:[%s825_s1 + $0x108] sm:$0xff]  }
   0xc   :  { %562 = vmatprep.subr.bf16.mxu0 %v644_v12  ;;  %v659_v32 = vld [vmem:[%s825_s1 + $0xb0] sm:$0xff]   ;;  %v664_v39 = vld [vmem:[%s825_s1 + $0xb8] sm:$0xff]   ;;  %v119_v41 = vcombine.high %v111_v38, %v111_v38  ;;  %v126_v42 = vrot.slane %v111_v38, %v110_v34  ;;  %v669_v50 = vld [vmem:[%s825_s1 + $0x120] sm:$0xff]   ;;  %v118_v54 = vrot.slane %v104_v52, %v110_v34 }
   0xd   :  { %583 = vmatpush3.bf16.msra.mxu1 %v643_v11  ;;  %v667_v48 = vld [vmem:[%s825_s1 + $0x110] sm:$0xff]   ;;  %v668_v49 = vld [vmem:[%s825_s1 + $0x118] sm:$0xff]   ;;  %v670_v51 = vld [vmem:[%s825_s1 + $0x128] sm:$0xff]  }
   0xe   :  { %584 = vmatprep.subr.bf16.mxu1 %v646_v14  ;;  %v140_v43 = vrot.slane %v119_v41, %v110_v34  ;;  %v141_v45 = vcombine.high %v126_v42, %v126_v42  ;;  %v671_v53 = vld [vmem:[%s825_s1 + $0x130] sm:$0xff]   ;;  %v672_v55 = vld [vmem:[%s825_s1 + $0x138] sm:$0xff]   ;;  %v133_v56 = vrot.slane %v118_v54, %v110_v34  ;;  %v515_v58 = vld [vmem:[%s827_s2] ss:$0 sm:$0xff] }
   0xf   :  { %563 = vmatpush3.bf16.msra.mxu0 %v645_v13 }
  0x10   :  { %564 = vmatprep.subr.bf16.mxu0 %v648_v16  ;;  %420 = vmatprep.mubr.bf16.mxu0 %v140_v43  ;;  %v142_v46 = vcombine.high %v140_v43, %v140_v43 }
  0x11   :  { %585 = vmatpush3.bf16.msra.mxu1 %v647_v15 }
  0x12   :  { %586 = vmatprep.subr.bf16.mxu1 %v650_v18  ;;  %460 = vmatprep.mubr.bf16.mxu1 %v142_v46 }
  0x13   :  { %565 = vmatpush3.bf16.msra.mxu0 %v649_v17 }
  0x14   :  { %566 = vmatprep.subr.bf16.mxu0 %v652_v20 }
  0x15   :  { %587 = vmatpush3.bf16.msra.mxu1 %v651_v19 }
  0x16   :  { %588 = vmatprep.subr.bf16.mxu1 %v654_v25 }
  0x17   :  { %567 = vmatpush3.bf16.msra.mxu0 %v653_v24 }
  0x18   :  { %568 = vmatprep.subr.bf16.mxu0 %v656_v27 }
  0x19   :  { %589 = vmatpush3.bf16.msra.mxu1 %v655_v26 }
  0x1a   :  { %590 = vmatprep.subr.bf16.mxu1 %v658_v31 }
  0x1b   :  { %569 = vmatpush3.bf16.msra.mxu0 %v657_v30 }
  0x1c   :  { %570 = vmatprep.subr.bf16.mxu0 %v660_v33 }
  0x1d   :  { %591 = vmatpush3.bf16.msra.mxu1 %v659_v32 }
  0x1e   :  { %592 = vmatprep.subr.bf16.mxu1 %v662_v36 }
  0x1f   :  { %571 = vmatpush3.bf16.msra.mxu0 %v661_v35 }
  0x20   :  { %609 = vmatprep.subr.bf16.mxu0 %v674_v40 }
  0x21   :  { %593 = vmatpush3.bf16.msra.mxu1 %v664_v39 }
  0x22   :  { %421 = vmatmul.mubr.bf16.vlgmr.msra.gmra.mrb[0].mxu0 %v126_v42 }
  0x23   :  { %610 = vmatpush3.bf16.msra.mxu0 %v665_v44  ;;  %625 = vmatprep.mubr.msk.bf16.mxu0 %vm675_vm0, %v674_v40 }
  0x24   :  { %461 = vmatmul.mubr.bf16.vlgmr.msra.gmra.mrb[0].mxu1 %v141_v45  ;;  %611 = vmatprep.subr.bf16.mxu0 %v674_v40 }
  0x27   :  { %612 = vmatpush3.bf16.msra.mxu0 %v666_v47 }
  0x28   :  { %613 = vmatprep.subr.bf16.mxu0 %v674_v40 }
  0x2b   :  { %614 = vmatpush3.bf16.msra.mxu0 %v667_v48 }
  0x2c   :  { %615 = vmatprep.subr.bf16.mxu0 %v674_v40 }
  0x2f   :  { %616 = vmatpush3.bf16.msra.mxu0 %v668_v49 }
  0x30   :  { %617 = vmatprep.subr.bf16.mxu0 %v674_v40 }
  0x33   :  { %618 = vmatpush3.bf16.msra.mxu0 %v669_v50 }
  0x34   :  { %619 = vmatprep.subr.bf16.mxu0 %v674_v40 }
  0x37   :  { %620 = vmatpush3.bf16.msra.mxu0 %v670_v51 }
  0x38   :  { %621 = vmatprep.subr.bf16.mxu0 %v674_v40 }
  0x3b   :  { %622 = vmatpush3.bf16.msra.mxu0 %v671_v53 }
  0x3c   :  { %623 = vmatprep.subr.bf16.mxu0 %v674_v40 }
  0x3f   :  { %624 = vmatpush3.bf16.msra.mxu0 %v672_v55 }
  0x42   :  { %626 = vmatmul.mubr.bf16.vlgmr.msra.gmra.mrb[4].mxu0 %v133_v56 }
  0xf5   :  { %v572_v57 = vpop.f32.mrb[0].mxu0 }
  0xf6   :  { %v573_v59 = vpop.f32.mrb[1].mxu0 }
  0xf7   :  { %v574_v60 = vadd.f32 %v573_v59, %v572_v57  ;;  %v575_v61 = vpop.f32.mrb[2].mxu0  ;;  %v594_v62 = vpop.f32.mrb[0].mxu1 }
  0xf8   :  { %v576_v63 = vpop.f32.mrb[3].mxu0  ;;  %v595_v0 = vpop.f32.mrb[1].mxu1 }
  0xf9   :  { %v423_v1 = vadd.f32 %v574_v60, %v515_v58  ;;  %v596_v2 = vadd.f32 %v595_v0, %v594_v62  ;;  %v597_v3 = vpop.f32.mrb[2].mxu1 }
  0xfa   :  { %v598_v4 = vpop.f32.mrb[3].mxu1 }
  0xfb   :  { %v463_v5 = vadd.f32 %v596_v2, %v423_v1 }
 0x115   :  { %v502_v6 = vpop.f32.mrb[4].mxu0 }
 0x116   :  { %v503_v7 = vadd.f32 %v502_v6, %v463_v5  ;;  %v627_v8 = vpop.f32.mrb[5].mxu0 }
 0x117   :  { %v505_v9 = vpop.f32.mrb[6].mxu0 }
 0x118   :  { %v508_v10 = vmax.f32 %v503_v7, 0.0  ;;  %v628_v11 = vpop.f32.mrb[7].mxu0 }
 0x11a   :  { %v509_v12 = vpack.c.bf16 %v508_v10, %v508_v10 }
 0x11c   :  { %510 = vst [vmem:[%s828_s3] sm:$0x1] %v509_v12 }

// kernel: plate_classification_forward.36
= control target key start
LH: loop header
LB: loop body
LE: loop exit
PB: predicated region body
PF: predicated region fallthrough
CT: control target
= control target key end

     0   :  { %v679_v21 = vmov 1966171168   ;;  %v111_v23 = vlaneseq  ;;  %v680_v40 = vmov 0.0   ;;  %vm681_vm0 = vmmov 0   ;;  %s839_s1 = inlined_call_operand.vmem [shape: bf16[640,128], index: 1, kind: input, shape index: {}]   ;;  %s840_s0 = inlined_call_operand.vmem [shape: bf16[2,640], index: 0, kind: input, shape index: {}]   ;;  %s841_s2 = inlined_call_operand.vmem [shape: f32[1,128], index: 2, kind: input, shape index: {}]   ;;  %s842_s3 = inlined_call_operand.vmem [shape: bf16[2,128], index: 3, kind: input, shape index: {}]   ;;  %s843_s4 = inlined_call_operand.vmem [shape: bf16[2,128], index: 4, kind: output, shape index: {}]  }
   0x1   :  { %v638_v0 = vld [vmem:[%s839_s1 + $0x40] sm:$0xff]   ;;  %v642_v4 = vld [vmem:[%s839_s1 + $0x48] sm:$0xff]   ;;  %v646_v8 = vld [vmem:[%s839_s1 + $0x50] sm:$0xff]   ;;  %v109_v22 = vunpack.c.l.s4 %v679_v21 }
   0x2   :  { %v639_v1 = vld [vmem:[%s839_s1] sm:$0xff]   ;;  %562 = vmatprep.subr.bf16.mxu0 %v638_v0  ;;  %v643_v5 = vld [vmem:[%s839_s1 + $0x8] sm:$0xff]   ;;  %v647_v9 = vld [vmem:[%s839_s1 + $0x10] sm:$0xff]   ;;  %v112_v29 = vshrl.u32 %v111_v23, 7 }
   0x3   :  { %v640_v2 = vld [vmem:[%s839_s1 + $0xc0] sm:$0xff]   ;;  %563 = vmatpush3.bf16.msra.mxu0 %v639_v1  ;;  %v644_v6 = vld [vmem:[%s839_s1 + $0xc8] sm:$0xff]   ;;  %v648_v10 = vld [vmem:[%s839_s1 + $0xd0] sm:$0xff]   ;;  %v110_v28 = vunpack.c.0.s8 %v109_v22 }
   0x4   :  { %v641_v3 = vld [vmem:[%s839_s1 + $0x80] sm:$0xff]   ;;  %584 = vmatprep.subr.bf16.mxu1 %v640_v2  ;;  %564 = vmatprep.subr.bf16.mxu0 %v642_v4  ;;  %v645_v7 = vld [vmem:[%s839_s1 + $0x88] sm:$0xff]   ;;  %v649_v11 = vld [vmem:[%s839_s1 + $0x90] sm:$0xff]  }
   0x5   :  { %585 = vmatpush3.bf16.msra.mxu1 %v641_v3  ;;  %v650_v12 = vld [vmem:[%s839_s1 + $0x58] sm:$0xff]   ;;  %v654_v16 = vld [vmem:[%s839_s1 + $0x60] sm:$0xff]   ;;  %v658_v20 = vld [vmem:[%s839_s1 + $0x68] sm:$0xff]   ;;  %v113_v34 = vsub.s32 %v110_v28, %v112_v29 }
   0x6   :  { %586 = vmatprep.subr.bf16.mxu1 %v644_v6  ;;  %v651_v13 = vld [vmem:[%s839_s1 + $0x18] sm:$0xff]   ;;  %v655_v17 = vld [vmem:[%s839_s1 + $0x20] sm:$0xff]   ;;  %v659_v24 = vld [vmem:[%s839_s1 + $0x28] sm:$0xff]  }
   0x7   :  { %565 = vmatpush3.bf16.msra.mxu0 %v643_v5  ;;  %v652_v14 = vld [vmem:[%s839_s1 + $0xd8] sm:$0xff]   ;;  %v656_v18 = vld [vmem:[%s839_s1 + $0xe0] sm:$0xff]   ;;  %v660_v25 = vld [vmem:[%s839_s1 + $0xe8] sm:$0xff]  }
   0x8   :  { %566 = vmatprep.subr.bf16.mxu0 %v646_v8  ;;  %v653_v15 = vld [vmem:[%s839_s1 + $0x98] sm:$0xff]   ;;  %v657_v19 = vld [vmem:[%s839_s1 + $0xa0] sm:$0xff]   ;;  %v661_v26 = vld [vmem:[%s839_s1 + $0xa8] sm:$0xff]  }
   0x9   :  { %587 = vmatpush3.bf16.msra.mxu1 %v645_v7  ;;  %v662_v27 = vld [vmem:[%s839_s1 + $0x70] sm:$0xff]   ;;  %v666_v33 = vld [vmem:[%s839_s1 + $0x78] sm:$0xff]   ;;  %v18_v37 = vld [vmem:[%s840_s0] sm:$0x1f] }
   0xa   :  { %588 = vmatprep.subr.bf16.mxu1 %v648_v10  ;;  %v663_v30 = vld [vmem:[%s839_s1 + $0x30] sm:$0xff]   ;;  %v667_v35 = vld [vmem:[%s839_s1 + $0x38] sm:$0xff]   ;;  %v114_v38 = vrot.slane %v18_v37, %v113_v34  ;;  %v671_v44 = vld [vmem:[%s839_s1 + $0x100] sm:$0xff]   ;;  %v107_v52 = vcombine.high %v18_v37, %v18_v37 }
   0xb   :  { %567 = vmatpush3.bf16.msra.mxu0 %v647_v9  ;;  %v664_v31 = vld [vmem:[%s839_s1 + $0xf0] sm:$0xff]   ;;  %v668_v36 = vld [vmem:[%s839_s1 + $0xf8] sm:$0xff]   ;;  %v672_v47 = vld [vmem:[%s839_s1 + $0x108] sm:$0xff]  }
   0xc   :  { %568 = vmatprep.subr.bf16.mxu0 %v650_v12  ;;  %v665_v32 = vld [vmem:[%s839_s1 + $0xb0] sm:$0xff]   ;;  %v670_v39 = vld [vmem:[%s839_s1 + $0xb8] sm:$0xff]   ;;  %v122_v41 = vcombine.high %v114_v38, %v114_v38  ;;  %v129_v42 = vrot.slane %v114_v38, %v113_v34  ;;  %v675_v50 = vld [vmem:[%s839_s1 + $0x120] sm:$0xff]   ;;  %v121_v54 = vrot.slane %v107_v52, %v113_v34 }
   0xd   :  { %589 = vmatpush3.bf16.msra.mxu1 %v649_v11  ;;  %v673_v48 = vld [vmem:[%s839_s1 + $0x110] sm:$0xff]   ;;  %v674_v49 = vld [vmem:[%s839_s1 + $0x118] sm:$0xff]   ;;  %v676_v51 = vld [vmem:[%s839_s1 + $0x128] sm:$0xff]  }
   0xe   :  { %590 = vmatprep.subr.bf16.mxu1 %v652_v14  ;;  %v143_v43 = vrot.slane %v122_v41, %v113_v34  ;;  %v144_v45 = vcombine.high %v129_v42, %v129_v42  ;;  %v677_v53 = vld [vmem:[%s839_s1 + $0x130] sm:$0xff]   ;;  %v678_v55 = vld [vmem:[%s839_s1 + $0x138] sm:$0xff]   ;;  %v136_v56 = vrot.slane %v121_v54, %v113_v34  ;;  %v521_v58 = vld [vmem:[%s841_s2] ss:$0 sm:$0xff] }
   0xf   :  { %569 = vmatpush3.bf16.msra.mxu0 %v651_v13  ;;  %v511_v6 = vld [vmem:[%s842_s3] sm:$0x1] }
  0x10   :  { %570 = vmatprep.subr.bf16.mxu0 %v654_v16  ;;  %423 = vmatprep.mubr.bf16.mxu0 %v143_v43  ;;  %v145_v46 = vcombine.high %v143_v43, %v143_v43  ;;  %v512_v7 = vunpack.c.l.bf16 %v511_v6 }
  0x11   :  { %591 = vmatpush3.bf16.msra.mxu1 %v653_v15 }
  0x12   :  { %592 = vmatprep.subr.bf16.mxu1 %v656_v18  ;;  %463 = vmatprep.mubr.bf16.mxu1 %v145_v46 }
  0x13   :  { %571 = vmatpush3.bf16.msra.mxu0 %v655_v17 }
  0x14   :  { %572 = vmatprep.subr.bf16.mxu0 %v658_v20 }
  0x15   :  { %593 = vmatpush3.bf16.msra.mxu1 %v657_v19 }
  0x16   :  { %594 = vmatprep.subr.bf16.mxu1 %v660_v25 }
  0x17   :  { %573 = vmatpush3.bf16.msra.mxu0 %v659_v24 }
  0x18   :  { %574 = vmatprep.subr.bf16.mxu0 %v662_v27 }
  0x19   :  { %595 = vmatpush3.bf16.msra.mxu1 %v661_v26 }
  0x1a   :  { %596 = vmatprep.subr.bf16.mxu1 %v664_v31 }
  0x1b   :  { %575 = vmatpush3.bf16.msra.mxu0 %v663_v30 }
  0x1c   :  { %576 = vmatprep.subr.bf16.mxu0 %v666_v33 }
  0x1d   :  { %597 = vmatpush3.bf16.msra.mxu1 %v665_v32 }
  0x1e   :  { %598 = vmatprep.subr.bf16.mxu1 %v668_v36 }
  0x1f   :  { %577 = vmatpush3.bf16.msra.mxu0 %v667_v35 }
  0x20   :  { %615 = vmatprep.subr.bf16.mxu0 %v680_v40 }
  0x21   :  { %599 = vmatpush3.bf16.msra.mxu1 %v670_v39 }
  0x22   :  { %424 = vmatmul.mubr.bf16.vlgmr.msra.gmra.mrb[0].mxu0 %v129_v42 }
  0x23   :  { %616 = vmatpush3.bf16.msra.mxu0 %v671_v44  ;;  %631 = vmatprep.mubr.msk.bf16.mxu0 %vm681_vm0, %v680_v40 }
  0x24   :  { %464 = vmatmul.mubr.bf16.vlgmr.msra.gmra.mrb[0].mxu1 %v144_v45  ;;  %617 = vmatprep.subr.bf16.mxu0 %v680_v40 }
  0x27   :  { %618 = vmatpush3.bf16.msra.mxu0 %v672_v47 }
  0x28   :  { %619 = vmatprep.subr.bf16.mxu0 %v680_v40 }
  0x2b   :  { %620 = vmatpush3.bf16.msra.mxu0 %v673_v48 }
  0x2c   :  { %621 = vmatprep.subr.bf16.mxu0 %v680_v40 }
  0x2f   :  { %622 = vmatpush3.bf16.msra.mxu0 %v674_v49 }
  0x30   :  { %623 = vmatprep.subr.bf16.mxu0 %v680_v40 }
  0x33   :  { %624 = vmatpush3.bf16.msra.mxu0 %v675_v50 }
  0x34   :  { %625 = vmatprep.subr.bf16.mxu0 %v680_v40 }
  0x37   :  { %626 = vmatpush3.bf16.msra.mxu0 %v676_v51 }
  0x38   :  { %627 = vmatprep.subr.bf16.mxu0 %v680_v40 }
  0x3b   :  { %628 = vmatpush3.bf16.msra.mxu0 %v677_v53 }
  0x3c   :  { %629 = vmatprep.subr.bf16.mxu0 %v680_v40 }
  0x3f   :  { %630 = vmatpush3.bf16.msra.mxu0 %v678_v55 }
  0x42   :  { %632 = vmatmul.mubr.bf16.vlgmr.msra.gmra.mrb[4].mxu0 %v136_v56 }
  0xf5   :  { %v578_v57 = vpop.f32.mrb[0].mxu0 }
  0xf6   :  { %v579_v59 = vpop.f32.mrb[1].mxu0 }
  0xf7   :  { %v580_v60 = vadd.f32 %v579_v59, %v578_v57  ;;  %v581_v61 = vpop.f32.mrb[2].mxu0  ;;  %v600_v62 = vpop.f32.mrb[0].mxu1 }
  0xf8   :  { %v582_v63 = vpop.f32.mrb[3].mxu0  ;;  %v601_v0 = vpop.f32.mrb[1].mxu1 }
  0xf9   :  { %v426_v1 = vadd.f32 %v580_v60, %v521_v58  ;;  %v602_v2 = vadd.f32 %v601_v0, %v600_v62  ;;  %v603_v3 = vpop.f32.mrb[2].mxu1 }
  0xfa   :  { %v604_v4 = vpop.f32.mrb[3].mxu1 }
  0xfb   :  { %v466_v5 = vadd.f32 %v602_v2, %v426_v1 }
 0x115   :  { %v505_v8 = vpop.f32.mrb[4].mxu0 }
 0x116   :  { %v506_v9 = vadd.f32 %v505_v8, %v466_v5  ;;  %v633_v10 = vpop.f32.mrb[5].mxu0 }
 0x117   :  { %v508_v11 = vpop.f32.mrb[6].mxu0 }
 0x118   :  { %v513_v12 = vadd.f32 %v512_v7, %v506_v9  ;;  %v634_v13 = vpop.f32.mrb[7].mxu0 }
 0x11a   :  { %v514_v14 = vmax.f32 %v513_v12, 0.0 }
 0x11c   :  { %v515_v15 = vpack.c.bf16 %v514_v14, %v514_v14 }
 0x11e   :  { %516 = vst [vmem:[%s843_s4] sm:$0x1] %v515_v15 }

// kernel: plate_classification_forward.37
= control target key start
LH: loop header
LB: loop body
LE: loop exit
PB: predicated region body
PF: predicated region fallthrough
CT: control target
= control target key end

     0   :  { %v220_v0 = vmov 0.0|0.0   ;;  %vm221_vm0 = vmmov 0   ;;  %v222_v4 = vmov 0.0   ;;  %v38_v17 = vlaneseq  ;;  %s303_s1 = inlined_call_operand.vmem [shape: f32[128,128], index: 1, kind: input, shape index: {}]   ;;  %s304_s0 = inlined_call_operand.vmem [shape: bf16[2,1,128], index: 0, kind: input, shape index: {}]   ;;  %s305_s2 = inlined_call_operand.vmem [shape: f32[1,128], index: 2, kind: input, shape index: {}]   ;;  %s306_s3 = inlined_call_operand.vmem [shape: f32[2,1], index: 3, kind: output, shape index: {}]  }
   0x1   :  { %193 = vmatprep.subr.bf16.mxu0 %v220_v0  ;;  %v20_v1 = vld [vmem:[%s303_s1] sm:$0xff]  ;;  %v21_v2 = vld [vmem:[%s303_s1 + $0x8] sm:$0xff]  ;;  %v22_v3 = vld [vmem:[%s303_s1 + $0x10] sm:$0xff]  ;;  %190 = vmatprep.mubr.msk.f32.mxu0 %vm221_vm0, %v222_v4  ;;  %vm46_vm1 = vcmask 1041409   ;;  %vm130_vm3 = vcmask 1041408   ;;  %vm134_vm4 = vcmask 1024  }
   0x2   :  { %v194_v5 = vpack.c.bf16 %v21_v2, %v20_v1  ;;  %v23_v6 = vld [vmem:[%s303_s1 + $0x18] sm:$0xff]  ;;  %v24_v8 = vld [vmem:[%s303_s1 + $0x20] sm:$0xff]  ;;  %v25_v9 = vld [vmem:[%s303_s1 + $0x28] sm:$0xff]  ;;  %v39_v22 = vshrl.u32 %v38_v17, 7 }
   0x3   :  { %v197_v7 = vpack.c.bf16 %v23_v6, %v22_v3  ;;  %v200_v10 = vpack.c.bf16 %v25_v9, %v24_v8  ;;  %v26_v11 = vld [vmem:[%s303_s1 + $0x30] sm:$0xff]  ;;  %v27_v12 = vld [vmem:[%s303_s1 + $0x38] sm:$0xff]  ;;  %v28_v14 = vld [vmem:[%s303_s1 + $0x40] sm:$0xff] }
   0x4   :  { %195 = vmatpush3.bf16.msra.mxu0 %v194_v5  ;;  %v203_v13 = vpack.c.bf16 %v27_v12, %v26_v11  ;;  %v29_v15 = vld [vmem:[%s303_s1 + $0x48] sm:$0xff]  ;;  %v30_v18 = vld [vmem:[%s303_s1 + $0x50] sm:$0xff]  ;;  %v31_v19 = vld [vmem:[%s303_s1 + $0x58] sm:$0xff]  ;;  %v40_v29 = vsub.s32 0, %v39_v22 }
   0x5   :  { %196 = vmatprep.subr.bf16.mxu0 %v220_v0  ;;  %v206_v16 = vpack.c.bf16 %v29_v15, %v28_v14  ;;  %v209_v20 = vpack.c.bf16 %v31_v19, %v30_v18  ;;  %v32_v21 = vld [vmem:[%s303_s1 + $0x60] sm:$0xff]  ;;  %v33_v23 = vld [vmem:[%s303_s1 + $0x68] sm:$0xff]  ;;  %v34_v30 = vld [vmem:[%s303_s1 + $0x70] sm:$0xff] }
   0x6   :  { %v14_v24 = vld [vmem:[%s304_s0] sm:$0x1]  ;;  %v15_v25 = vld [vmem:[%s304_s0 + $0x1] sm:$0x1]  ;;  %v212_v26 = vpack.c.bf16 %v33_v23, %v32_v21  ;;  %v35_v31 = vld [vmem:[%s303_s1 + $0x78] sm:$0xff] }
   0x7   :  { %v16_v27 = vunpack.c.l.bf16 %v14_v24  ;;  %v17_v28 = vunpack.c.l.bf16 %v15_v25  ;;  %v215_v32 = vpack.c.bf16 %v35_v31, %v34_v30  ;;  %v140_v39 = vld [vmem:[%s305_s2] ss:$0 sm:$0xff] }
   0x8   :  { %198 = vmatpush3.bf16.msra.mxu0 %v197_v7 }
   0x9   :  { %199 = vmatprep.subr.bf16.mxu0 %v220_v0  ;;  %v41_v33 = vrot.slane %v16_v27, %v40_v29  ;;  %v45_v34 = vrot.slane %v17_v28, %v40_v29 }
   0xb   :  { %v47_v35 = vsel %vm46_vm1, %v45_v34, %v41_v33 }
   0xc   :  { %201 = vmatpush3.bf16.msra.mxu0 %v200_v10 }
   0xd   :  { %202 = vmatprep.subr.bf16.mxu0 %v220_v0 }
  0x10   :  { %204 = vmatpush3.bf16.msra.mxu0 %v203_v13 }
  0x11   :  { %205 = vmatprep.subr.bf16.mxu0 %v220_v0 }
  0x14   :  { %207 = vmatpush3.bf16.msra.mxu0 %v206_v16 }
  0x15   :  { %208 = vmatprep.subr.bf16.mxu0 %v220_v0 }
  0x18   :  { %210 = vmatpush3.bf16.msra.mxu0 %v209_v20 }
  0x19   :  { %211 = vmatprep.subr.bf16.mxu0 %v220_v0 }
  0x1c   :  { %213 = vmatpush3.bf16.msra.mxu0 %v212_v26 }
  0x1d   :  { %214 = vmatprep.subr.bf16.mxu0 %v220_v0 }
  0x20   :  { %216 = vmatpush3.bf16.msra.mxu0 %v215_v32 }
  0x23   :  { %191 = vmatmul.mubr.f32.vlgmr.msra.gmra.mrb[0].mxu0 %v47_v35 }
  0xf6   :  { %v115_v36 = vpop.f32.mrb[0].mxu0 }
  0xf7   :  { %vm119_vm2 = vcmp.gt.f32.partialorder %v115_v36, 0.0  ;;  %v120_v37 = vmul.f32 0.01, %v115_v36  ;;  %v192_v38 = vpop.f32.mrb[1].mxu0 }
  0xf9   :  { %v121_v40 = vsel %vm119_vm2, %v115_v36, %v120_v37 }
  0xfa   :  { %v129_v41 = vmul.f32 %v140_v39, %v121_v40 }
  0xfc   :  { %v131_v42 = vsel %vm130_vm3, %v129_v41, 0.0 }
  0xfd   :  { %132 = vadd.xlane.f32.xlu0 %v131_v42 }
 0x18a   :  { %v133_v43 = vpop.xlane.xlu0 %132 }
 0x18b   :  { %135 = vst.msk [vmem:[%s306_s3] sm:$0x3] %vm134_vm4, %v133_v43 }

// kernel: plate_classification_forward.34
= control target key start
LH: loop header
LB: loop body
LE: loop exit
PB: predicated region body
PF: predicated region fallthrough
CT: control target
= control target key end

     0   :  { %v847_v0 = vmov 0.0   ;;  %vm848_vm0 = vmmov 0   ;;  %v849_v14 = vmov 1966171168   ;;  %v117_v16 = vlaneseq  ;;  %s1069_s1 = inlined_call_operand.vmem [shape: bf16[640,128], index: 1, kind: input, shape index: {}]   ;;  %s1070_s0 = inlined_call_operand.vmem [shape: bf16[2,640], index: 0, kind: input, shape index: {}]   ;;  %s1071_s4 = inlined_call_operand.vmem [shape: bf16[128,128], index: 4, kind: input, shape index: {}]   ;;  %s1072_s3 = inlined_call_operand.vmem [shape: bf16[2,128], index: 3, kind: input, shape index: {}]   ;;  %s1073_s2 = inlined_call_operand.vmem [shape: f32[1,128], index: 2, kind: input, shape index: {}]   ;;  %s1074_s5 = inlined_call_operand.vmem [shape: f32[1,128], index: 5, kind: input, shape index: {}]   ;;  %s1075_s6 = inlined_call_operand.vmem [shape: bf16[2,128], index: 6, kind: output, shape index: {}]  }
   0x1   :  { %749 = vmatprep.subr.bf16.mxu0 %v847_v0  ;;  %v798_v1 = vld [vmem:[%s1069_s1 + $0x40] sm:$0xff]   ;;  %765 = vmatprep.mubr.msk.bf16.mxu0 %vm848_vm0, %v847_v0  ;;  %v801_v4 = vld [vmem:[%s1069_s1 + $0x48] sm:$0xff]   ;;  %v804_v7 = vld [vmem:[%s1069_s1 + $0x50] sm:$0xff]   ;;  %v115_v15 = vunpack.c.l.s4 %v849_v14 }
   0x2   :  { %v799_v2 = vld [vmem:[%s1069_s1 + $0x100] sm:$0xff]   ;;  %687 = vmatprep.subr.bf16.mxu1 %v798_v1  ;;  %v802_v5 = vld [vmem:[%s1069_s1 + $0x108] sm:$0xff]   ;;  %v805_v8 = vld [vmem:[%s1069_s1 + $0x110] sm:$0xff]   ;;  %v118_v21 = vshrl.u32 %v117_v16, 7 }
   0x3   :  { %v800_v3 = vld [vmem:[%s1069_s1] sm:$0xff]   ;;  %750 = vmatpush3.bf16.msra.mxu0 %v799_v2  ;;  %v803_v6 = vld [vmem:[%s1069_s1 + $0x8] sm:$0xff]   ;;  %v806_v9 = vld [vmem:[%s1069_s1 + $0x10] sm:$0xff]   ;;  %v116_v20 = vunpack.c.0.s8 %v115_v15 }
   0x4   :  { %688 = vmatpush3.bf16.msra.mxu1 %v800_v3  ;;  %751 = vmatprep.subr.bf16.mxu0 %v847_v0  ;;  %v807_v10 = vld [vmem:[%s1069_s1 + $0x58] sm:$0xff]   ;;  %v810_v13 = vld [vmem:[%s1069_s1 + $0x60] sm:$0xff]   ;;  %v813_v19 = vld [vmem:[%s1069_s1 + $0x68] sm:$0xff]  }
   0x5   :  { %689 = vmatprep.subr.bf16.mxu1 %v801_v4  ;;  %v808_v11 = vld [vmem:[%s1069_s1 + $0x118] sm:$0xff]   ;;  %v811_v17 = vld [vmem:[%s1069_s1 + $0x120] sm:$0xff]   ;;  %v814_v22 = vld [vmem:[%s1069_s1 + $0x128] sm:$0xff]   ;;  %v119_v25 = vsub.s32 %v116_v20, %v118_v21 }
   0x6   :  { %v809_v12 = vld [vmem:[%s1069_s1 + $0x18] sm:$0xff]   ;;  %v812_v18 = vld [vmem:[%s1069_s1 + $0x20] sm:$0xff]   ;;  %v815_v23 = vld [vmem:[%s1069_s1 + $0x28] sm:$0xff]  }
   0x7   :  { %752 = vmatpush3.bf16.msra.mxu0 %v802_v5  ;;  %v816_v24 = vld [vmem:[%s1069_s1 + $0x70] sm:$0xff]   ;;  %v24_v28 = vld [vmem:[%s1070_s0] sm:$0x1f]  ;;  %v819_v29 = vld [vmem:[%s1069_s1 + $0x78] sm:$0xff]  }
   0x8   :  { %690 = vmatpush3.bf16.msra.mxu1 %v803_v6  ;;  %753 = vmatprep.subr.bf16.mxu0 %v847_v0  ;;  %v817_v26 = vld [vmem:[%s1069_s1 + $0x130] sm:$0xff]   ;;  %v113_v30 = vcombine.high %v24_v28, %v24_v28  ;;  %v120_v31 = vrot.slane %v24_v28, %v119_v25  ;;  %v820_v32 = vld [vmem:[%s1069_s1 + $0x138] sm:$0xff]   ;;  %v823_v37 = vld [vmem:[%s1069_s1 + $0xc0] sm:$0xff]  }
   0x9   :  { %691 = vmatprep.subr.bf16.mxu1 %v804_v7  ;;  %v818_v27 = vld [vmem:[%s1069_s1 + $0x30] sm:$0xff]   ;;  %v821_v35 = vld [vmem:[%s1069_s1 + $0x38] sm:$0xff]   ;;  %v824_v40 = vld [vmem:[%s1071_s4] sm:$0xff]  }
   0xa   :  { %v128_v33 = vcombine.high %v120_v31, %v120_v31  ;;  %v127_v34 = vrot.slane %v113_v30, %v119_v25  ;;  %v973_v39 = vrot.slane %v120_v31, %v119_v25  ;;  %v825_v41 = vld [vmem:[%s1069_s1 + $0x80] sm:$0xff]   ;;  %v826_v42 = vld [vmem:[%s1069_s1 + $0xc8] sm:$0xff]   ;;  %v829_v46 = vld [vmem:[%s1069_s1 + $0xd0] sm:$0xff]  }
   0xb   :  { %754 = vmatpush3.bf16.msra.mxu0 %v805_v8  ;;  %v827_v44 = vld [vmem:[%s1071_s4 + $0x8] sm:$0xff]   ;;  %v830_v47 = vld [vmem:[%s1071_s4 + $0x10] sm:$0xff]   ;;  %v832_v49 = vld [vmem:[%s1069_s1 + $0xd8] sm:$0xff]  }
   0xc   :  { %692 = vmatpush3.bf16.msra.mxu1 %v806_v9  ;;  %755 = vmatprep.subr.bf16.mxu0 %v847_v0  ;;  %v149_v36 = vrot.slane %v128_v33, %v119_v25  ;;  %v142_v38 = vrot.slane %v127_v34, %v119_v25  ;;  %v828_v45 = vld [vmem:[%s1069_s1 + $0x88] sm:$0xff]   ;;  %v831_v48 = vld [vmem:[%s1069_s1 + $0x90] sm:$0xff]   ;;  %v833_v50 = vld [vmem:[%s1071_s4 + $0x18] sm:$0xff]   ;;  %v150_v1 = vcombine.high %v973_v39, %v973_v39 }
   0xd   :  { %693 = vmatprep.subr.bf16.mxu1 %v807_v10  ;;  %v834_v51 = vld [vmem:[%s1069_s1 + $0x98] sm:$0xff]   ;;  %v835_v52 = vld [vmem:[%s1069_s1 + $0xe0] sm:$0xff]   ;;  %v838_v55 = vld [vmem:[%s1069_s1 + $0xe8] sm:$0xff]  }
   0xe   :  { %429 = vmatprep.mubr.bf16.mxu1 %v149_v36  ;;  %v151_v43 = vcombine.high %v149_v36, %v149_v36  ;;  %v836_v53 = vld [vmem:[%s1071_s4 + $0x20] sm:$0xff]   ;;  %v839_v56 = vld [vmem:[%s1071_s4 + $0x28] sm:$0xff]   ;;  %v841_v58 = vld [vmem:[%s1069_s1 + $0xf0] sm:$0xff]  }
   0xf   :  { %756 = vmatpush3.bf16.msra.mxu0 %v808_v11  ;;  %v837_v54 = vld [vmem:[%s1069_s1 + $0xa0] sm:$0xff]   ;;  %v840_v57 = vld [vmem:[%s1069_s1 + $0xa8] sm:$0xff]   ;;  %v842_v59 = vld [vmem:[%s1071_s4 + $0x30] sm:$0xff]  }
  0x10   :  { %694 = vmatpush3.bf16.msra.mxu1 %v809_v12  ;;  %757 = vmatprep.subr.bf16.mxu0 %v847_v0  ;;  %v843_v60 = vld [vmem:[%s1069_s1 + $0xb0] sm:$0xff]   ;;  %v844_v61 = vld [vmem:[%s1069_s1 + $0xf8] sm:$0xff]   ;;  %v517_v2 = vld [vmem:[%s1072_s3] sm:$0x1] }
  0x11   :  { %695 = vmatprep.subr.bf16.mxu1 %v810_v13  ;;  %v845_v62 = vld [vmem:[%s1071_s4 + $0x38] sm:$0xff]   ;;  %v637_v7 = vld [vmem:[%s1073_s2] ss:$0 sm:$0xff] }
  0x12   :  { %v846_v63 = vld [vmem:[%s1069_s1 + $0xb8] sm:$0xff]  }
  0x13   :  { %758 = vmatpush3.bf16.msra.mxu0 %v811_v17  ;;  %v678_v17 = vld [vmem:[%s1074_s5] ss:$0 sm:$0xff] }
  0x14   :  { %696 = vmatpush3.bf16.msra.mxu1 %v812_v18  ;;  %759 = vmatprep.subr.bf16.mxu0 %v847_v0 }
  0x15   :  { %697 = vmatprep.subr.bf16.mxu1 %v813_v19 }
  0x17   :  { %760 = vmatpush3.bf16.msra.mxu0 %v814_v22 }
  0x18   :  { %698 = vmatpush3.bf16.msra.mxu1 %v815_v23  ;;  %761 = vmatprep.subr.bf16.mxu0 %v847_v0 }
  0x19   :  { %699 = vmatprep.subr.bf16.mxu1 %v816_v24 }
  0x1b   :  { %762 = vmatpush3.bf16.msra.mxu0 %v817_v26 }
  0x1c   :  { %700 = vmatpush3.bf16.msra.mxu1 %v818_v27  ;;  %763 = vmatprep.subr.bf16.mxu0 %v847_v0 }
  0x1d   :  { %701 = vmatprep.subr.bf16.mxu1 %v819_v29 }
  0x1f   :  { %764 = vmatpush3.bf16.msra.mxu0 %v820_v32 }
  0x20   :  { %702 = vmatpush3.bf16.msra.mxu1 %v821_v35  ;;  %769 = vmatprep.subr.bf16.mxu0 %v847_v0 }
  0x21   :  { %709 = vmatprep.subr.bf16.mxu1 %v823_v37 }
  0x22   :  { %766 = vmatmul.mubr.bf16.vlgmr.msra.gmra.mrb[0].mxu0 %v142_v38 }
  0x23   :  { %430 = vmatmul.mubr.bf16.vlgmr.msra.gmra.mrb[0].mxu1 %v973_v39  ;;  %770 = vmatpush3.bf16.msra.mxu0 %v824_v40 }
  0x24   :  { %710 = vmatpush3.bf16.msra.mxu1 %v825_v41  ;;  %771 = vmatprep.subr.bf16.mxu0 %v847_v0 }
  0x25   :  { %711 = vmatprep.subr.bf16.mxu1 %v826_v42  ;;  %785 = vmatprep.mubr.msk.bf16.mxu0 %vm848_vm0, %v847_v0 }
  0x26   :  { %469 = vmatprep.mubr.bf16.mxu1 %v151_v43 }
  0x27   :  { %772 = vmatpush3.bf16.msra.mxu0 %v827_v44 }
  0x28   :  { %712 = vmatpush3.bf16.msra.mxu1 %v828_v45  ;;  %773 = vmatprep.subr.bf16.mxu0 %v847_v0 }
  0x29   :  { %713 = vmatprep.subr.bf16.mxu1 %v829_v46 }
  0x2b   :  { %774 = vmatpush3.bf16.msra.mxu0 %v830_v47 }
  0x2c   :  { %714 = vmatpush3.bf16.msra.mxu1 %v831_v48  ;;  %775 = vmatprep.subr.bf16.mxu0 %v847_v0 }
  0x2d   :  { %715 = vmatprep.subr.bf16.mxu1 %v832_v49 }
  0x2f   :  { %776 = vmatpush3.bf16.msra.mxu0 %v833_v50 }
  0x30   :  { %716 = vmatpush3.bf16.msra.mxu1 %v834_v51  ;;  %777 = vmatprep.subr.bf16.mxu0 %v847_v0 }
  0x31   :  { %717 = vmatprep.subr.bf16.mxu1 %v835_v52 }
  0x33   :  { %778 = vmatpush3.bf16.msra.mxu0 %v836_v53 }
  0x34   :  { %718 = vmatpush3.bf16.msra.mxu1 %v837_v54  ;;  %779 = vmatprep.subr.bf16.mxu0 %v847_v0 }
  0x35   :  { %719 = vmatprep.subr.bf16.mxu1 %v838_v55 }
  0x37   :  { %780 = vmatpush3.bf16.msra.mxu0 %v839_v56 }
  0x38   :  { %720 = vmatpush3.bf16.msra.mxu1 %v840_v57  ;;  %781 = vmatprep.subr.bf16.mxu0 %v847_v0 }
  0x39   :  { %721 = vmatprep.subr.bf16.mxu1 %v841_v58 }
  0x3b   :  { %782 = vmatpush3.bf16.msra.mxu0 %v842_v59 }
  0x3c   :  { %722 = vmatpush3.bf16.msra.mxu1 %v843_v60  ;;  %783 = vmatprep.subr.bf16.mxu0 %v847_v0 }
  0x3d   :  { %723 = vmatprep.subr.bf16.mxu1 %v844_v61 }
  0x3f   :  { %784 = vmatpush3.bf16.msra.mxu0 %v845_v62 }
  0x40   :  { %724 = vmatpush3.bf16.msra.mxu1 %v846_v63 }
  0x42   :  { %786 = vmatmul.mubr.bf16.vlgmr.msra.gmra.mrb[0].mxu0 %v517_v2 }
  0x43   :  { %470 = vmatmul.mubr.bf16.vlgmr.msra.gmra.mrb[4].mxu1 %v150_v1 }
  0xf6   :  { %v703_v3 = vpop.f32.mrb[0].mxu1 }
  0xf7   :  { %v704_v4 = vpop.f32.mrb[1].mxu1 }
  0xf8   :  { %v705_v5 = vadd.f32 %v704_v4, %v703_v3  ;;  %v706_v0 = vpop.f32.mrb[2].mxu1 }
  0xf9   :  { %v707_v6 = vpop.f32.mrb[3].mxu1 }
  0xfa   :  { %v432_v13 = vadd.f32 %v705_v5, %v637_v7 }
 0x115   :  { %v623_v8 = vpop.f32.mrb[0].mxu0 }
 0x116   :  { %v725_v9 = vpop.f32.mrb[4].mxu1  ;;  %v787_v10 = vpop.f32.mrb[1].mxu0 }
 0x117   :  { %v726_v11 = vpop.f32.mrb[5].mxu1  ;;  %v626_v12 = vpop.f32.mrb[2].mxu0 }
 0x118   :  { %v727_v14 = vadd.f32 %v726_v11, %v725_v9  ;;  %v728_v15 = vpop.f32.mrb[6].mxu1  ;;  %v788_v16 = vpop.f32.mrb[3].mxu0 }
 0x119   :  { %v729_v18 = vpop.f32.mrb[7].mxu1 }
 0x11a   :  { %v472_v19 = vadd.f32 %v727_v14, %v432_v13 }
 0x11c   :  { %v789_v20 = vadd.f32 %v678_v17, %v472_v19 }
 0x11e   :  { %v790_v21 = vadd.f32 %v789_v20, %v623_v8 }
 0x120   :  { %v630_v22 = vmax.f32 %v790_v21, 0.0 }
 0x122   :  { %v631_v23 = vpack.c.bf16 %v630_v22, %v630_v22 }
 0x124   :  { %632 = vst [vmem:[%s1075_s6] sm:$0x1] %v631_v23 }

</bundles_post_ra>
